<compile_context>
chip_gen: v7x
topology: tpu7x:2x2x1
jax: 0.10.0
libtpu: 0.0.40
codegen_flags: <defaults>
</compile_context>

<pallas_src>
import math
import jax
import jax.numpy as jnp
from jax.experimental import pallas as pl
from jax.experimental.pallas import tpu as pltpu


# ----------------------------------------------------------------------------
# Fused decoder-stack kernel (all layers + final LayerNorm, TB batch elements/step)
# ----------------------------------------------------------------------------
def _make_fused_decoder_kernel(TB, S, Sm, D, H, F, n_layers):
    DH = D // H
    M = TB * S
    eps = 1e-5

    def layer_norm(v, gamma, beta):
        mu = jnp.mean(v, axis=-1, keepdims=True)
        var = jnp.mean((v - mu) ** 2, axis=-1, keepdims=True)
        return (v - mu) * jax.lax.rsqrt(var + eps) * gamma + beta

    def attn_one(q, k, v, bias):
        # q: (S, D) f32, k/v: (Sk, D) f32, bias: (S, Sk) f32 additive (0 / -1e4).
        # 1/sqrt(DH) is already folded into the Q projection weights/biases.
        Sq, Sk = q.shape[0], k.shape[0]
        qh = q.reshape(Sq, H, DH).astype(jnp.bfloat16)
        kh = k.reshape(Sk, H, DH).astype(jnp.bfloat16)
        vh = v.reshape(Sk, H, DH).astype(jnp.bfloat16)
        s = jnp.einsum("qhd,khd->hqk", qh, kh,
                       preferred_element_type=jnp.float32) + bias[None]
        m = jnp.max(s, axis=-1, keepdims=True)
        e = jnp.exp(s - m)
        p = e * pl.reciprocal(jnp.sum(e, axis=-1, keepdims=True), approx=True)
        ctx = jnp.einsum("hqk,khd->qhd", p.astype(jnp.bfloat16), vh,
                         preferred_element_type=jnp.float32)       # (Sq, H, DH)
        return ctx.reshape(Sq, D)

    def batched_attention(q, k, v, bias_ref, Sk):
        # q: (TB*S, D), k/v: (TB*Sk, D) f32; bias_ref block (TB, S, Sk) bf16.
        outs = []
        for t in range(TB):                      # static, small batch tile
            bias = bias_ref[t].astype(jnp.float32)
            outs.append(attn_one(q[t * S:(t + 1) * S],
                                 k[t * Sk:(t + 1) * Sk],
                                 v[t * Sk:(t + 1) * Sk], bias))
        return outs[0] if TB == 1 else jnp.concatenate(outs, axis=0)

    def kernel(x_ref, mem_ref, tbias_ref, sbias_ref,
               wqkv_ref, wo_s_ref, wq_c_ref, wkv_c_ref, wo_c_ref,
               w1_ref, w2_ref, bd_ref, bf_ref,
               gfin_ref, bfin_ref,
               o_ref, x_scr):
        l = pl.program_id(1)

        # first layer for this batch tile: load the embedded tokens into the carry
        @pl.when(l == 0)
        def _():
            x_scr[...] = x_ref[...]

        x = x_scr[...]                    # (TB*S, D) f32 activation carried across layers
        bd = bd_ref[0]                    # (15, D) f32 packed biases + LN params:
        #  0 bq_s 1 bk_s 2 bv_s 3 bo_s 4 bq_c 5 bk_c 6 bv_c 7 bo_c 8 b2
        #  9 g1  10 be1 11 g2  12 be2 13 g3  14 be3
        bf = bf_ref[0]                    # (1, F) f32 FFN first bias

        # ---- masked self-attention (fused QKV projection) --------------------
        x_bf = x.astype(jnp.bfloat16)
        qkv = jnp.dot(x_bf, wqkv_ref[0], preferred_element_type=jnp.float32)
        q = qkv[:, 0:D] + bd[0:1]
        k = qkv[:, D:2 * D] + bd[1:2]
        v = qkv[:, 2 * D:3 * D] + bd[2:3]
        ctx = batched_attention(q, k, v, tbias_ref, S)
        attn = jnp.dot(ctx.astype(jnp.bfloat16), wo_s_ref[0],
                       preferred_element_type=jnp.float32) + bd[3:4]
        x = layer_norm(attn + x, bd[9:10], bd[10:11])

        # ---- cross-attention over encoder memory (fused KV projection) -------
        x_bf = x.astype(jnp.bfloat16)
        q = jnp.dot(x_bf, wq_c_ref[0], preferred_element_type=jnp.float32) + bd[4:5]
        kv = jnp.dot(mem_ref[...], wkv_c_ref[0],           # memory already bf16
                     preferred_element_type=jnp.float32)
        kc = kv[:, 0:D] + bd[5:6]
        vc = kv[:, D:2 * D] + bd[6:7]
        ctx = batched_attention(q, kc, vc, sbias_ref, Sm)
        attn = jnp.dot(ctx.astype(jnp.bfloat16), wo_c_ref[0],
                       preferred_element_type=jnp.float32) + bd[7:8]
        x = layer_norm(attn + x, bd[11:12], bd[12:13])

        # ---- position-wise FFN (Linear -> ReLU -> Linear) ---------------------
        x_bf = x.astype(jnp.bfloat16)
        h = jnp.dot(x_bf, w1_ref[0], preferred_element_type=jnp.float32) + bf
        h = jnp.maximum(h, 0.0)
        f = jnp.dot(h.astype(jnp.bfloat16), w2_ref[0],
                    preferred_element_type=jnp.float32) + bd[8:9]
        x = layer_norm(f + x, bd[13:14], bd[14:15])

        x_scr[...] = x                    # carry to next layer

        # last layer: apply the decoder's final LayerNorm and emit the output
        @pl.when(l == n_layers - 1)
        def _():
            o_ref[...] = layer_norm(x, gfin_ref[...], bfin_ref[...]).astype(o_ref.dtype)

    return kernel


def _vmem_limit_bytes():
    # Raise the scoped-VMEM cap above the defaults (16 MiB v5e / 32 MiB v6e,v7x) so bigger
    # batch tiles + double-buffered weights fit, but keep headroom below physical capacity
    # (128 MiB v5e/v6e, 64 MiB v7x -> ~48 MiB here).
    try:
        cap = getattr(pltpu.get_tpu_info(), "vmem_capacity_bytes", 128 * 1024 * 1024)
        return min(int(cap) * 3 // 4, 96 * 1024 * 1024)
    except Exception:  # pragma: no cover - conservative fallback
        return 64 * 1024 * 1024


# ----------------------------------------------------------------------------
# Wrapper (pallas_call plumbing)
# ----------------------------------------------------------------------------
def decoder_stack(x_emb, memory, tbias, sbias, stacked, final_gamma, final_beta,
                  n_head, batch_tile):
    B, S, D = x_emb.shape
    Sm = memory.shape[1]
    N = stacked["wqkv"].shape[0]
    F = stacked["w1"].shape[2]
    TB = min(batch_tile, B)
    assert B % TB == 0, "batch must be divisible by the batch tile"
    kernel = _make_fused_decoder_kernel(TB, S, Sm, D, n_head, F, N)

    # Row-flatten activations on the host (free, contiguous) so every grid step sees a
    # lane-dense (TB*S, D) slab and one weight stream is amortized over TB batch elements.
    x_flat = x_emb.reshape(B * S, D).astype(jnp.float32)
    mem_flat = memory.reshape(B * Sm, D).astype(jnp.bfloat16)

    def rows(tile_rows, cols):     # row-flattened per-batch-tile activations / output
        return pl.BlockSpec((tile_rows, cols), lambda b, l: (b, 0))

    def per_tile3(s1, s2):         # per-batch-tile 3-D (mask biases)
        return pl.BlockSpec((TB, s1, s2), lambda b, l: (b, 0, 0))

    def per_layer(s1, s2):         # weight stream: prefetch layer l+1 while computing l
        return pl.BlockSpec((1, s1, s2), lambda b, l: (l, 0, 0))

    shared = pl.BlockSpec((1, D), lambda b, l: (0, 0))

    out_flat = pl.pallas_call(
        kernel,
        out_shape=jax.ShapeDtypeStruct((B * S, D), jnp.float32),
        grid=(B // TB, N),                       # layer (sequential carry) axis last
        in_specs=[
            rows(TB * S, D),                     # embedded target tokens (f32)
            rows(TB * Sm, D),                    # encoder memory (bf16)
            per_tile3(S, S),                     # target-mask additive bias (bf16)
            per_tile3(S, Sm),                    # source-mask additive bias (bf16)
            per_layer(D, 3 * D),                 # self-attn fused QKV weights
            per_layer(D, D),                     # self-attn output proj
            per_layer(D, D),                     # cross-attn Q proj
            per_layer(D, 2 * D),                 # cross-attn fused KV proj
            per_layer(D, D),                     # cross-attn output proj
            per_layer(D, F),                     # FFN linear1
            per_layer(F, D),                     # FFN linear2
            per_layer(15, D),                    # packed biases + LN params
            per_layer(1, F),                     # FFN linear1 bias
            shared, shared,                      # final LayerNorm gamma/beta
        ],
        out_specs=rows(TB * S, D),
        scratch_shapes=[pltpu.VMEM((TB * S, D), jnp.float32)],   # activation carry
        compiler_params=pltpu.CompilerParams(
            dimension_semantics=("parallel", "arbitrary"),
            vmem_limit_bytes=_vmem_limit_bytes(),
        ),
    )(x_flat, mem_flat, tbias, sbias,
      stacked["wqkv"], stacked["wo_s"], stacked["wq_c"], stacked["wkv_c"],
      stacked["wo_c"], stacked["w1"], stacked["w2"],
      stacked["bias_d"], stacked["bias_f"],
      final_gamma.reshape(1, D), final_beta.reshape(1, D))
    return out_flat.reshape(B, S, D)


def decoder_forward(ids, memory, src_mask, tgt_mask, params, batch_tile=2):
    B, S = ids.shape
    # TransformerEmbedding: token gather + sinusoidal positional encoding
    # (gather kept in plain-JAX glue; dropout = identity at inference).
    x = params["emb"][ids] + params["pe"][None, :S, :]
    # Hoist the mask -> additive bias conversion out of the kernel and ship it in bf16
    # (mask==0 -> -1e4 added to the score; softmax-equivalent to masked_fill(-1e4)).
    tbias = ((tgt_mask.astype(jnp.float32) - 1.0) * 10000.0).astype(jnp.bfloat16)
    sbias = ((src_mask.astype(jnp.float32) - 1.0) * 10000.0).astype(jnp.bfloat16)
    return decoder_stack(x.astype(jnp.float32), memory, tbias, sbias,
                         params["stacked"], params["final_gamma"],
                         params["final_beta"], params["n_head"], batch_tile)


# ----------------------------------------------------------------------------
# Deterministic parameter construction
# ----------------------------------------------------------------------------
def sinusoidal_pe(max_len, d_model):
    pos = jnp.arange(max_len, dtype=jnp.float32)[:, None]
    i = jnp.arange(0, d_model, 2, dtype=jnp.float32)
    div = jnp.exp(-math.log(10000.0) * i / d_model)
    pe = jnp.zeros((max_len, d_model), jnp.float32)
    pe = pe.at[:, 0::2].set(jnp.sin(pos * div))
    pe = pe.at[:, 1::2].set(jnp.cos(pos * div))
    return pe


def init_params(key, vocab, max_len, d_model, ffn_hidden, n_head, n_layers):
    D, F = d_model, ffn_hidden
    DH = D // n_head
    scale = 1.0 / math.sqrt(DH)
    keys = jax.random.split(key, 1 + n_layers)

    def w(k, shape, s=0.05):
        return jax.random.normal(k, shape) * s

    def bvec(k, n, s=0.01):
        return (jax.random.normal(k, (n,)) * s).astype(jnp.float32)

    names = ("wqkv", "wo_s", "wq_c", "wkv_c", "wo_c", "w1", "w2", "bias_d", "bias_f")
    per = {n: [] for n in names}
    ones, zeros = jnp.ones(D, jnp.float32), jnp.zeros(D, jnp.float32)

    for l in range(n_layers):
        k = jax.random.split(keys[1 + l], 16)
        # Fold the 1/sqrt(d_head) attention scale into the Q projections (weights + biases).
        wqkv = w(k[0], (D, 3 * D)).at[:, :D].multiply(scale)
        wq_c = w(k[1], (D, D)) * scale
        per["wqkv"].append(wqkv.astype(jnp.bfloat16))          # matmul weights bf16
        per["wo_s"].append(w(k[2], (D, D)).astype(jnp.bfloat16))
        per["wq_c"].append(wq_c.astype(jnp.bfloat16))
        per["wkv_c"].append(w(k[3], (D, 2 * D)).astype(jnp.bfloat16))
        per["wo_c"].append(w(k[4], (D, D)).astype(jnp.bfloat16))
        per["w1"].append(w(k[5], (D, F)).astype(jnp.bfloat16))
        per["w2"].append(w(k[6], (F, D)).astype(jnp.bfloat16))

        bias_d = jnp.stack([
            bvec(k[7], D) * scale,   # 0: self-attn Q bias (scale folded)
            bvec(k[8], D),           # 1: self-attn K bias
            bvec(k[9], D),           # 2: self-attn V bias
            bvec(k[10], D),          # 3: self-attn out-proj bias
            bvec(k[11], D) * scale,  # 4: cross-attn Q bias (scale folded)
            bvec(k[12], D),          # 5: cross-attn K bias
            bvec(k[13], D),          # 6: cross-attn V bias
            bvec(k[14], D),          # 7: cross-attn out-proj bias
            zeros,                   # 8: FFN linear2 bias
            ones, zeros,             # 9,10: LN1 gamma/beta
            ones, zeros,             # 11,12: LN2 gamma/beta
            ones, zeros,             # 13,14: LN3 gamma/beta
        ]).astype(jnp.float32)
        per["bias_d"].append(bias_d)
        per["bias_f"].append((jax.random.normal(k[15], (1, F)) * 0.01).astype(jnp.float32))

    stacked = {n: jnp.stack(v) for n, v in per.items()}   # leading layer axis (N, ...)
    return dict(
        n_head=n_head,
        emb=(jax.random.normal(keys[0], (vocab, D)) * 0.02).astype(jnp.float32),
        pe=sinusoidal_pe(max_len, D),
        final_gamma=jnp.ones((D,), jnp.float32),
        final_beta=jnp.zeros((D,), jnp.float32),
        stacked=stacked,
    )


if __name__ == "__main__":
    vocab_size, seq_len_max, d_model, ffn_hidden, n_head, N = 64, 16, 32, 64, 4, 2
    B, S_tgt, S_src = 4, 8, 8    # batch 4, tiled TB=2 -> 2 parallel grid tiles

    key = jax.random.PRNGKey(0)
    kp, kid, kmem = jax.random.split(key, 3)
    params = init_params(kp, vocab_size, seq_len_max, d_model, ffn_hidden, n_head, N)

    ids = jax.random.randint(kid, (B, S_tgt), 0, vocab_size)                       # target tokens
    memory = jax.random.normal(kmem, (B, S_src, d_model), dtype=jnp.float32)       # encoder output
    tgt_mask = jnp.tril(jnp.ones((S_tgt, S_tgt), jnp.float32))[None].repeat(B, 0)  # causal
    src_mask = jnp.ones((B, S_tgt, S_src), jnp.float32)                            # no src padding

    out = decoder_forward(ids, memory, src_mask, tgt_mask, params, batch_tile=2)
    out = jax.block_until_ready(out)
    assert out.shape == (B, S_tgt, d_model) and out.dtype == jnp.float32
    assert bool(jnp.all(jnp.isfinite(out)))
    print("KERNEL_OK")
</pallas_src>

<mosaic_0001>
module attributes {stable_mosaic.version = 11 : i64} {
  func.func @kernel(%arg0: i32, %arg1: i32, %arg2: memref<16x32xf32, #tpu.memory_space<vmem>>, %arg3: memref<16x32xbf16, #tpu.memory_space<vmem>>, %arg4: memref<2x8x8xbf16, #tpu.memory_space<vmem>>, %arg5: memref<2x8x8xbf16, #tpu.memory_space<vmem>>, %arg6: memref<1x32x96xbf16, #tpu.memory_space<vmem>>, %arg7: memref<1x32x32xbf16, #tpu.memory_space<vmem>>, %arg8: memref<1x32x32xbf16, #tpu.memory_space<vmem>>, %arg9: memref<1x32x64xbf16, #tpu.memory_space<vmem>>, %arg10: memref<1x32x32xbf16, #tpu.memory_space<vmem>>, %arg11: memref<1x32x64xbf16, #tpu.memory_space<vmem>>, %arg12: memref<1x64x32xbf16, #tpu.memory_space<vmem>>, %arg13: memref<1x15x32xf32, #tpu.memory_space<vmem>>, %arg14: memref<1x1x64xf32, #tpu.memory_space<vmem>>, %arg15: memref<1x32xf32, #tpu.memory_space<vmem>>, %arg16: memref<1x32xf32, #tpu.memory_space<vmem>>, %arg17: memref<16x32xf32, #tpu.memory_space<vmem>>, %arg18: memref<16x32xf32, #tpu.memory_space<vmem>>) attributes {dimension_semantics = [#tpu.dimension_semantics<parallel>, #tpu.dimension_semantics<arbitrary>], iteration_bounds = array<i64: 2, 2>, scalar_prefetch = 0 : i64, scratch_operands = 1 : i64, tpu.core_type = #tpu.core_type<tc>, window_params = [{transform_indices = @transform_0, window_bounds = array<i64: 16, 32>}, {transform_indices = @transform_1, window_bounds = array<i64: 16, 32>}, {transform_indices = @transform_2, window_bounds = array<i64: 2, 8, 8>}, {transform_indices = @transform_3, window_bounds = array<i64: 2, 8, 8>}, {transform_indices = @transform_4, window_bounds = array<i64: 1, 32, 96>}, {transform_indices = @transform_5, window_bounds = array<i64: 1, 32, 32>}, {transform_indices = @transform_6, window_bounds = array<i64: 1, 32, 32>}, {transform_indices = @transform_7, window_bounds = array<i64: 1, 32, 64>}, {transform_indices = @transform_8, window_bounds = array<i64: 1, 32, 32>}, {transform_indices = @transform_9, window_bounds = array<i64: 1, 32, 64>}, {transform_indices = @transform_10, window_bounds = array<i64: 1, 64, 32>}, {transform_indices = @transform_11, window_bounds = array<i64: 1, 15, 32>}, {transform_indices = @transform_12, window_bounds = array<i64: 1, 1, 64>}, {pipeline_mode = #tpu.pipeline_mode<synchronous>, transform_indices = @transform_13, window_bounds = array<i64: 1, 32>}, {pipeline_mode = #tpu.pipeline_mode<synchronous>, transform_indices = @transform_14, window_bounds = array<i64: 1, 32>}, {transform_indices = @transform_15, window_bounds = array<i64: 16, 32>}]} {
    %c0_i32 = arith.constant 0 : i32
    %0 = arith.cmpi eq, %arg1, %c0_i32 : i32
    %1 = arith.extui %0 : i1 to i32
    %c0_i32_0 = arith.constant 0 : i32
    %2 = arith.cmpi ne, %1, %c0_i32_0 : i32
    scf.if %2 {
      %c0_83 = arith.constant 0 : index
      %c0_84 = arith.constant 0 : index
      %273 = vector.load %arg2[%c0_83, %c0_84] : memref<16x32xf32, #tpu.memory_space<vmem>>, vector<16x32xf32>
      %c0_85 = arith.constant 0 : index
      %c0_86 = arith.constant 0 : index
      %274 = vector.load %arg18[%c0_85, %c0_86] : memref<16x32xf32, #tpu.memory_space<vmem>>, vector<16x32xf32>
      tpu.vector_store %arg18[%c0_85, %c0_86], %273 {strides = array<i32>} : memref<16x32xf32, #tpu.memory_space<vmem>>, vector<16x32xf32>,
    } else {
    }
    %c0 = arith.constant 0 : index
    %c0_1 = arith.constant 0 : index
    %3 = vector.load %arg18[%c0, %c0_1] : memref<16x32xf32, #tpu.memory_space<vmem>>, vector<16x32xf32>
    %c0_2 = arith.constant 0 : index
    %c0_3 = arith.constant 0 : index
    %c0_4 = arith.constant 0 : index
    %4 = vector.load %arg13[%c0_2, %c0_3, %c0_4] : memref<1x15x32xf32, #tpu.memory_space<vmem>>, vector<1x15x32xf32>
    %5 = vector.shape_cast %4 : vector<1x15x32xf32> to vector<15x32xf32>
    %c0_5 = arith.constant 0 : index
    %c0_6 = arith.constant 0 : index
    %c0_7 = arith.constant 0 : index
    %6 = vector.load %arg14[%c0_5, %c0_6, %c0_7] : memref<1x1x64xf32, #tpu.memory_space<vmem>>, vector<1x1x64xf32>
    %7 = vector.shape_cast %6 : vector<1x1x64xf32> to vector<1x64xf32>
    %8 = arith.truncf %3 : vector<16x32xf32> to vector<16x32xbf16>
    %c0_8 = arith.constant 0 : index
    %c0_9 = arith.constant 0 : index
    %c0_10 = arith.constant 0 : index
    %9 = vector.load %arg6[%c0_8, %c0_9, %c0_10] : memref<1x32x96xbf16, #tpu.memory_space<vmem>>, vector<1x32x96xbf16>
    %10 = vector.shape_cast %9 : vector<1x32x96xbf16> to vector<32x96xbf16>
    %cst = arith.constant dense<0.000000e+00> : vector<16x96xf32>
    %11 = tpu.matmul %8, %10, %cst {dimension_numbers = #tpu.dot_dimension_numbers<[1], [0], [0], [1], [0, 0, 1, 1], [], []>} : vector<16x32xbf16>, vector<32x96xbf16>, vector<16x96xf32> -> vector<16x96xf32>
    %12 = vector.extract_strided_slice %11 {offsets = [0, 0], sizes = [16, 32], strides = [1, 1]} : vector<16x96xf32> to vector<16x32xf32>
    %13 = vector.extract_strided_slice %5 {offsets = [0, 0], sizes = [1, 32], strides = [1, 1]} : vector<15x32xf32> to vector<1x32xf32>
    %14 = vector.broadcast %13 : vector<1x32xf32> to vector<16x32xf32>
    %15 = arith.addf %12, %14 : vector<16x32xf32>
    %16 = vector.extract_strided_slice %11 {offsets = [0, 32], sizes = [16, 32], strides = [1, 1]} : vector<16x96xf32> to vector<16x32xf32>
    %17 = vector.extract_strided_slice %5 {offsets = [1, 0], sizes = [1, 32], strides = [1, 1]} : vector<15x32xf32> to vector<1x32xf32>
    %18 = vector.broadcast %17 : vector<1x32xf32> to vector<16x32xf32>
    %19 = arith.addf %16, %18 : vector<16x32xf32>
    %20 = vector.extract_strided_slice %11 {offsets = [0, 64], sizes = [16, 32], strides = [1, 1]} : vector<16x96xf32> to vector<16x32xf32>
    %21 = vector.extract_strided_slice %5 {offsets = [2, 0], sizes = [1, 32], strides = [1, 1]} : vector<15x32xf32> to vector<1x32xf32>
    %22 = vector.broadcast %21 : vector<1x32xf32> to vector<16x32xf32>
    %23 = arith.addf %20, %22 : vector<16x32xf32>
    %c0_11 = arith.constant 0 : index
    %c0_12 = arith.constant 0 : index
    %c0_13 = arith.constant 0 : index
    %24 = vector.load %arg4[%c0_11, %c0_12, %c0_13] : memref<2x8x8xbf16, #tpu.memory_space<vmem>>, vector<1x8x8xbf16>
    %25 = vector.shape_cast %24 : vector<1x8x8xbf16> to vector<8x8xbf16>
    %26 = arith.extf %25 : vector<8x8xbf16> to vector<8x8xf32>
    %27 = vector.extract_strided_slice %15 {offsets = [0, 0], sizes = [8, 32], strides = [1, 1]} : vector<16x32xf32> to vector<8x32xf32>
    %28 = vector.extract_strided_slice %19 {offsets = [0, 0], sizes = [8, 32], strides = [1, 1]} : vector<16x32xf32> to vector<8x32xf32>
    %29 = vector.extract_strided_slice %23 {offsets = [0, 0], sizes = [8, 32], strides = [1, 1]} : vector<16x32xf32> to vector<8x32xf32>
    %30 = vector.shape_cast %27 : vector<8x32xf32> to vector<8x4x8xf32>
    %31 = arith.truncf %30 : vector<8x4x8xf32> to vector<8x4x8xbf16>
    %32 = vector.shape_cast %28 : vector<8x32xf32> to vector<8x4x8xf32>
    %33 = arith.truncf %32 : vector<8x4x8xf32> to vector<8x4x8xbf16>
    %34 = vector.shape_cast %29 : vector<8x32xf32> to vector<8x4x8xf32>
    %35 = arith.truncf %34 : vector<8x4x8xf32> to vector<8x4x8xbf16>
    "tpu.trace_start"() <{level = 10 : i32, message = "qhd,khd->hqk"}> : () -> ()
    %cst_14 = arith.constant dense<0.000000e+00> : vector<4x8x8xf32>
    %36 = tpu.matmul %31, %33, %cst_14 {dimension_numbers = #tpu.dot_dimension_numbers<[2], [2], [0], [0], [0, 1, 0, 0, 1, 0], [1], [1]>} : vector<8x4x8xbf16>, vector<8x4x8xbf16>, vector<4x8x8xf32> -> vector<4x8x8xf32>
    "tpu.trace_stop"() : () -> ()
    %37 = vector.shape_cast %26 : vector<8x8xf32> to vector<1x8x8xf32>
    %38 = vector.broadcast %37 : vector<1x8x8xf32> to vector<4x8x8xf32>
    %39 = arith.addf %36, %38 : vector<4x8x8xf32>
    %cst_15 = arith.constant dense<0xFF800000> : vector<4x8xf32>
    %40 = vector.multi_reduction <maximumf>, %39, %cst_15 [2] : vector<4x8x8xf32> to vector<4x8xf32>
    %41 = vector.shape_cast %40 : vector<4x8xf32> to vector<4x8x1xf32>
    %42 = vector.broadcast %41 : vector<4x8x1xf32> to vector<4x8x8xf32>
    %43 = arith.subf %39, %42 : vector<4x8x8xf32>
    %44 = math.exp %43 : vector<4x8x8xf32>
    %cst_16 = arith.constant dense<0.000000e+00> : vector<4x8xf32>
    %45 = vector.multi_reduction <add>, %44, %cst_16 [2] : vector<4x8x8xf32> to vector<4x8xf32>
    %46 = vector.shape_cast %45 : vector<4x8xf32> to vector<4x8x1xf32>
    %47 = tpu.reciprocal %46 {approx = true} : vector<4x8x1xf32> -> vector<4x8x1xf32>
    %48 = vector.broadcast %47 : vector<4x8x1xf32> to vector<4x8x8xf32>
    %49 = arith.mulf %44, %48 : vector<4x8x8xf32>
    %50 = arith.truncf %49 : vector<4x8x8xf32> to vector<4x8x8xbf16>
    "tpu.trace_start"() <{level = 10 : i32, message = "hqk,khd->qhd"}> : () -> ()
    %cst_17 = arith.constant dense<0.000000e+00> : vector<4x8x8xf32>
    %51 = tpu.matmul %35, %50, %cst_17 {dimension_numbers = #tpu.dot_dimension_numbers<[0], [2], [2], [1], [0, 1, 0, 2, 1, 1], [1], [0]>} : vector<8x4x8xbf16>, vector<4x8x8xbf16>, vector<4x8x8xf32> -> vector<4x8x8xf32>
    %52 = tpu.transpose %51, [2, 0, 1] : vector<4x8x8xf32> -> vector<8x4x8xf32>
    "tpu.trace_stop"() : () -> ()
    %53 = vector.shape_cast %52 : vector<8x4x8xf32> to vector<8x32xf32>
    %c1 = arith.constant 1 : index
    %c0_18 = arith.constant 0 : index
    %c0_19 = arith.constant 0 : index
    %54 = vector.load %arg4[%c1, %c0_18, %c0_19] : memref<2x8x8xbf16, #tpu.memory_space<vmem>>, vector<1x8x8xbf16>
    %55 = vector.shape_cast %54 : vector<1x8x8xbf16> to vector<8x8xbf16>
    %56 = arith.extf %55 : vector<8x8xbf16> to vector<8x8xf32>
    %57 = vector.extract_strided_slice %15 {offsets = [8, 0], sizes = [8, 32], strides = [1, 1]} : vector<16x32xf32> to vector<8x32xf32>
    %58 = vector.extract_strided_slice %19 {offsets = [8, 0], sizes = [8, 32], strides = [1, 1]} : vector<16x32xf32> to vector<8x32xf32>
    %59 = vector.extract_strided_slice %23 {offsets = [8, 0], sizes = [8, 32], strides = [1, 1]} : vector<16x32xf32> to vector<8x32xf32>
    %60 = vector.shape_cast %57 : vector<8x32xf32> to vector<8x4x8xf32>
    %61 = arith.truncf %60 : vector<8x4x8xf32> to vector<8x4x8xbf16>
    %62 = vector.shape_cast %58 : vector<8x32xf32> to vector<8x4x8xf32>
    %63 = arith.truncf %62 : vector<8x4x8xf32> to vector<8x4x8xbf16>
    %64 = vector.shape_cast %59 : vector<8x32xf32> to vector<8x4x8xf32>
    %65 = arith.truncf %64 : vector<8x4x8xf32> to vector<8x4x8xbf16>
    "tpu.trace_start"() <{level = 10 : i32, message = "qhd,khd->hqk"}> : () -> ()
    %cst_20 = arith.constant dense<0.000000e+00> : vector<4x8x8xf32>
    %66 = tpu.matmul %61, %63, %cst_20 {dimension_numbers = #tpu.dot_dimension_numbers<[2], [2], [0], [0], [0, 1, 0, 0, 1, 0], [1], [1]>} : vector<8x4x8xbf16>, vector<8x4x8xbf16>, vector<4x8x8xf32> -> vector<4x8x8xf32>
    "tpu.trace_stop"() : () -> ()
    %67 = vector.shape_cast %56 : vector<8x8xf32> to vector<1x8x8xf32>
    %68 = vector.broadcast %67 : vector<1x8x8xf32> to vector<4x8x8xf32>
    %69 = arith.addf %66, %68 : vector<4x8x8xf32>
    %cst_21 = arith.constant dense<0xFF800000> : vector<4x8xf32>
    %70 = vector.multi_reduction <maximumf>, %69, %cst_21 [2] : vector<4x8x8xf32> to vector<4x8xf32>
    %71 = vector.shape_cast %70 : vector<4x8xf32> to vector<4x8x1xf32>
    %72 = vector.broadcast %71 : vector<4x8x1xf32> to vector<4x8x8xf32>
    %73 = arith.subf %69, %72 : vector<4x8x8xf32>
    %74 = math.exp %73 : vector<4x8x8xf32>
    %cst_22 = arith.constant dense<0.000000e+00> : vector<4x8xf32>
    %75 = vector.multi_reduction <add>, %74, %cst_22 [2] : vector<4x8x8xf32> to vector<4x8xf32>
    %76 = vector.shape_cast %75 : vector<4x8xf32> to vector<4x8x1xf32>
    %77 = tpu.reciprocal %76 {approx = true} : vector<4x8x1xf32> -> vector<4x8x1xf32>
    %78 = vector.broadcast %77 : vector<4x8x1xf32> to vector<4x8x8xf32>
    %79 = arith.mulf %74, %78 : vector<4x8x8xf32>
    %80 = arith.truncf %79 : vector<4x8x8xf32> to vector<4x8x8xbf16>
    "tpu.trace_start"() <{level = 10 : i32, message = "hqk,khd->qhd"}> : () -> ()
    %cst_23 = arith.constant dense<0.000000e+00> : vector<4x8x8xf32>
    %81 = tpu.matmul %65, %80, %cst_23 {dimension_numbers = #tpu.dot_dimension_numbers<[0], [2], [2], [1], [0, 1, 0, 2, 1, 1], [1], [0]>} : vector<8x4x8xbf16>, vector<4x8x8xbf16>, vector<4x8x8xf32> -> vector<4x8x8xf32>
    %82 = tpu.transpose %81, [2, 0, 1] : vector<4x8x8xf32> -> vector<8x4x8xf32>
    "tpu.trace_stop"() : () -> ()
    %83 = vector.shape_cast %82 : vector<8x4x8xf32> to vector<8x32xf32>
    %84 = tpu.concatenate %53, %83 in 0 : vector<8x32xf32>, vector<8x32xf32> -> vector<16x32xf32>
    %85 = arith.truncf %84 : vector<16x32xf32> to vector<16x32xbf16>
    %c0_24 = arith.constant 0 : index
    %c0_25 = arith.constant 0 : index
    %c0_26 = arith.constant 0 : index
    %86 = vector.load %arg7[%c0_24, %c0_25, %c0_26] : memref<1x32x32xbf16, #tpu.memory_space<vmem>>, vector<1x32x32xbf16>
    %87 = vector.shape_cast %86 : vector<1x32x32xbf16> to vector<32x32xbf16>
    %cst_27 = arith.constant dense<0.000000e+00> : vector<16x32xf32>
    %88 = tpu.matmul %85, %87, %cst_27 {dimension_numbers = #tpu.dot_dimension_numbers<[1], [0], [0], [1], [0, 0, 1, 1], [], []>} : vector<16x32xbf16>, vector<32x32xbf16>, vector<16x32xf32> -> vector<16x32xf32>
    %89 = vector.extract_strided_slice %5 {offsets = [3, 0], sizes = [1, 32], strides = [1, 1]} : vector<15x32xf32> to vector<1x32xf32>
    %90 = vector.broadcast %89 : vector<1x32xf32> to vector<16x32xf32>
    %91 = arith.addf %88, %90 : vector<16x32xf32>
    %92 = arith.addf %91, %3 : vector<16x32xf32>
    %93 = vector.extract_strided_slice %5 {offsets = [9, 0], sizes = [1, 32], strides = [1, 1]} : vector<15x32xf32> to vector<1x32xf32>
    %94 = vector.extract_strided_slice %5 {offsets = [10, 0], sizes = [1, 32], strides = [1, 1]} : vector<15x32xf32> to vector<1x32xf32>
    %cst_28 = arith.constant dense<0.000000e+00> : vector<16xf32>
    %95 = vector.multi_reduction <add>, %92, %cst_28 [1] : vector<16x32xf32> to vector<16xf32>
    %96 = vector.shape_cast %95 : vector<16xf32> to vector<16x1xf32>
    %cst_29 = arith.constant 3.200000e+01 : f32
    %97 = vector.broadcast %cst_29 : f32 to vector<16x1xf32>
    %98 = arith.divf %96, %97 : vector<16x1xf32>
    %99 = vector.broadcast %98 : vector<16x1xf32> to vector<16x32xf32>
    %100 = arith.subf %92, %99 : vector<16x32xf32>
    %101 = arith.mulf %100, %100 : vector<16x32xf32>
    %cst_30 = arith.constant dense<0.000000e+00> : vector<16xf32>
    %102 = vector.multi_reduction <add>, %101, %cst_30 [1] : vector<16x32xf32> to vector<16xf32>
    %103 = vector.shape_cast %102 : vector<16xf32> to vector<16x1xf32>
    %cst_31 = arith.constant 3.200000e+01 : f32
    %104 = vector.broadcast %cst_31 : f32 to vector<16x1xf32>
    %105 = arith.divf %103, %104 : vector<16x1xf32>
    %106 = vector.broadcast %98 : vector<16x1xf32> to vector<16x32xf32>
    %107 = arith.subf %92, %106 : vector<16x32xf32>
    %cst_32 = arith.constant 9.99999974E-6 : f32
    %108 = vector.broadcast %cst_32 : f32 to vector<16x1xf32>
    %109 = arith.addf %105, %108 : vector<16x1xf32>
    %110 = math.rsqrt %109 : vector<16x1xf32>
    %111 = vector.broadcast %110 : vector<16x1xf32> to vector<16x32xf32>
    %112 = arith.mulf %107, %111 : vector<16x32xf32>
    %113 = vector.broadcast %93 : vector<1x32xf32> to vector<16x32xf32>
    %114 = arith.mulf %112, %113 : vector<16x32xf32>
    %115 = vector.broadcast %94 : vector<1x32xf32> to vector<16x32xf32>
    %116 = arith.addf %114, %115 : vector<16x32xf32>
    %117 = arith.truncf %116 : vector<16x32xf32> to vector<16x32xbf16>
    %c0_33 = arith.constant 0 : index
    %c0_34 = arith.constant 0 : index
    %c0_35 = arith.constant 0 : index
    %118 = vector.load %arg8[%c0_33, %c0_34, %c0_35] : memref<1x32x32xbf16, #tpu.memory_space<vmem>>, vector<1x32x32xbf16>
    %119 = vector.shape_cast %118 : vector<1x32x32xbf16> to vector<32x32xbf16>
    %cst_36 = arith.constant dense<0.000000e+00> : vector<16x32xf32>
    %120 = tpu.matmul %117, %119, %cst_36 {dimension_numbers = #tpu.dot_dimension_numbers<[1], [0], [0], [1], [0, 0, 1, 1], [], []>} : vector<16x32xbf16>, vector<32x32xbf16>, vector<16x32xf32> -> vector<16x32xf32>
    %121 = vector.extract_strided_slice %5 {offsets = [4, 0], sizes = [1, 32], strides = [1, 1]} : vector<15x32xf32> to vector<1x32xf32>
    %122 = vector.broadcast %121 : vector<1x32xf32> to vector<16x32xf32>
    %123 = arith.addf %120, %122 : vector<16x32xf32>
    %c0_37 = arith.constant 0 : index
    %c0_38 = arith.constant 0 : index
    %124 = vector.load %arg3[%c0_37, %c0_38] : memref<16x32xbf16, #tpu.memory_space<vmem>>, vector<16x32xbf16>
    %c0_39 = arith.constant 0 : index
    %c0_40 = arith.constant 0 : index
    %c0_41 = arith.constant 0 : index
    %125 = vector.load %arg9[%c0_39, %c0_40, %c0_41] : memref<1x32x64xbf16, #tpu.memory_space<vmem>>, vector<1x32x64xbf16>
    %126 = vector.shape_cast %125 : vector<1x32x64xbf16> to vector<32x64xbf16>
    %cst_42 = arith.constant dense<0.000000e+00> : vector<16x64xf32>
    %127 = tpu.matmul %124, %126, %cst_42 {dimension_numbers = #tpu.dot_dimension_numbers<[1], [0], [0], [1], [0, 0, 1, 1], [], []>} : vector<16x32xbf16>, vector<32x64xbf16>, vector<16x64xf32> -> vector<16x64xf32>
    %128 = vector.extract_strided_slice %127 {offsets = [0, 0], sizes = [16, 32], strides = [1, 1]} : vector<16x64xf32> to vector<16x32xf32>
    %129 = vector.extract_strided_slice %5 {offsets = [5, 0], sizes = [1, 32], strides = [1, 1]} : vector<15x32xf32> to vector<1x32xf32>
    %130 = vector.broadcast %129 : vector<1x32xf32> to vector<16x32xf32>
    %131 = arith.addf %128, %130 : vector<16x32xf32>
    %132 = vector.extract_strided_slice %127 {offsets = [0, 32], sizes = [16, 32], strides = [1, 1]} : vector<16x64xf32> to vector<16x32xf32>
    %133 = vector.extract_strided_slice %5 {offsets = [6, 0], sizes = [1, 32], strides = [1, 1]} : vector<15x32xf32> to vector<1x32xf32>
    %134 = vector.broadcast %133 : vector<1x32xf32> to vector<16x32xf32>
    %135 = arith.addf %132, %134 : vector<16x32xf32>
    %c0_43 = arith.constant 0 : index
    %c0_44 = arith.constant 0 : index
    %c0_45 = arith.constant 0 : index
    %136 = vector.load %arg5[%c0_43, %c0_44, %c0_45] : memref<2x8x8xbf16, #tpu.memory_space<vmem>>, vector<1x8x8xbf16>
    %137 = vector.shape_cast %136 : vector<1x8x8xbf16> to vector<8x8xbf16>
    %138 = arith.extf %137 : vector<8x8xbf16> to vector<8x8xf32>
    %139 = vector.extract_strided_slice %123 {offsets = [0, 0], sizes = [8, 32], strides = [1, 1]} : vector<16x32xf32> to vector<8x32xf32>
    %140 = vector.extract_strided_slice %131 {offsets = [0, 0], sizes = [8, 32], strides = [1, 1]} : vector<16x32xf32> to vector<8x32xf32>
    %141 = vector.extract_strided_slice %135 {offsets = [0, 0], sizes = [8, 32], strides = [1, 1]} : vector<16x32xf32> to vector<8x32xf32>
    %142 = vector.shape_cast %139 : vector<8x32xf32> to vector<8x4x8xf32>
    %143 = arith.truncf %142 : vector<8x4x8xf32> to vector<8x4x8xbf16>
    %144 = vector.shape_cast %140 : vector<8x32xf32> to vector<8x4x8xf32>
    %145 = arith.truncf %144 : vector<8x4x8xf32> to vector<8x4x8xbf16>
    %146 = vector.shape_cast %141 : vector<8x32xf32> to vector<8x4x8xf32>
    %147 = arith.truncf %146 : vector<8x4x8xf32> to vector<8x4x8xbf16>
    "tpu.trace_start"() <{level = 10 : i32, message = "qhd,khd->hqk"}> : () -> ()
    %cst_46 = arith.constant dense<0.000000e+00> : vector<4x8x8xf32>
    %148 = tpu.matmul %143, %145, %cst_46 {dimension_numbers = #tpu.dot_dimension_numbers<[2], [2], [0], [0], [0, 1, 0, 0, 1, 0], [1], [1]>} : vector<8x4x8xbf16>, vector<8x4x8xbf16>, vector<4x8x8xf32> -> vector<4x8x8xf32>
    "tpu.trace_stop"() : () -> ()
    %149 = vector.shape_cast %138 : vector<8x8xf32> to vector<1x8x8xf32>
    %150 = vector.broadcast %149 : vector<1x8x8xf32> to vector<4x8x8xf32>
    %151 = arith.addf %148, %150 : vector<4x8x8xf32>
    %cst_47 = arith.constant dense<0xFF800000> : vector<4x8xf32>
    %152 = vector.multi_reduction <maximumf>, %151, %cst_47 [2] : vector<4x8x8xf32> to vector<4x8xf32>
    %153 = vector.shape_cast %152 : vector<4x8xf32> to vector<4x8x1xf32>
    %154 = vector.broadcast %153 : vector<4x8x1xf32> to vector<4x8x8xf32>
    %155 = arith.subf %151, %154 : vector<4x8x8xf32>
    %156 = math.exp %155 : vector<4x8x8xf32>
    %cst_48 = arith.constant dense<0.000000e+00> : vector<4x8xf32>
    %157 = vector.multi_reduction <add>, %156, %cst_48 [2] : vector<4x8x8xf32> to vector<4x8xf32>
    %158 = vector.shape_cast %157 : vector<4x8xf32> to vector<4x8x1xf32>
    %159 = tpu.reciprocal %158 {approx = true} : vector<4x8x1xf32> -> vector<4x8x1xf32>
    %160 = vector.broadcast %159 : vector<4x8x1xf32> to vector<4x8x8xf32>
    %161 = arith.mulf %156, %160 : vector<4x8x8xf32>
    %162 = arith.truncf %161 : vector<4x8x8xf32> to vector<4x8x8xbf16>
    "tpu.trace_start"() <{level = 10 : i32, message = "hqk,khd->qhd"}> : () -> ()
    %cst_49 = arith.constant dense<0.000000e+00> : vector<4x8x8xf32>
    %163 = tpu.matmul %147, %162, %cst_49 {dimension_numbers = #tpu.dot_dimension_numbers<[0], [2], [2], [1], [0, 1, 0, 2, 1, 1], [1], [0]>} : vector<8x4x8xbf16>, vector<4x8x8xbf16>, vector<4x8x8xf32> -> vector<4x8x8xf32>
    %164 = tpu.transpose %163, [2, 0, 1] : vector<4x8x8xf32> -> vector<8x4x8xf32>
    "tpu.trace_stop"() : () -> ()
    %165 = vector.shape_cast %164 : vector<8x4x8xf32> to vector<8x32xf32>
    %c1_50 = arith.constant 1 : index
    %c0_51 = arith.constant 0 : index
    %c0_52 = arith.constant 0 : index
    %166 = vector.load %arg5[%c1_50, %c0_51, %c0_52] : memref<2x8x8xbf16, #tpu.memory_space<vmem>>, vector<1x8x8xbf16>
    %167 = vector.shape_cast %166 : vector<1x8x8xbf16> to vector<8x8xbf16>
    %168 = arith.extf %167 : vector<8x8xbf16> to vector<8x8xf32>
    %169 = vector.extract_strided_slice %123 {offsets = [8, 0], sizes = [8, 32], strides = [1, 1]} : vector<16x32xf32> to vector<8x32xf32>
    %170 = vector.extract_strided_slice %131 {offsets = [8, 0], sizes = [8, 32], strides = [1, 1]} : vector<16x32xf32> to vector<8x32xf32>
    %171 = vector.extract_strided_slice %135 {offsets = [8, 0], sizes = [8, 32], strides = [1, 1]} : vector<16x32xf32> to vector<8x32xf32>
    %172 = vector.shape_cast %169 : vector<8x32xf32> to vector<8x4x8xf32>
    %173 = arith.truncf %172 : vector<8x4x8xf32> to vector<8x4x8xbf16>
    %174 = vector.shape_cast %170 : vector<8x32xf32> to vector<8x4x8xf32>
    %175 = arith.truncf %174 : vector<8x4x8xf32> to vector<8x4x8xbf16>
    %176 = vector.shape_cast %171 : vector<8x32xf32> to vector<8x4x8xf32>
    %177 = arith.truncf %176 : vector<8x4x8xf32> to vector<8x4x8xbf16>
    "tpu.trace_start"() <{level = 10 : i32, message = "qhd,khd->hqk"}> : () -> ()
    %cst_53 = arith.constant dense<0.000000e+00> : vector<4x8x8xf32>
    %178 = tpu.matmul %173, %175, %cst_53 {dimension_numbers = #tpu.dot_dimension_numbers<[2], [2], [0], [0], [0, 1, 0, 0, 1, 0], [1], [1]>} : vector<8x4x8xbf16>, vector<8x4x8xbf16>, vector<4x8x8xf32> -> vector<4x8x8xf32>
    "tpu.trace_stop"() : () -> ()
    %179 = vector.shape_cast %168 : vector<8x8xf32> to vector<1x8x8xf32>
    %180 = vector.broadcast %179 : vector<1x8x8xf32> to vector<4x8x8xf32>
    %181 = arith.addf %178, %180 : vector<4x8x8xf32>
    %cst_54 = arith.constant dense<0xFF800000> : vector<4x8xf32>
    %182 = vector.multi_reduction <maximumf>, %181, %cst_54 [2] : vector<4x8x8xf32> to vector<4x8xf32>
    %183 = vector.shape_cast %182 : vector<4x8xf32> to vector<4x8x1xf32>
    %184 = vector.broadcast %183 : vector<4x8x1xf32> to vector<4x8x8xf32>
    %185 = arith.subf %181, %184 : vector<4x8x8xf32>
    %186 = math.exp %185 : vector<4x8x8xf32>
    %cst_55 = arith.constant dense<0.000000e+00> : vector<4x8xf32>
    %187 = vector.multi_reduction <add>, %186, %cst_55 [2] : vector<4x8x8xf32> to vector<4x8xf32>
    %188 = vector.shape_cast %187 : vector<4x8xf32> to vector<4x8x1xf32>
    %189 = tpu.reciprocal %188 {approx = true} : vector<4x8x1xf32> -> vector<4x8x1xf32>
    %190 = vector.broadcast %189 : vector<4x8x1xf32> to vector<4x8x8xf32>
    %191 = arith.mulf %186, %190 : vector<4x8x8xf32>
    %192 = arith.truncf %191 : vector<4x8x8xf32> to vector<4x8x8xbf16>
    "tpu.trace_start"() <{level = 10 : i32, message = "hqk,khd->qhd"}> : () -> ()
    %cst_56 = arith.constant dense<0.000000e+00> : vector<4x8x8xf32>
    %193 = tpu.matmul %177, %192, %cst_56 {dimension_numbers = #tpu.dot_dimension_numbers<[0], [2], [2], [1], [0, 1, 0, 2, 1, 1], [1], [0]>} : vector<8x4x8xbf16>, vector<4x8x8xbf16>, vector<4x8x8xf32> -> vector<4x8x8xf32>
    %194 = tpu.transpose %193, [2, 0, 1] : vector<4x8x8xf32> -> vector<8x4x8xf32>
    "tpu.trace_stop"() : () -> ()
    %195 = vector.shape_cast %194 : vector<8x4x8xf32> to vector<8x32xf32>
    %196 = tpu.concatenate %165, %195 in 0 : vector<8x32xf32>, vector<8x32xf32> -> vector<16x32xf32>
    %197 = arith.truncf %196 : vector<16x32xf32> to vector<16x32xbf16>
    %c0_57 = arith.constant 0 : index
    %c0_58 = arith.constant 0 : index
    %c0_59 = arith.constant 0 : index
    %198 = vector.load %arg10[%c0_57, %c0_58, %c0_59] : memref<1x32x32xbf16, #tpu.memory_space<vmem>>, vector<1x32x32xbf16>
    %199 = vector.shape_cast %198 : vector<1x32x32xbf16> to vector<32x32xbf16>
    %cst_60 = arith.constant dense<0.000000e+00> : vector<16x32xf32>
    %200 = tpu.matmul %197, %199, %cst_60 {dimension_numbers = #tpu.dot_dimension_numbers<[1], [0], [0], [1], [0, 0, 1, 1], [], []>} : vector<16x32xbf16>, vector<32x32xbf16>, vector<16x32xf32> -> vector<16x32xf32>
    %201 = vector.extract_strided_slice %5 {offsets = [7, 0], sizes = [1, 32], strides = [1, 1]} : vector<15x32xf32> to vector<1x32xf32>
    %202 = vector.broadcast %201 : vector<1x32xf32> to vector<16x32xf32>
    %203 = arith.addf %200, %202 : vector<16x32xf32>
    %204 = arith.addf %203, %116 : vector<16x32xf32>
    %205 = vector.extract_strided_slice %5 {offsets = [11, 0], sizes = [1, 32], strides = [1, 1]} : vector<15x32xf32> to vector<1x32xf32>
    %206 = vector.extract_strided_slice %5 {offsets = [12, 0], sizes = [1, 32], strides = [1, 1]} : vector<15x32xf32> to vector<1x32xf32>
    %cst_61 = arith.constant dense<0.000000e+00> : vector<16xf32>
    %207 = vector.multi_reduction <add>, %204, %cst_61 [1] : vector<16x32xf32> to vector<16xf32>
    %208 = vector.shape_cast %207 : vector<16xf32> to vector<16x1xf32>
    %cst_62 = arith.constant 3.200000e+01 : f32
    %209 = vector.broadcast %cst_62 : f32 to vector<16x1xf32>
    %210 = arith.divf %208, %209 : vector<16x1xf32>
    %211 = vector.broadcast %210 : vector<16x1xf32> to vector<16x32xf32>
    %212 = arith.subf %204, %211 : vector<16x32xf32>
    %213 = arith.mulf %212, %212 : vector<16x32xf32>
    %cst_63 = arith.constant dense<0.000000e+00> : vector<16xf32>
    %214 = vector.multi_reduction <add>, %213, %cst_63 [1] : vector<16x32xf32> to vector<16xf32>
    %215 = vector.shape_cast %214 : vector<16xf32> to vector<16x1xf32>
    %cst_64 = arith.constant 3.200000e+01 : f32
    %216 = vector.broadcast %cst_64 : f32 to vector<16x1xf32>
    %217 = arith.divf %215, %216 : vector<16x1xf32>
    %218 = vector.broadcast %210 : vector<16x1xf32> to vector<16x32xf32>
    %219 = arith.subf %204, %218 : vector<16x32xf32>
    %cst_65 = arith.constant 9.99999974E-6 : f32
    %220 = vector.broadcast %cst_65 : f32 to vector<16x1xf32>
    %221 = arith.addf %217, %220 : vector<16x1xf32>
    %222 = math.rsqrt %221 : vector<16x1xf32>
    %223 = vector.broadcast %222 : vector<16x1xf32> to vector<16x32xf32>
    %224 = arith.mulf %219, %223 : vector<16x32xf32>
    %225 = vector.broadcast %205 : vector<1x32xf32> to vector<16x32xf32>
    %226 = arith.mulf %224, %225 : vector<16x32xf32>
    %227 = vector.broadcast %206 : vector<1x32xf32> to vector<16x32xf32>
    %228 = arith.addf %226, %227 : vector<16x32xf32>
    %229 = arith.truncf %228 : vector<16x32xf32> to vector<16x32xbf16>
    %c0_66 = arith.constant 0 : index
    %c0_67 = arith.constant 0 : index
    %c0_68 = arith.constant 0 : index
    %230 = vector.load %arg11[%c0_66, %c0_67, %c0_68] : memref<1x32x64xbf16, #tpu.memory_space<vmem>>, vector<1x32x64xbf16>
    %231 = vector.shape_cast %230 : vector<1x32x64xbf16> to vector<32x64xbf16>
    %cst_69 = arith.constant dense<0.000000e+00> : vector<16x64xf32>
    %232 = tpu.matmul %229, %231, %cst_69 {dimension_numbers = #tpu.dot_dimension_numbers<[1], [0], [0], [1], [0, 0, 1, 1], [], []>} : vector<16x32xbf16>, vector<32x64xbf16>, vector<16x64xf32> -> vector<16x64xf32>
    %233 = vector.broadcast %7 : vector<1x64xf32> to vector<16x64xf32>
    %234 = arith.addf %232, %233 : vector<16x64xf32>
    %cst_70 = arith.constant 0.000000e+00 : f32
    %235 = vector.broadcast %cst_70 : f32 to vector<16x64xf32>
    %236 = arith.maximumf %234, %235 : vector<16x64xf32>
    %237 = arith.truncf %236 : vector<16x64xf32> to vector<16x64xbf16>
    %c0_71 = arith.constant 0 : index
    %c0_72 = arith.constant 0 : index
    %c0_73 = arith.constant 0 : index
    %238 = vector.load %arg12[%c0_71, %c0_72, %c0_73] : memref<1x64x32xbf16, #tpu.memory_space<vmem>>, vector<1x64x32xbf16>
    %239 = vector.shape_cast %238 : vector<1x64x32xbf16> to vector<64x32xbf16>
    %cst_74 = arith.constant dense<0.000000e+00> : vector<16x32xf32>
    %240 = tpu.matmul %237, %239, %cst_74 {dimension_numbers = #tpu.dot_dimension_numbers<[1], [0], [0], [1], [0, 0, 1, 1], [], []>} : vector<16x64xbf16>, vector<64x32xbf16>, vector<16x32xf32> -> vector<16x32xf32>
    %241 = vector.extract_strided_slice %5 {offsets = [8, 0], sizes = [1, 32], strides = [1, 1]} : vector<15x32xf32> to vector<1x32xf32>
    %242 = vector.broadcast %241 : vector<1x32xf32> to vector<16x32xf32>
    %243 = arith.addf %240, %242 : vector<16x32xf32>
    %244 = arith.addf %243, %228 : vector<16x32xf32>
    %245 = vector.extract_strided_slice %5 {offsets = [13, 0], sizes = [1, 32], strides = [1, 1]} : vector<15x32xf32> to vector<1x32xf32>
    %246 = vector.extract_strided_slice %5 {offsets = [14, 0], sizes = [1, 32], strides = [1, 1]} : vector<15x32xf32> to vector<1x32xf32>
    %cst_75 = arith.constant dense<0.000000e+00> : vector<16xf32>
    %247 = vector.multi_reduction <add>, %244, %cst_75 [1] : vector<16x32xf32> to vector<16xf32>
    %248 = vector.shape_cast %247 : vector<16xf32> to vector<16x1xf32>
    %cst_76 = arith.constant 3.200000e+01 : f32
    %249 = vector.broadcast %cst_76 : f32 to vector<16x1xf32>
    %250 = arith.divf %248, %249 : vector<16x1xf32>
    %251 = vector.broadcast %250 : vector<16x1xf32> to vector<16x32xf32>
    %252 = arith.subf %244, %251 : vector<16x32xf32>
    %253 = arith.mulf %252, %252 : vector<16x32xf32>
    %cst_77 = arith.constant dense<0.000000e+00> : vector<16xf32>
    %254 = vector.multi_reduction <add>, %253, %cst_77 [1] : vector<16x32xf32> to vector<16xf32>
    %255 = vector.shape_cast %254 : vector<16xf32> to vector<16x1xf32>
    %cst_78 = arith.constant 3.200000e+01 : f32
    %256 = vector.broadcast %cst_78 : f32 to vector<16x1xf32>
    %257 = arith.divf %255, %256 : vector<16x1xf32>
    %258 = vector.broadcast %250 : vector<16x1xf32> to vector<16x32xf32>
    %259 = arith.subf %244, %258 : vector<16x32xf32>
    %cst_79 = arith.constant 9.99999974E-6 : f32
    %260 = vector.broadcast %cst_79 : f32 to vector<16x1xf32>
    %261 = arith.addf %257, %260 : vector<16x1xf32>
    %262 = math.rsqrt %261 : vector<16x1xf32>
    %263 = vector.broadcast %262 : vector<16x1xf32> to vector<16x32xf32>
    %264 = arith.mulf %259, %263 : vector<16x32xf32>
    %265 = vector.broadcast %245 : vector<1x32xf32> to vector<16x32xf32>
    %266 = arith.mulf %264, %265 : vector<16x32xf32>
    %267 = vector.broadcast %246 : vector<1x32xf32> to vector<16x32xf32>
    %268 = arith.addf %266, %267 : vector<16x32xf32>
    %c0_80 = arith.constant 0 : index
    %c0_81 = arith.constant 0 : index
    %269 = vector.load %arg18[%c0_80, %c0_81] : memref<16x32xf32, #tpu.memory_space<vmem>>, vector<16x32xf32>
    tpu.vector_store %arg18[%c0_80, %c0_81], %268 {strides = array<i32>} : memref<16x32xf32, #tpu.memory_space<vmem>>, vector<16x32xf32>,
    %c1_i32 = arith.constant 1 : i32
    %270 = arith.cmpi eq, %arg1, %c1_i32 : i32
    %271 = arith.extui %270 : i1 to i32
    %c0_i32_82 = arith.constant 0 : i32
    %272 = arith.cmpi ne, %271, %c0_i32_82 : i32
    scf.if %272 {
      %c0_83 = arith.constant 0 : index
      %c0_84 = arith.constant 0 : index
      %273 = vector.load %arg15[%c0_83, %c0_84] : memref<1x32xf32, #tpu.memory_space<vmem>>, vector<1x32xf32>
      %c0_85 = arith.constant 0 : index
      %c0_86 = arith.constant 0 : index
      %274 = vector.load %arg16[%c0_85, %c0_86] : memref<1x32xf32, #tpu.memory_space<vmem>>, vector<1x32xf32>
      %cst_87 = arith.constant dense<0.000000e+00> : vector<16xf32>
      %275 = vector.multi_reduction <add>, %268, %cst_87 [1] : vector<16x32xf32> to vector<16xf32>
      %276 = vector.shape_cast %275 : vector<16xf32> to vector<16x1xf32>
      %cst_88 = arith.constant 3.200000e+01 : f32
      %277 = vector.broadcast %cst_88 : f32 to vector<16x1xf32>
      %278 = arith.divf %276, %277 : vector<16x1xf32>
      %279 = vector.broadcast %278 : vector<16x1xf32> to vector<16x32xf32>
      %280 = arith.subf %268, %279 : vector<16x32xf32>
      %281 = arith.mulf %280, %280 : vector<16x32xf32>
      %cst_89 = arith.constant dense<0.000000e+00> : vector<16xf32>
      %282 = vector.multi_reduction <add>, %281, %cst_89 [1] : vector<16x32xf32> to vector<16xf32>
      %283 = vector.shape_cast %282 : vector<16xf32> to vector<16x1xf32>
      %cst_90 = arith.constant 3.200000e+01 : f32
      %284 = vector.broadcast %cst_90 : f32 to vector<16x1xf32>
      %285 = arith.divf %283, %284 : vector<16x1xf32>
      %286 = vector.broadcast %278 : vector<16x1xf32> to vector<16x32xf32>
      %287 = arith.subf %268, %286 : vector<16x32xf32>
      %cst_91 = arith.constant 9.99999974E-6 : f32
      %288 = vector.broadcast %cst_91 : f32 to vector<16x1xf32>
      %289 = arith.addf %285, %288 : vector<16x1xf32>
      %290 = math.rsqrt %289 : vector<16x1xf32>
      %291 = vector.broadcast %290 : vector<16x1xf32> to vector<16x32xf32>
      %292 = arith.mulf %287, %291 : vector<16x32xf32>
      %293 = vector.broadcast %273 : vector<1x32xf32> to vector<16x32xf32>
      %294 = arith.mulf %292, %293 : vector<16x32xf32>
      %295 = vector.broadcast %274 : vector<1x32xf32> to vector<16x32xf32>
      %296 = arith.addf %294, %295 : vector<16x32xf32>
      %c0_92 = arith.constant 0 : index
      %c0_93 = arith.constant 0 : index
      %297 = vector.load %arg17[%c0_92, %c0_93] : memref<16x32xf32, #tpu.memory_space<vmem>>, vector<16x32xf32>
      tpu.vector_store %arg17[%c0_92, %c0_93], %296 {strides = array<i32>} : memref<16x32xf32, #tpu.memory_space<vmem>>, vector<16x32xf32>,
    } else {
    }
    return
  }
  func.func @transform_0(%arg0: i32, %arg1: i32) -> (i32, i32) {
    %c0_i32 = arith.constant 0 : i32
    %c0_i32_0 = arith.constant 0 : i32
    return %arg0, %c0_i32 : i32, i32
  }
  func.func @transform_1(%arg0: i32, %arg1: i32) -> (i32, i32) {
    %c0_i32 = arith.constant 0 : i32
    %c0_i32_0 = arith.constant 0 : i32
    return %arg0, %c0_i32 : i32, i32
  }
  func.func @transform_2(%arg0: i32, %arg1: i32) -> (i32, i32, i32) {
    %c0_i32 = arith.constant 0 : i32
    %c0_i32_0 = arith.constant 0 : i32
    %c0_i32_1 = arith.constant 0 : i32
    return %arg0, %c0_i32, %c0_i32_0 : i32, i32, i32
  }
  func.func @transform_3(%arg0: i32, %arg1: i32) -> (i32, i32, i32) {
    %c0_i32 = arith.constant 0 : i32
    %c0_i32_0 = arith.constant 0 : i32
    %c0_i32_1 = arith.constant 0 : i32
    return %arg0, %c0_i32, %c0_i32_0 : i32, i32, i32
  }
  func.func @transform_4(%arg0: i32, %arg1: i32) -> (i32, i32, i32) {
    %c0_i32 = arith.constant 0 : i32
    %c0_i32_0 = arith.constant 0 : i32
    %c0_i32_1 = arith.constant 0 : i32
    return %arg1, %c0_i32, %c0_i32_0 : i32, i32, i32
  }
  func.func @transform_5(%arg0: i32, %arg1: i32) -> (i32, i32, i32) {
    %c0_i32 = arith.constant 0 : i32
    %c0_i32_0 = arith.constant 0 : i32
    %c0_i32_1 = arith.constant 0 : i32
    return %arg1, %c0_i32, %c0_i32_0 : i32, i32, i32
  }
  func.func @transform_6(%arg0: i32, %arg1: i32) -> (i32, i32, i32) {
    %c0_i32 = arith.constant 0 : i32
    %c0_i32_0 = arith.constant 0 : i32
    %c0_i32_1 = arith.constant 0 : i32
    return %arg1, %c0_i32, %c0_i32_0 : i32, i32, i32
  }
  func.func @transform_7(%arg0: i32, %arg1: i32) -> (i32, i32, i32) {
    %c0_i32 = arith.constant 0 : i32
    %c0_i32_0 = arith.constant 0 : i32
    %c0_i32_1 = arith.constant 0 : i32
    return %arg1, %c0_i32, %c0_i32_0 : i32, i32, i32
  }
  func.func @transform_8(%arg0: i32, %arg1: i32) -> (i32, i32, i32) {
    %c0_i32 = arith.constant 0 : i32
    %c0_i32_0 = arith.constant 0 : i32
    %c0_i32_1 = arith.constant 0 : i32
    return %arg1, %c0_i32, %c0_i32_0 : i32, i32, i32
  }
  func.func @transform_9(%arg0: i32, %arg1: i32) -> (i32, i32, i32) {
    %c0_i32 = arith.constant 0 : i32
    %c0_i32_0 = arith.constant 0 : i32
    %c0_i32_1 = arith.constant 0 : i32
    return %arg1, %c0_i32, %c0_i32_0 : i32, i32, i32
  }
  func.func @transform_10(%arg0: i32, %arg1: i32) -> (i32, i32, i32) {
    %c0_i32 = arith.constant 0 : i32
    %c0_i32_0 = arith.constant 0 : i32
    %c0_i32_1 = arith.constant 0 : i32
    return %arg1, %c0_i32, %c0_i32_0 : i32, i32, i32
  }
  func.func @transform_11(%arg0: i32, %arg1: i32) -> (i32, i32, i32) {
    %c0_i32 = arith.constant 0 : i32
    %c0_i32_0 = arith.constant 0 : i32
    %c0_i32_1 = arith.constant 0 : i32
    return %arg1, %c0_i32, %c0_i32_0 : i32, i32, i32
  }
  func.func @transform_12(%arg0: i32, %arg1: i32) -> (i32, i32, i32) {
    %c0_i32 = arith.constant 0 : i32
    %c0_i32_0 = arith.constant 0 : i32
    %c0_i32_1 = arith.constant 0 : i32
    return %arg1, %c0_i32, %c0_i32_0 : i32, i32, i32
  }
  func.func @transform_13(%arg0: i32, %arg1: i32) -> (i32, i32) {
    %c0_i32 = arith.constant 0 : i32
    %c0_i32_0 = arith.constant 0 : i32
    %c0_i32_1 = arith.constant 0 : i32
    return %c0_i32, %c0_i32_0 : i32, i32
  }
  func.func @transform_14(%arg0: i32, %arg1: i32) -> (i32, i32) {
    %c0_i32 = arith.constant 0 : i32
    %c0_i32_0 = arith.constant 0 : i32
    %c0_i32_1 = arith.constant 0 : i32
    return %c0_i32, %c0_i32_0 : i32, i32
  }
  func.func @transform_15(%arg0: i32, %arg1: i32) -> (i32, i32) {
    %c0_i32 = arith.constant 0 : i32
    %c0_i32_0 = arith.constant 0 : i32
    return %arg0, %c0_i32 : i32, i32
  }
}

</mosaic_0001>

<bundles_post_ra>
// kernel: tpu_custom_call.1
= control target key start
LH: loop header
LB: loop body
LE: loop exit
PB: predicated region body
PF: predicated region fallthrough
CT: control target
= control target key end

     0   :  { %s13039_s0 = inlined_call_operand.hbm [shape: f32[32,32], index: 0, kind: input, shape index: {}]   ;;  %s13040_s1 = inlined_call_operand.hbm [shape: bf16[32,32], index: 1, kind: input, shape index: {}]   ;;  %s13041_s2 = inlined_call_operand.hbm [shape: bf16[4,8,8], index: 2, kind: input, shape index: {}]   ;;  %s13042_s3 = inlined_call_operand.hbm [shape: bf16[4,8,8], index: 3, kind: input, shape index: {}]   ;;  %s13043_s4 = inlined_call_operand.hbm [shape: bf16[2,32,96], index: 4, kind: input, shape index: {}]   ;;  %s13044_s5 = inlined_call_operand.hbm [shape: bf16[2,32,32], index: 5, kind: input, shape index: {}]   ;;  %s13045_s6 = inlined_call_operand.hbm [shape: bf16[2,32,32], index: 6, kind: input, shape index: {}]   ;;  %s13046_s7 = inlined_call_operand.hbm [shape: bf16[2,32,64], index: 7, kind: input, shape index: {}]   ;;  %s13047_s8 = inlined_call_operand.hbm [shape: bf16[2,32,32], index: 8, kind: input, shape index: {}]   ;;  %s13048_s9 = inlined_call_operand.hbm [shape: bf16[2,32,64], index: 9, kind: input, shape index: {}]   ;;  %s13049_s10 = inlined_call_operand.hbm [shape: bf16[2,64,32], index: 10, kind: input, shape index: {}]   ;;  %s13050_s11 = inlined_call_operand.hbm [shape: f32[2,15,32], index: 11, kind: input, shape index: {}]   ;;  %s13051_s12 = inlined_call_operand.hbm [shape: f32[2,1,64], index: 12, kind: input, shape index: {}]   ;;  %s13052_s13 = inlined_call_operand.hbm [shape: f32[1,32], index: 13, kind: input, shape index: {}]   ;;  %s13053_s14 = inlined_call_operand.hbm [shape: f32[1,32], index: 14, kind: input, shape index: {}]   ;;  %s13054_s15 = inlined_call_operand.hbm [shape: f32[32,32], index: 15, kind: output, shape index: {}]  }
   0x1   :  { %13098 = sst [smem:[#allocation54_spill]] %s13039_s0 }
   0x2   :  { %13099 = sst [smem:[#allocation55_spill]] %s13040_s1 }
   0x3   :  { %13100 = sst [smem:[#allocation56_spill]] %s13041_s2 }
   0x4   :  { %13101 = sst [smem:[#allocation57_spill]] %s13042_s3 }
   0x5   :  { %13102 = sst [smem:[#allocation58_spill]] %s13043_s4 }
   0x6   :  { %13103 = sst [smem:[#allocation59_spill]] %s13044_s5 }
   0x7   :  { %13104 = sst [smem:[#allocation60_spill]] %s13045_s6 }
   0x8   :  { %13105 = sst [smem:[#allocation61_spill]] %s13046_s7 }
   0x9   :  { %13106 = sst [smem:[#allocation62_spill]] %s13047_s8 }
   0xa   :  { %13107 = sst [smem:[#allocation63_spill]] %s13048_s9 }
   0xb   :  { %13108 = sst [smem:[#allocation64_spill]] %s13049_s10 }
   0xc   :  { %13109 = sst [smem:[#allocation65_spill]] %s13050_s11 }
   0xd   :  { %13110 = sst [smem:[#allocation66_spill]] %s13051_s12 }
   0xe   :  { %13111 = sst [smem:[#allocation67_spill]] %s13052_s13 }
   0xf   :  { %13112 = sst [smem:[#allocation68_spill]] %s13053_s14 }
  0x10   :  { %13113 = sst [smem:[#allocation69_spill]] %s13054_s15 }
  0x11   :  { %20 = vsyncpa [#allocation4], 0 }
  0x12   :  { %22 = vsyncpa [#allocation4 + $0x1], 0 }
  0x13   :  { %23 = vsyncpa [#allocation7], 0 }
  0x14   :  { %25 = vsyncpa [#allocation7 + $0x1], 0 }
  0x15   :  { %26 = vsyncpa [#allocation10], 0 }
  0x16   :  { %28 = vsyncpa [#allocation10 + $0x1], 0 }
  0x17   :  { %29 = vsyncpa [#allocation13], 0 }
  0x18   :  { %31 = vsyncpa [#allocation13 + $0x1], 0 }
  0x19   :  { %32 = vsyncpa [#allocation16], 0 }
  0x1a   :  { %34 = vsyncpa [#allocation16 + $0x1], 0 }
  0x1b   :  { %35 = vsyncpa [#allocation19], 0 }
  0x1c   :  { %37 = vsyncpa [#allocation19 + $0x1], 0 }
  0x1d   :  { %38 = vsyncpa [#allocation22], 0 }
  0x1e   :  { %40 = vsyncpa [#allocation22 + $0x1], 0 }
  0x1f   :  { %41 = vsyncpa [#allocation25], 0 }
  0x20   :  { %42 = vsyncpa [#allocation5], 0 }
  0x21   :  { %44 = vsyncpa [#allocation5 + $0x1], 0  ;;  %s11047_s18 = smov 0   ;;  %s11049_s19 = smov 0  }
  0x22   :  { %s11051_s20 = smov 0   ;;  %s11053_s21 = smov 0  }
  0x23   :  { %s11055_s22 = smov 0   ;;  %s11057_s23 = smov 0  }
  0x24   :  { %s11059_s24 = smov 0   ;;  %s11061_s25 = smov 0  }
  0x25   :  { %s11063_s26 = smov 0   ;;  %s11065_s27 = smov 0  }
  0x26   :  { %s11067_s28 = smov 0  }
  0x27 LB: > { %13114 = sst [smem:[#allocation38_spill]] %s10894_s19  ;;  %s11103_s29 = sadd.s32 4294967295, %s10930_s28   ;;  %s10930_s28 = sphi %s11067_s28, %s50_s28   ;;  %s10926_s27 = sphi %s11065_s27, %s13203_s27   ;;  %s10922_s26 = sphi %s11063_s26, %s13202_s26   ;;  %s10918_s25 = sphi %s11061_s25, %s13201_s25   ;;  %s10914_s24 = sphi %s11059_s24, %s13200_s24   ;;  %s10910_s23 = sphi %s11057_s23, %s13195_s23   ;;  %s10906_s22 = sphi %s11055_s22, %s13199_s22   ;;  %s10902_s21 = sphi %s11053_s21, %s13198_s21   ;;  %s10898_s20 = sphi %s11051_s20, %s13193_s20   ;;  %s10894_s19 = sphi %s11049_s19, %s13192_s19   ;;  %s10890_s18 = sphi %s11047_s18, %s13191_s18  }
  0x28   : > { %13115 = sst [smem:[#allocation39_spill]] %s10898_s20  ;;  %s9561_s30 = sadd.s32 4294967294, %s10930_s28  }
  0x29   : > { %13116 = sst [smem:[#allocation40_spill]] %s10902_s21  ;;  %s59_s16 = sadd.s32 1, %s10922_s26 }
  0x2a   : > { %13117 = sst [smem:[#allocation41_spill]] %s10910_s23  ;;  %s62_s17 = sadd.s32 1, %s10926_s27 }
  0x2b   : > { %13118 = sst [smem:[#allocation42_spill]] %s10914_s24  ;;  %p60_p0 = scmp.ge.s32.totalorder %s59_s16, 2 }
  0x2c   : > { %13119 = sst [smem:[#allocation43_spill]] %s10918_s25  ;;  %s69_s15 = sadd.s32 1, %s10910_s23 }
  0x2d   : > { %13120 = sst [smem:[#allocation44_spill]] %s10930_s28  ;;  %p13064_p1 = scmp.ne.s32.totalorder %s10910_s23, %s10906_s22 }
  0x2e   : > { %13121 = sst [smem:[#allocation45_spill]] %s11103_s29  ;;  %p77_p2 = scmp.eq.s32.totalorder %s10930_s28, 0 }
  0x2f   : > { %s13205_s16 = smov (%p60_p0, %s59_s16), 0  ;;  %s13207_s17 = smov (!%p60_p0, %s62_s17), %s10926_s27 }
  0x30   : > { %13122 = sst [smem:[#allocation46_spill]] %s13205_s16  ;;  %p11120_p3 = por %p77_p2, %p13064_p1 }
  0x31   : > { %p13063_p4 = scmp.ne.s32.totalorder %s10906_s22, %s10902_s21  ;;  %p64_p5 = scmp.ge.s32.totalorder %s13207_s17, 2 }
  0x32   : > { %s13123_s25 = scalar_select %p11120_p3, 1, 0 }
  0x33   : > { %p13075_p6 = scmp.eq.s32.totalorder %s11103_s29, 0  ;;  %s170_s24 = ssub.s32 %s10922_s26, %s13205_s16 }
  0x34   : > { %s173_s12 = sadd.s32 1, %s10898_s20  ;;  %s13209_s17 = smov (%p64_p5, %s13207_s17), 0 }
  0x35   : > { %13124 = sst [smem:[#allocation47_spill]] %s13209_s17  ;;  %p11137_p7 = por %p13075_p6, %p13063_p4 }
  0x36   : > { %p171_p8 = scmp.eq.s32.totalorder %s170_s24, 0  ;;  %s66_s8 = ssub.s32 %s10926_s27, %s13209_s17 }
  0x37   : > { %s13125_s10 = scalar_select %p11137_p7, 1, 0 }
  0x38   : > { %p180_p9 = scmp.ne.s32.totalorder %s10898_s20, %s10894_s19  ;;  %p67_p10 = scmp.eq.s32.totalorder %s66_s8, 0 }
  0x39   : > { %13126 = sst [smem:[#allocation48_spill]] %s13125_s10  ;;  %p186_p11 = scmp.ne.s32.totalorder %s10894_s19, %s10890_s18 }
  0x3a   : > { %s11148_s16 = scalar_select %p171_p8, %s10898_s20, %s173_s12  }
  0x3b   : > { %s11151_s6 = scalar_select %p67_p10, %s10910_s23, %s69_s15  }
  0x3c   : > { %13127 = sst [smem:[#allocation49_spill]] %s11148_s16  ;;  %p11155_p12 = por %p180_p9, %p77_p2 }
  0x3d   : > { %13128 = sst [smem:[#allocation50_spill]] %s11151_s6  ;;  %p11161_p13 = por %p186_p11, %p13075_p6 }
  0x3e   : > { %s13129_s4 = scalar_select %p11155_p12, 1, 0 }
  0x3f   : > { %s13130_s2 = scalar_select %p11161_p13, 1, 0 }
  0x40   : > { %p460_p0 = scmp.eq.s32.totalorder %s11103_s29, 3  ;;  %p466_p5 = scmp.eq.s32.totalorder %s9561_s30, 3 }
  0x41   : > { %13131 = sst [smem:[#allocation51_spill]] %s13130_s2  ;;  %p9562_p4 = scmp.ge.s32.totalorder %s10930_s28, 1 }
  0x42   : > { %p473_p1 = scmp.lt.s32.totalorder %s10930_s28, 5  ;;  %p13132_p7 = scmp.ne.s32.totalorder %s10910_s23, %s10906_s22 }
  0x43   : > { %p13135_p10 = scmp.ne.s32.totalorder %s10906_s22, %s10902_s21  ;;  %s10932_s18 = smov [#allocation24]  }
  0x44   : > { %p11171_p8 = por %p460_p0, %p13132_p7  ;;  %p11182_p2 = pnand %p9562_p4, %p473_p1 }
  0x45   : > { %p11178_p3 = por %p466_p5, %p13135_p10  ;;  %s486_s24 = sshll.u32 %s10932_s18, 4  ;;  %s487_s24 = int_to_ptr.vmem [resolvable:$true] %s486_s24 }
  0x46   : > { %s13133_s8 = scalar_select %p11171_p8, 1, 0 }
  0x47   : > { %s13136_s12 = scalar_select %p11178_p3, 1, 0 }
  0x48   : > { %13134 = sst [smem:[#allocation52_spill]] %s13133_s8  ;;  %p10099_p9 = pneg %p11182_p2 }
  0x49   : > { %13137 = sst [smem:[#allocation53_spill]] %s13136_s12  ;;  %s10933_s30 = smov [#allocation26]  }
  0x4a   : > { %s13138_s15 = scalar_select %p11182_p2, 1, 0 }
  0x4b   : > { %s497_s17 = sshll.u32 %s10933_s30, 4  ;;  %p11190_p7 = pnand %p10099_p9, %p13075_p6  ;;  %s11194_s17 = int_to_ptr.vmem [resolvable:$true] %s497_s17 }
  0x4c   : > { %s13140_s13 = sld [smem:[#allocation67_spill]] }
  0x4d   : > { %p10358_p4 = pneg %p11190_p7 }
  0x52   : > { %s10356_s21 = scalar_lea.hbm %s13140_s13, 16 }
  0x53   : > { %p10357_p1 = scmp.ne.s32.totalorder %s13140_s13, %s10356_s21  ;;  %p10363_p5 = scmp.lt.u32.totalorder %s10356_s21, %s13140_s13 }
  0x55   : > { %p10359_p11 = pnand %p10358_p4, %p10357_p1 }
  0x57   : > { %p10360_p0 = pneg %p10359_p11 }
  0x59   : > { %p10365_p10 = pnand %p10363_p5, %p10360_p0 }
  0x5b   : > { %10368 = shalt.err (!%p10365_p10)
}
  0x5c   : > { %s10369_s19 = scalar_lea.vmem %s487_s24, 16  ;;  %s10376_s2 = scalar_lea.vmem %s487_s24, 32 }
  0x5d   : > { %p10370_p9 = scmp.ne.s32.totalorder %s487_s24, %s10369_s19  ;;  %p10377_p8 = scmp.lt.s32.totalorder %s487_s24, %s487_s24 }
  0x5e   : > { %p10378_p13 = scmp.lt.s32.totalorder %s10376_s2, %s10369_s19 }
  0x5f   : > { %p10372_p6 = pnand %p10370_p9, %p10358_p4 }
  0x60   : > { %p10379_p2 = por %p10378_p13, %p10377_p8 }
  0x61   : > { %p10373_p3 = pneg %p10372_p6 }
  0x63   : > { %p10380_p12 = pnand %p10379_p2, %p10373_p3 }
  0x65   : > { %10383 = shalt.err (!%p10380_p12)
}
  0x66   : > { %10102 = dma.hbm_to_vmem [thread:$0]  (!%p11190_p7), %s13140_s13, 16, %s487_s24, [#allocation25]  }
  0x67   : > { %s13141_s14 = sld [smem:[#allocation68_spill]] }
  0x6d   : > { %s10384_s18 = scalar_lea.hbm %s13141_s14, 16 }
  0x6e   : > { %p10385_p6 = scmp.ne.s32.totalorder %s13141_s14, %s10384_s18  ;;  %p10391_p12 = scmp.lt.u32.totalorder %s10384_s18, %s13141_s14 }
  0x70   : > { %p10387_p13 = pnand %p10385_p6, %p10358_p4 }
  0x72   : > { %p10388_p3 = pneg %p10387_p13 }
  0x74   : > { %p10393_p8 = pnand %p10391_p12, %p10388_p3 }
  0x76   : > { %10396 = shalt.err (!%p10393_p8)
}
  0x77   : > { %s10397_s24 = scalar_lea.vmem %s11194_s17, 16  ;;  %s10404_s29 = scalar_lea.vmem %s11194_s17, 32 }
  0x78   : > { %p10398_p2 = scmp.ne.s32.totalorder %s11194_s17, %s10397_s24  ;;  %p10405_p0 = scmp.lt.s32.totalorder %s11194_s17, %s11194_s17 }
  0x79   : > { %p10406_p5 = scmp.lt.s32.totalorder %s10404_s29, %s10397_s24 }
  0x7a   : > { %p10400_p1 = pnand %p10398_p2, %p10358_p4 }
  0x7b   : > { %p10407_p10 = por %p10406_p5, %p10405_p0 }
  0x7c   : > { %p10401_p11 = pneg %p10400_p1 }
  0x7e   : > { %p10408_p9 = pnand %p10407_p10, %p10401_p11 }
  0x80   : > { %10411 = shalt.err (!%p10408_p9)
}
  0x81   : > { %10105 = dma.hbm_to_vmem [thread:$0]  (!%p11190_p7), %s13141_s14, 16, %s11194_s17, [#allocation25]  }
  0x82   : > { %p9565_p6 = scmp.ge.s32.totalorder %s10930_s28, 4 }
  0x83   : > { %s11246_s21 = sand.u32 (!%p9565_p6), 1, %s10910_s23   ;;  %s11249_s12 = sand.u32 (!%p9565_p6), 1, %s10930_s28  }
  0x84   : > { %504 = sbr.rel (%p9565_p6) target bundleno = 489 (0x1e9), region = 24  ;;  %s11252_s18 = sshll.u32 (!%p9565_p6), %s11246_s21, 3 }
  0x85   : > { %s11255_s6 = sshll.u32 (!%p9565_p6), %s10926_s27, 7  ;;  %s13142_s1 = sld [smem:[#allocation55_spill]] (!%p9565_p6) }
  0x86   : > { %s533_s2 = scalar_lea.vmem (!%p9565_p6), [#allocation6], %s11252_s18  ;;  %s13085_s29 = scalar_lea.sflag (!%p9565_p6), [#allocation7], %s11249_s12 }
  0x87   : > { %s540_s24 = sshll.u32 (!%p9565_p6), %s533_s2, 4  ;;  %p13143_p4 = scmp.ne.s32.totalorder (!%p9565_p6), %s13123_s25, 0  ;;  %s11264_s24 = int_to_ptr.vmem [resolvable:$true] %s540_s24 }
  0x8b   : > { %s11261_s19 = scalar_lea.hbm %s13142_s1, %s11255_s6  ;;  %s10416_s17 = scalar_lea.hbm %s13142_s1, 256 }
  0x8c   : > { %s10412_s16 = scalar_lea.hbm %s11261_s19, 128  ;;  %p10417_p12 = scmp.lt.u32.totalorder %s11261_s19, %s13142_s1 }
  0x8d   : > { %p10413_p7 = scmp.ne.s32.totalorder %s11261_s19, %s10412_s16  ;;  %p10418_p8 = scmp.lt.u32.totalorder %s10416_s17, %s10412_s16 }
  0x8e   : > { %p10420_p1 = scmp.lt.u32.totalorder %s10412_s16, %s11261_s19 }
  0x8f   : > { %p10414_p13 = pnand %p10413_p7, %p13143_p4  ;;  %p10419_p2 = por %p10418_p8, %p10417_p12 }
  0x91   : > { %p10415_p3 = pneg %p10414_p13  ;;  %p10421_p11 = por %p10420_p1, %p10419_p2 }
  0x93   : > { %p10422_p0 = pnand %p10421_p11, %p10415_p3 }
  0x95   : > { %10425 = shalt.err (!%p10422_p0)
}
  0x96   : > { %s10426_s2 = scalar_lea.vmem %s11264_s24, 128  ;;  %s10934_s13 = smov [#allocation6]  }
  0x97   : > { %p10427_p5 = scmp.ne.s32.totalorder %s11264_s24, %s10426_s2  ;;  %s10430_s8 = sshll.u32 %s10934_s13, 4  ;;  %s10431_s8 = int_to_ptr.vmem [resolvable:$false] %s10430_s8 }
  0x98   : > { %s10432_s14 = scalar_lea.vmem %s10431_s8, 256  ;;  %p10433_p6 = scmp.lt.s32.totalorder %s11264_s24, %s10431_s8 }
  0x99   : > { %p10428_p10 = pnand %p10427_p5, %p13143_p4  ;;  %p10434_p7 = scmp.lt.s32.totalorder %s10432_s14, %s10426_s2 }
  0x9b   : > { %p10429_p9 = pneg %p10428_p10  ;;  %p10435_p13 = por %p10434_p7, %p10433_p6 }
  0x9d   : > { %p10436_p12 = pnand %p10435_p13, %p10429_p9 }
  0x9f   : > { %10439 = shalt.err (!%p10436_p12)
}
  0xa0   : > { %s13086_s16 = smov 64   ;;  %s13093_s17 = smov 4  }
  0xa1   : > { %10068 = dma.hbm_to_vmem [thread:$0]  (%p13143_p4), %s11261_s19, 128, %s11264_s24, %s13085_s29, %s13086_s16, %s13086_s16, %s13093_s17  }
  0xa2   : > { %s13144_s3 = sld [smem:[#allocation57_spill]]  ;;  %s575_s8 = scalar_lea.vmem [#allocation9], %s11252_s18 }
  0xa3   : > { %s582_s14 = sshll.u32 %s575_s8, 4  ;;  %s11301_s1 = sand.u32 1, %s10898_s20   ;;  %s11303_s14 = int_to_ptr.vmem [resolvable:$true] %s582_s14 }
  0xa4   : > { %s11306_s23 = sshll.u32 %s11301_s1, 4  ;;  %s13089_s28 = scalar_lea.sflag [#allocation10], %s11249_s12 }
  0xa8   : > { %s11297_s13 = scalar_lea.hbm %s13144_s3, %s11255_s6  ;;  %s10444_s2 = scalar_lea.hbm %s13144_s3, 256 }
  0xa9   : > { %s10440_s19 = scalar_lea.hbm %s11297_s13, 128  ;;  %p10445_p1 = scmp.lt.u32.totalorder %s11297_s13, %s13144_s3 }
  0xaa   : > { %p10441_p3 = scmp.ne.s32.totalorder %s11297_s13, %s10440_s19  ;;  %p10446_p11 = scmp.lt.u32.totalorder %s10444_s2, %s10440_s19 }
  0xab   : > { %p10448_p5 = scmp.lt.u32.totalorder %s10440_s19, %s11297_s13 }
  0xac   : > { %p10442_p8 = pnand %p10441_p3, %p13143_p4  ;;  %p10447_p0 = por %p10446_p11, %p10445_p1 }
  0xae   : > { %p10443_p2 = pneg %p10442_p8  ;;  %p10449_p10 = por %p10448_p5, %p10447_p0 }
  0xb0   : > { %p10450_p9 = pnand %p10449_p10, %p10443_p2 }
  0xb2   : > { %10453 = shalt.err (!%p10450_p9)
}
  0xb3   : > { %s10454_s8 = scalar_lea.vmem %s11303_s14, 128  ;;  %s10937_s24 = smov [#allocation9]  }
  0xb4   : > { %p10455_p6 = scmp.ne.s32.totalorder %s11303_s14, %s10454_s8  ;;  %s10458_s30 = sshll.u32 %s10937_s24, 4  ;;  %s10459_s30 = int_to_ptr.vmem [resolvable:$false] %s10458_s30 }
  0xb5   : > { %s10460_s29 = scalar_lea.vmem %s10459_s30, 256  ;;  %p10461_p12 = scmp.lt.s32.totalorder %s11303_s14, %s10459_s30 }
  0xb6   : > { %p10456_p7 = pnand %p10455_p6, %p13143_p4  ;;  %p10462_p3 = scmp.lt.s32.totalorder %s10460_s29, %s10454_s8 }
  0xb8   : > { %p10457_p13 = pneg %p10456_p7  ;;  %p10463_p8 = por %p10462_p3, %p10461_p12 }
  0xba   : > { %p10464_p1 = pnand %p10463_p8, %p10457_p13 }
  0xbc   : > { %10467 = shalt.err (!%p10464_p1)
}
  0xbd   : > { %s13145_s16 = smov 64   ;;  %s11336_s19 = sshll.u32 %s10922_s26, 8 }
  0xbe   : > { %10070 = dma.hbm_to_vmem [thread:$0]  (%p13143_p4), %s11297_s13, 128, %s11303_s14, %s13089_s28, %s13145_s16, %s13145_s16, %s13093_s17  }
  0xbf   : > { %s13146_s5 = sld [smem:[#allocation59_spill]]  ;;  %s617_s30 = scalar_lea.vmem [#allocation12], %s11306_s23 }
  0xc0   : > { %s624_s29 = sshll.u32 %s617_s30, 4  ;;  %s13090_s3 = scalar_lea.sflag [#allocation13], %s11249_s12  ;;  %s11345_s29 = int_to_ptr.vmem [resolvable:$true] %s624_s29 }
  0xc1   : > { %p13147_p11 = scmp.ne.s32.totalorder %s13129_s4, 0 }
  0xc5   : > { %s11342_s24 = scalar_lea.hbm %s13146_s5, %s11336_s19  ;;  %s10472_s2 = scalar_lea.hbm %s13146_s5, 512 }
  0xc6   : > { %s10468_s20 = scalar_lea.hbm %s11342_s24, 256  ;;  %p10473_p10 = scmp.lt.u32.totalorder %s11342_s24, %s13146_s5 }
  0xc7   : > { %p10469_p2 = scmp.ne.s32.totalorder %s11342_s24, %s10468_s20  ;;  %p10474_p9 = scmp.lt.u32.totalorder %s10472_s2, %s10468_s20 }
  0xc8   : > { %p10476_p7 = scmp.lt.u32.totalorder %s10468_s20, %s11342_s24 }
  0xc9   : > { %p10470_p0 = pnand %p10469_p2, %p13147_p11  ;;  %p10475_p6 = por %p10474_p9, %p10473_p10 }
  0xcb   : > { %p10471_p5 = pneg %p10470_p0  ;;  %p10477_p13 = por %p10476_p7, %p10475_p6 }
  0xcd   : > { %p10478_p12 = pnand %p10477_p13, %p10471_p5 }
  0xcf   : > { %10481 = shalt.err (!%p10478_p12)
}
  0xd0   : > { %s10482_s30 = scalar_lea.vmem %s11345_s29, 256  ;;  %s10938_s13 = smov [#allocation12]  }
  0xd1   : > { %p10483_p3 = scmp.ne.s32.totalorder %s11345_s29, %s10482_s30  ;;  %s10486_s14 = sshll.u32 %s10938_s13, 4  ;;  %s10487_s14 = int_to_ptr.vmem [resolvable:$false] %s10486_s14 }
  0xd2   : > { %s10488_s28 = scalar_lea.vmem %s10487_s14, 512  ;;  %p10489_p2 = scmp.lt.s32.totalorder %s11345_s29, %s10487_s14 }
  0xd3   : > { %p10484_p8 = pnand %p10483_p3, %p13147_p11  ;;  %p10490_p0 = scmp.lt.s32.totalorder %s10488_s28, %s10482_s30 }
  0xd5   : > { %p10485_p1 = pneg %p10484_p8  ;;  %p10491_p10 = por %p10490_p0, %p10489_p2 }
  0xd7   : > { %p10492_p9 = pnand %p10491_p10, %p10485_p1 }
  0xd9   : > { %10495 = shalt.err (!%p10492_p9)
}
  0xda   : > { %10072 = dma.hbm_to_vmem [thread:$0]  (%p13147_p11), %s11342_s24, 256, %s11345_s29, %s13090_s3, %s13145_s16, %s13145_s16, %s13093_s17  }
  0xdb   : > { %s13148_s7 = sld [smem:[#allocation61_spill]]  ;;  %s659_s30 = scalar_lea.vmem [#allocation15], %s11306_s23 }
  0xdc   : > { %s666_s13 = sshll.u32 %s659_s30, 4  ;;  %s13091_s14 = scalar_lea.sflag [#allocation16], %s11249_s12  ;;  %s11381_s13 = int_to_ptr.vmem [resolvable:$true] %s666_s13 }
  0xe1   : > { %s11378_s8 = scalar_lea.hbm %s13148_s7, %s11336_s19  ;;  %s10500_s20 = scalar_lea.hbm %s13148_s7, 512 }
  0xe2   : > { %s10496_s28 = scalar_lea.hbm %s11378_s8, 256  ;;  %p10501_p13 = scmp.lt.u32.totalorder %s11378_s8, %s13148_s7 }
  0xe3   : > { %p10497_p5 = scmp.ne.s32.totalorder %s11378_s8, %s10496_s28  ;;  %p10502_p12 = scmp.lt.u32.totalorder %s10500_s20, %s10496_s28 }
  0xe4   : > { %p10504_p8 = scmp.lt.u32.totalorder %s10496_s28, %s11378_s8 }
  0xe5   : > { %p10498_p6 = pnand %p10497_p5, %p13147_p11  ;;  %p10503_p3 = por %p10502_p12, %p10501_p13 }
  0xe7   : > { %p10499_p7 = pneg %p10498_p6  ;;  %p10505_p1 = por %p10504_p8, %p10503_p3 }
  0xe9   : > { %p10506_p2 = pnand %p10505_p1, %p10499_p7 }
  0xeb   : > { %10509 = shalt.err (!%p10506_p2)
}
  0xec   : > { %s10510_s30 = scalar_lea.vmem %s11381_s13, 256  ;;  %s10939_s24 = smov [#allocation15]  }
  0xed   : > { %p10511_p0 = scmp.ne.s32.totalorder %s11381_s13, %s10510_s30  ;;  %s10514_s29 = sshll.u32 %s10939_s24, 4  ;;  %s10515_s29 = int_to_ptr.vmem [resolvable:$false] %s10514_s29 }
  0xee   : > { %s10516_s3 = scalar_lea.vmem %s10515_s29, 512  ;;  %p10517_p5 = scmp.lt.s32.totalorder %s11381_s13, %s10515_s29 }
  0xef   : > { %p10512_p10 = pnand %p10511_p0, %p13147_p11  ;;  %p10518_p6 = scmp.lt.s32.totalorder %s10516_s3, %s10510_s30 }
  0xf1   : > { %p10513_p9 = pneg %p10512_p10  ;;  %p10519_p13 = por %p10518_p6, %p10517_p5 }
  0xf3   : > { %p10520_p12 = pnand %p10519_p13, %p10513_p9 }
  0xf5   : > { %10523 = shalt.err (!%p10520_p12)
}
  0xf6   : > { %10074 = dma.hbm_to_vmem [thread:$0]  (%p13147_p11), %s11378_s8, 256, %s11381_s13, %s13091_s14, %s13145_s16, %s13145_s16, %s13093_s17  }
  0xf7   : > { %s13149_s9 = sld [smem:[#allocation63_spill]]  ;;  %s701_s30 = scalar_lea.vmem [#allocation18], %s11306_s23 }
  0xf8   : > { %s708_s24 = sshll.u32 %s701_s30, 4  ;;  %s13092_s29 = scalar_lea.sflag [#allocation19], %s11249_s12  ;;  %s11417_s24 = int_to_ptr.vmem [resolvable:$true] %s708_s24 }
  0xfd   : > { %s11414_s2 = scalar_lea.hbm %s13149_s9, %s11336_s19  ;;  %s10528_s28 = scalar_lea.hbm %s13149_s9, 512 }
  0xfe   : > { %s10524_s3 = scalar_lea.hbm %s11414_s2, 256  ;;  %p10529_p1 = scmp.lt.u32.totalorder %s11414_s2, %s13149_s9 }
  0xff   : > { %p10525_p7 = scmp.ne.s32.totalorder %s11414_s2, %s10524_s3  ;;  %p10530_p2 = scmp.lt.u32.totalorder %s10528_s28, %s10524_s3 }
 0x100   : > { %p10532_p10 = scmp.lt.u32.totalorder %s10524_s3, %s11414_s2 }
 0x101   : > { %p10526_p3 = pnand %p10525_p7, %p13147_p11  ;;  %p10531_p0 = por %p10530_p2, %p10529_p1 }
 0x103   : > { %p10527_p8 = pneg %p10526_p3  ;;  %p10533_p9 = por %p10532_p10, %p10531_p0 }
 0x105   : > { %p10534_p5 = pnand %p10533_p9, %p10527_p8 }
 0x107   : > { %10537 = shalt.err (!%p10534_p5)
}
 0x108   : > { %s10538_s30 = scalar_lea.vmem %s11417_s24, 256  ;;  %s10940_s8 = smov [#allocation18]  }
 0x109   : > { %p10539_p6 = scmp.ne.s32.totalorder %s11417_s24, %s10538_s30  ;;  %s10542_s13 = sshll.u32 %s10940_s8, 4  ;;  %s10543_s13 = int_to_ptr.vmem [resolvable:$false] %s10542_s13 }
 0x10a   : > { %s10544_s14 = scalar_lea.vmem %s10543_s13, 512  ;;  %p10545_p7 = scmp.lt.s32.totalorder %s11417_s24, %s10543_s13 }
 0x10b   : > { %p10540_p13 = pnand %p10539_p6, %p13147_p11  ;;  %p10546_p3 = scmp.lt.s32.totalorder %s10544_s14, %s10538_s30 }
 0x10d   : > { %p10541_p12 = pneg %p10540_p13  ;;  %p10547_p1 = por %p10546_p3, %p10545_p7 }
 0x10f   : > { %p10548_p2 = pnand %p10547_p1, %p10541_p12 }
 0x111   : > { %10551 = shalt.err (!%p10548_p2)
}
 0x112   : > { %10076 = dma.hbm_to_vmem [thread:$0]  (%p13147_p11), %s11414_s2, 256, %s11417_s24, %s13092_s29, %s13145_s16, %s13145_s16, %s13093_s17  }
 0x113   : > { %s13150_s11 = sld [smem:[#allocation65_spill]]  ;;  %s743_s30 = scalar_lea.vmem [#allocation21], %s11306_s23 }
 0x114   : > { %s750_s8 = sshll.u32 %s743_s30, 4  ;;  %s13097_s13 = scalar_lea.sflag [#allocation22], %s11249_s12  ;;  %s11453_s8 = int_to_ptr.vmem [resolvable:$true] %s750_s8 }
 0x119   : > { %s11450_s20 = scalar_lea.hbm %s13150_s11, %s11336_s19  ;;  %s10556_s3 = scalar_lea.hbm %s13150_s11, 512 }
 0x11a   : > { %s10552_s14 = scalar_lea.hbm %s11450_s20, 256  ;;  %p10557_p9 = scmp.lt.u32.totalorder %s11450_s20, %s13150_s11 }
 0x11b   : > { %p10553_p8 = scmp.ne.s32.totalorder %s11450_s20, %s10552_s14  ;;  %p10558_p5 = scmp.lt.u32.totalorder %s10556_s3, %s10552_s14 }
 0x11c   : > { %p10560_p13 = scmp.lt.u32.totalorder %s10552_s14, %s11450_s20 }
 0x11d   : > { %p10554_p0 = pnand %p10553_p8, %p13147_p11  ;;  %p10559_p6 = por %p10558_p5, %p10557_p9 }
 0x11f   : > { %p10555_p10 = pneg %p10554_p0  ;;  %p10561_p12 = por %p10560_p13, %p10559_p6 }
 0x121   : > { %p10562_p7 = pnand %p10561_p12, %p10555_p10 }
 0x123   : > { %10565 = shalt.err (!%p10562_p7)
}
 0x124   : > { %s10566_s30 = scalar_lea.vmem %s11453_s8, 256  ;;  %s10941_s2 = smov [#allocation21]  }
 0x125   : > { %p10567_p3 = scmp.ne.s32.totalorder %s11453_s8, %s10566_s30  ;;  %s10570_s24 = sshll.u32 %s10941_s2, 4  ;;  %s10571_s24 = int_to_ptr.vmem [resolvable:$false] %s10570_s24 }
 0x126   : > { %s10572_s29 = scalar_lea.vmem %s10571_s24, 512  ;;  %p10573_p8 = scmp.lt.s32.totalorder %s11453_s8, %s10571_s24 }
 0x127   : > { %p10568_p1 = pnand %p10567_p3, %p13147_p11  ;;  %p10574_p0 = scmp.lt.s32.totalorder %s10572_s29, %s10566_s30 }
 0x129   : > { %p10569_p2 = pneg %p10568_p1  ;;  %p10575_p9 = por %p10574_p0, %p10573_p8 }
 0x12b   : > { %p10576_p5 = pnand %p10575_p9, %p10569_p2 }
 0x12d   : > { %10579 = shalt.err (!%p10576_p5)
}
 0x12e   : > { %s10942_s14 = smov 128   ;;  %s10943_s3 = smov 8  }
 0x12f   : > { %10078 = dma.hbm_to_vmem [thread:$0]  (%p13147_p11), %s11450_s20, 256, %s11453_s8, %s13097_s13, %s10942_s14, %s10942_s14, %s10943_s3  }
 0x130   : > { %s9566_s28 = sshll.u32 %s11246_s21, 4  ;;  %s9711_s30 = sshll.u32 %s10926_s27, 8 }
 0x131   : > { %s13151_s0 = sld [smem:[#allocation54_spill]]  ;;  %s512_s17 = scalar_lea.vmem [#allocation3], %s9566_s28 }
 0x132   : > { %s519_s5 = sshll.u32 %s512_s17, 4  ;;  %s13152_s11 = sld [smem:[#allocation56_spill]]  ;;  %s11489_s5 = int_to_ptr.vmem [resolvable:$true] %s519_s5 }
 0x133   : > { %s509_s20 = scalar_lea.sflag [#allocation4], %s11246_s21 }
 0x137   : > { %s11487_s29 = scalar_lea.hbm %s13151_s0, %s9711_s30  ;;  %s10584_s24 = scalar_lea.hbm %s13151_s0, 512 }
 0x138   : > { %s11495_s10 = scalar_lea.hbm %s13152_s11, %s11255_s6  ;;  %s10580_s8 = scalar_lea.hbm %s11487_s29, 256 }
 0x139   : > { %p10581_p10 = scmp.ne.s32.totalorder %s11487_s29, %s10580_s8  ;;  %p10585_p12 = scmp.lt.u32.totalorder %s11487_s29, %s13151_s0 }
 0x13a   : > { %p10586_p7 = scmp.lt.u32.totalorder %s10584_s24, %s10580_s8  ;;  %p10588_p1 = scmp.lt.u32.totalorder %s10580_s8, %s11487_s29 }
 0x13b   : > { %p10582_p6 = pnand %p10581_p10, %p13143_p4 }
 0x13c   : > { %p10587_p3 = por %p10586_p7, %p10585_p12 }
 0x13d   : > { %p10583_p13 = pneg %p10582_p6 }
 0x13e   : > { %p10589_p2 = por %p10588_p1, %p10587_p3 }
 0x140   : > { %p10590_p8 = pnand %p10589_p2, %p10583_p13 }
 0x142   : > { %10593 = shalt.err (!%p10590_p8)
}
 0x143   : > { %s10594_s7 = scalar_lea.vmem %s11489_s5, 256  ;;  %s10944_s9 = smov [#allocation3]  }
 0x144   : > { %p10595_p0 = scmp.ne.s32.totalorder %s11489_s5, %s10594_s7  ;;  %s10598_s6 = sshll.u32 %s10944_s9, 4  ;;  %s10599_s6 = int_to_ptr.vmem [resolvable:$false] %s10598_s6 }
 0x145   : > { %s10600_s17 = scalar_lea.vmem %s10599_s6, 512  ;;  %p10601_p10 = scmp.lt.s32.totalorder %s11489_s5, %s10599_s6 }
 0x146   : > { %p10596_p9 = pnand %p10595_p0, %p13143_p4  ;;  %p10602_p6 = scmp.lt.s32.totalorder %s10600_s17, %s10594_s7 }
 0x148   : > { %p10597_p5 = pneg %p10596_p9  ;;  %p10603_p12 = por %p10602_p6, %p10601_p10 }
 0x14a   : > { %p10604_p7 = pnand %p10603_p12, %p10597_p5 }
 0x14c   : > { %10607 = shalt.err (!%p10604_p7)
}
 0x14d   : > { %10067 = dma.hbm_to_vmem [thread:$0]  (%p13143_p4), %s11487_s29, 256, %s11489_s5, %s509_s20, %s10942_s14, %s10942_s14, %s10943_s3  }
 0x14e   : > { %s554_s13 = scalar_lea.vmem [#allocation8], %s11252_s18  ;;  %s13153_s24 = sld [smem:[#allocation58_spill]] }
 0x14f   : > { %s561_s8 = sshll.u32 %s554_s13, 4  ;;  %s10608_s21 = scalar_lea.hbm %s11495_s10, 128  ;;  %s11525_s8 = int_to_ptr.vmem [resolvable:$true] %s561_s8 }
 0x150   : > { %p10609_p13 = scmp.ne.s32.totalorder %s11495_s10, %s10608_s21  ;;  %s10612_s17 = scalar_lea.hbm %s13152_s11, 256 }
 0x151   : > { %p10613_p2 = scmp.lt.u32.totalorder %s11495_s10, %s13152_s11  ;;  %p10614_p8 = scmp.lt.u32.totalorder %s10612_s17, %s10608_s21 }
 0x152   : > { %p10610_p3 = pnand %p10609_p13, %p13143_p4  ;;  %p10616_p9 = scmp.lt.u32.totalorder %s10608_s21, %s11495_s10 }
 0x153   : > { %p10615_p0 = por %p10614_p8, %p10613_p2 }
 0x154   : > { %s13154_s7 = smov %s13153_s24  ;;  %s11531_s28 = scalar_lea.hbm %s13153_s24, %s11336_s19 }
 0x155   : > { %p10611_p1 = pneg %p10610_p3  ;;  %p10617_p5 = por %p10616_p9, %p10615_p0 }
 0x157   : > { %p10618_p10 = pnand %p10617_p5, %p10611_p1 }
 0x159   : > { %10621 = shalt.err (!%p10618_p10)
}
 0x15a   : > { %s10622_s18 = scalar_lea.vmem %s11525_s8, 128  ;;  %s10945_s14 = smov [#allocation8]  }
 0x15b   : > { %p10623_p6 = scmp.ne.s32.totalorder %s11525_s8, %s10622_s18  ;;  %s10626_s3 = sshll.u32 %s10945_s14, 4  ;;  %s10627_s3 = int_to_ptr.vmem [resolvable:$false] %s10626_s3 }
 0x15c   : > { %s10628_s0 = scalar_lea.vmem %s10627_s3, 256  ;;  %p10629_p13 = scmp.lt.s32.totalorder %s11525_s8, %s10627_s3 }
 0x15d   : > { %p10624_p12 = pnand %p10623_p6, %p13143_p4  ;;  %p10630_p3 = scmp.lt.s32.totalorder %s10628_s0, %s10622_s18 }
 0x15f   : > { %p10625_p7 = pneg %p10624_p12  ;;  %p10631_p2 = por %p10630_p3, %p10629_p13 }
 0x161   : > { %p10632_p8 = pnand %p10631_p2, %p10625_p7 }
 0x163   : > { %10635 = shalt.err (!%p10632_p8)
}
 0x164   : > { %s13155_s29 = smov 4   ;;  %s13156_s20 = scalar_lea.sflag [#allocation7], %s11249_s12 }
 0x165   : > { %10069 = dma.hbm_to_vmem [thread:$0]  (%p13143_p4), %s11495_s10, 128, %s11525_s8, %s13156_s20, %s13145_s16, %s13145_s16, %s13155_s29  }
 0x166   : > { %s596_s13 = scalar_lea.vmem [#allocation11], %s11306_s23  ;;  %s13157_s24 = sld [smem:[#allocation60_spill]] }
 0x167   : > { %s603_s30 = sshll.u32 %s596_s13, 4  ;;  %s10636_s6 = scalar_lea.hbm %s11531_s28, 256  ;;  %s11560_s30 = int_to_ptr.vmem [resolvable:$true] %s603_s30 }
 0x168   : > { %p10637_p1 = scmp.ne.s32.totalorder %s11531_s28, %s10636_s6  ;;  %s10640_s18 = scalar_lea.hbm %s13154_s7, 512 }
 0x169   : > { %p10641_p4 = scmp.lt.u32.totalorder %s11531_s28, %s13154_s7  ;;  %p10642_p5 = scmp.lt.u32.totalorder %s10640_s18, %s10636_s6 }
 0x16a   : > { %p10638_p0 = pnand %p10637_p1, %p13147_p11  ;;  %p10644_p6 = scmp.lt.u32.totalorder %s10636_s6, %s11531_s28 }
 0x16b   : > { %p10643_p10 = por %p10642_p5, %p10641_p4 }
 0x16c   : > { %s13158_s9 = smov %s13157_s24  ;;  %s11566_s21 = scalar_lea.hbm %s13157_s24, %s11336_s19 }
 0x16d   : > { %p10639_p9 = pneg %p10638_p0  ;;  %p10645_p12 = por %p10644_p6, %p10643_p10 }
 0x16f   : > { %p10646_p7 = pnand %p10645_p12, %p10639_p9 }
 0x171   : > { %10649 = shalt.err (!%p10646_p7)
}
 0x172   : > { %s10650_s8 = scalar_lea.vmem %s11560_s30, 256  ;;  %s10946_s3 = smov [#allocation11]  }
 0x173   : > { %p10651_p13 = scmp.ne.s32.totalorder %s11560_s30, %s10650_s8  ;;  %s10654_s0 = sshll.u32 %s10946_s3, 4  ;;  %s10655_s0 = int_to_ptr.vmem [resolvable:$false] %s10654_s0 }
 0x174   : > { %s10656_s20 = scalar_lea.vmem %s10655_s0, 512  ;;  %p10657_p8 = scmp.lt.s32.totalorder %s11560_s30, %s10655_s0 }
 0x175   : > { %p10652_p3 = pnand %p10651_p13, %p13147_p11  ;;  %p10658_p1 = scmp.lt.s32.totalorder %s10656_s20, %s10650_s8 }
 0x177   : > { %p10653_p2 = pneg %p10652_p3  ;;  %p10659_p0 = por %p10658_p1, %p10657_p8 }
 0x179   : > { %p10660_p4 = pnand %p10659_p0, %p10653_p2 }
 0x17b   : > { %10663 = shalt.err (!%p10660_p4)
}
 0x17c   : > { %s13159_s13 = scalar_lea.sflag [#allocation10], %s11249_s12  ;;  %s638_s25 = scalar_lea.vmem [#allocation14], %s11306_s23 }
 0x17d   : > { %10071 = dma.hbm_to_vmem [thread:$0]  (%p13147_p11), %s11531_s28, 256, %s11560_s30, %s13159_s13, %s13145_s16, %s13145_s16, %s13155_s29  }
 0x17e   : > { %s645_s2 = sshll.u32 %s638_s25, 4  ;;  %s13160_s17 = sld [smem:[#allocation62_spill]]  ;;  %s11595_s2 = int_to_ptr.vmem [resolvable:$true] %s645_s2 }
 0x17f   : > { %s10664_s18 = scalar_lea.hbm %s11566_s21, 256  ;;  %s10668_s8 = scalar_lea.hbm %s13158_s9, 512 }
 0x180   : > { %p10665_p9 = scmp.ne.s32.totalorder %s11566_s21, %s10664_s18  ;;  %p10669_p6 = scmp.lt.u32.totalorder %s11566_s21, %s13158_s9 }
 0x181   : > { %p10670_p12 = scmp.lt.u32.totalorder %s10668_s8, %s10664_s18  ;;  %p10672_p13 = scmp.lt.u32.totalorder %s10664_s18, %s11566_s21 }
 0x182   : > { %p10666_p5 = pnand %p10665_p9, %p13147_p11 }
 0x183   : > { %p10671_p7 = por %p10670_p12, %p10669_p6 }
 0x184   : > { %s11601_s5 = scalar_lea.hbm %s13160_s17, %s11336_s19  ;;  %p10667_p10 = pneg %p10666_p5 }
 0x185   : > { %p10673_p3 = por %p10672_p13, %p10671_p7 }
 0x187   : > { %p10674_p2 = pnand %p10673_p3, %p10667_p10 }
 0x189   : > { %10677 = shalt.err (!%p10674_p2)
}
 0x18a   : > { %s10678_s19 = scalar_lea.vmem %s11595_s2, 256  ;;  %s10947_s30 = smov [#allocation14]  }
 0x18b   : > { %p10679_p8 = scmp.ne.s32.totalorder %s11595_s2, %s10678_s19  ;;  %s10682_s0 = sshll.u32 %s10947_s30, 4  ;;  %s10683_s0 = int_to_ptr.vmem [resolvable:$false] %s10682_s0 }
 0x18c   : > { %s10684_s20 = scalar_lea.vmem %s10683_s0, 512  ;;  %p10685_p4 = scmp.lt.s32.totalorder %s11595_s2, %s10683_s0 }
 0x18d   : > { %p10680_p1 = pnand %p10679_p8, %p13147_p11  ;;  %p10686_p9 = scmp.lt.s32.totalorder %s10684_s20, %s10678_s19 }
 0x18f   : > { %p10681_p0 = pneg %p10680_p1  ;;  %p10687_p5 = por %p10686_p9, %p10685_p4 }
 0x191   : > { %p10688_p6 = pnand %p10687_p5, %p10681_p0 }
 0x193   : > { %10691 = shalt.err (!%p10688_p6)
}
 0x194   : > { %s13161_s13 = scalar_lea.sflag [#allocation13], %s11249_s12  ;;  %s680_s25 = scalar_lea.vmem [#allocation17], %s11306_s23 }
 0x195   : > { %10073 = dma.hbm_to_vmem [thread:$0]  (%p13147_p11), %s11566_s21, 256, %s11595_s2, %s13161_s13, %s13145_s16, %s13145_s16, %s13155_s29  }
 0x196   : > { %s687_s24 = sshll.u32 %s680_s25, 4  ;;  %s9596_s6 = sshll.u32 %s11301_s1, 5  ;;  %s11631_s24 = int_to_ptr.vmem [resolvable:$true] %s687_s24 }
 0x197   : > { %s10692_s18 = scalar_lea.hbm %s11601_s5, 256  ;;  %s10696_s8 = scalar_lea.hbm %s13160_s17, 512 }
 0x198   : > { %p10693_p10 = scmp.ne.s32.totalorder %s11601_s5, %s10692_s18  ;;  %p10697_p13 = scmp.lt.u32.totalorder %s11601_s5, %s13160_s17 }
 0x199   : > { %p10698_p3 = scmp.lt.u32.totalorder %s10696_s8, %s10692_s18  ;;  %p10700_p8 = scmp.lt.u32.totalorder %s10692_s18, %s11601_s5 }
 0x19a   : > { %p10694_p12 = pnand %p10693_p10, %p13147_p11 }
 0x19b   : > { %p10699_p2 = por %p10698_p3, %p10697_p13 }
 0x19c   : > { %p10695_p7 = pneg %p10694_p12 }
 0x19d   : > { %p10701_p1 = por %p10700_p8, %p10699_p2 }
 0x19f   : > { %p10702_p0 = pnand %p10701_p1, %p10695_p7 }
 0x1a1   : > { %10705 = shalt.err (!%p10702_p0)
}
 0x1a2   : > { %s10706_s23 = scalar_lea.vmem %s11631_s24, 256  ;;  %s10948_s21 = smov [#allocation17]  }
 0x1a3   : > { %p10707_p4 = scmp.ne.s32.totalorder %s11631_s24, %s10706_s23  ;;  %s10710_s2 = sshll.u32 %s10948_s21, 4  ;;  %s10711_s2 = int_to_ptr.vmem [resolvable:$false] %s10710_s2 }
 0x1a4   : > { %s10712_s19 = scalar_lea.vmem %s10711_s2, 512  ;;  %p10713_p6 = scmp.lt.s32.totalorder %s11631_s24, %s10711_s2 }
 0x1a5   : > { %p10708_p9 = pnand %p10707_p4, %p13147_p11  ;;  %p10714_p10 = scmp.lt.s32.totalorder %s10712_s19, %s10706_s23 }
 0x1a7   : > { %p10709_p5 = pneg %p10708_p9  ;;  %p10715_p12 = por %p10714_p10, %p10713_p6 }
 0x1a9   : > { %p10716_p13 = pnand %p10715_p12, %p10709_p5 }
 0x1ab   : > { %10719 = shalt.err (!%p10716_p13)
}
 0x1ac   : > { %s13162_s30 = scalar_lea.sflag [#allocation16], %s11249_s12  ;;  %s9721_s0 = sshll.u32 %s10922_s26, 9 }
 0x1ad   : > { %10075 = dma.hbm_to_vmem [thread:$0]  (%p13147_p11), %s11601_s5, 256, %s11631_s24, %s13162_s30, %s13145_s16, %s13145_s16, %s13155_s29  }
 0x1ae   : > { %s722_s20 = scalar_lea.vmem [#allocation20], %s9596_s6  ;;  %s13163_s14 = sld [smem:[#allocation64_spill]] }
 0x1af   : > { %s729_s13 = sshll.u32 %s722_s20, 4  ;;  %s11667_s13 = int_to_ptr.vmem [resolvable:$true] %s729_s13 }
 0x1b4   : > { %s11665_s10 = scalar_lea.hbm %s13163_s14, %s9721_s0  ;;  %s10724_s6 = scalar_lea.hbm %s13163_s14, 1024 }
 0x1b5   : > { %s10720_s8 = scalar_lea.hbm %s11665_s10, 512  ;;  %p10725_p8 = scmp.lt.u32.totalorder %s11665_s10, %s13163_s14 }
 0x1b6   : > { %p10721_p7 = scmp.ne.s32.totalorder %s11665_s10, %s10720_s8  ;;  %p10726_p1 = scmp.lt.u32.totalorder %s10724_s6, %s10720_s8 }
 0x1b7   : > { %p10728_p4 = scmp.lt.u32.totalorder %s10720_s8, %s11665_s10 }
 0x1b8   : > { %p10722_p3 = pnand %p10721_p7, %p13147_p11  ;;  %p10727_p0 = por %p10726_p1, %p10725_p8 }
 0x1ba   : > { %p10723_p2 = pneg %p10722_p3  ;;  %p10729_p9 = por %p10728_p4, %p10727_p0 }
 0x1bc   : > { %p10730_p5 = pnand %p10729_p9, %p10723_p2 }
 0x1be   : > { %10733 = shalt.err (!%p10730_p5)
}
 0x1bf   : > { %s10734_s23 = scalar_lea.vmem %s11667_s13, 512  ;;  %s10949_s21 = smov [#allocation20]  }
 0x1c0   : > { %p10735_p6 = scmp.ne.s32.totalorder %s11667_s13, %s10734_s23  ;;  %s10738_s2 = sshll.u32 %s10949_s21, 4  ;;  %s10739_s2 = int_to_ptr.vmem [resolvable:$false] %s10738_s2 }
 0x1c1   : > { %s10740_s19 = scalar_lea.vmem %s10739_s2, 1024  ;;  %p10741_p13 = scmp.lt.s32.totalorder %s11667_s13, %s10739_s2 }
 0x1c2   : > { %p10736_p10 = pnand %p10735_p6, %p13147_p11  ;;  %p10742_p7 = scmp.lt.s32.totalorder %s10740_s19, %s10734_s23 }
 0x1c4   : > { %p10737_p12 = pneg %p10736_p10  ;;  %p10743_p3 = por %p10742_p7, %p10741_p13 }
 0x1c6   : > { %p10744_p8 = pnand %p10743_p3, %p10737_p12 }
 0x1c8   : > { %10747 = shalt.err (!%p10744_p8)
}
 0x1c9   : > { %s13164_s30 = scalar_lea.sflag [#allocation19], %s11249_s12  ;;  %s9602_s0 = sshll.u32 %s10922_s26, 4 }
 0x1ca   : > { %10077 = dma.hbm_to_vmem [thread:$0]  (%p13147_p11), %s11665_s10, 512, %s11667_s13, %s13164_s30, %s13145_s16, %s13145_s16, %s13155_s29  }
 0x1cb   : > { %s13165_s18 = sld [smem:[#allocation66_spill]]  ;;  %s763_s24 = scalar_lea.vmem [#allocation23], %s11301_s1 }
 0x1cc   : > { %s770_s6 = sshll.u32 %s763_s24, 4  ;;  %s771_s6 = int_to_ptr.vmem [resolvable:$true] %s770_s6 }
 0x1d1   : > { %s13166_s8 = smov %s13165_s18  ;;  %s11699_s5 = scalar_lea.hbm %s13165_s18, %s9602_s0 }
 0x1d2   : > { %s10748_s3 = scalar_lea.hbm %s11699_s5, 16  ;;  %s10752_s29 = scalar_lea.hbm %s13166_s8, 32 }
 0x1d3   : > { %p10749_p2 = scmp.ne.s32.totalorder %s11699_s5, %s10748_s3  ;;  %p10753_p4 = scmp.lt.u32.totalorder %s11699_s5, %s13166_s8 }
 0x1d4   : > { %p10754_p9 = scmp.lt.u32.totalorder %s10752_s29, %s10748_s3  ;;  %p10756_p6 = scmp.lt.u32.totalorder %s10748_s3, %s11699_s5 }
 0x1d5   : > { %p10750_p1 = pnand %p10749_p2, %p13147_p11 }
 0x1d6   : > { %p10755_p5 = por %p10754_p9, %p10753_p4 }
 0x1d7   : > { %p10751_p0 = pneg %p10750_p1 }
 0x1d8   : > { %p10757_p10 = por %p10756_p6, %p10755_p5 }
 0x1da   : > { %p10758_p12 = pnand %p10757_p10, %p10751_p0 }
 0x1dc   : > { %10761 = shalt.err (!%p10758_p12)
}
 0x1dd   : > { %s10762_s1 = scalar_lea.vmem %s771_s6, 16  ;;  %s10950_s23 = smov [#allocation23]  }
 0x1de   : > { %p10763_p13 = scmp.ne.s32.totalorder %s771_s6, %s10762_s1  ;;  %s10766_s21 = sshll.u32 %s10950_s23, 4  ;;  %s10767_s21 = int_to_ptr.vmem [resolvable:$false] %s10766_s21 }
 0x1df   : > { %s10768_s2 = scalar_lea.vmem %s10767_s21, 32  ;;  %p10769_p8 = scmp.lt.s32.totalorder %s771_s6, %s10767_s21 }
 0x1e0   : > { %p10764_p7 = pnand %p10763_p13, %p13147_p11  ;;  %p10770_p2 = scmp.lt.s32.totalorder %s10768_s2, %s10762_s1 }
 0x1e2   : > { %p10765_p3 = pneg %p10764_p7  ;;  %p10771_p1 = por %p10770_p2, %p10769_p8 }
 0x1e4   : > { %p10772_p4 = pnand %p10771_p1, %p10765_p3 }
 0x1e6   : > { %10775 = shalt.err (!%p10772_p4)
}
 0x1e7   : > { %s13167_s19 = scalar_lea.sflag [#allocation22], %s11249_s12 }
 0x1e8   : > { %10079 = dma.hbm_to_vmem [thread:$0]  (%p13147_p11), %s11699_s5, 16, %s771_s6, %s13167_s19  }
 0x1e9 PF: > { %p13168_p0 = scmp.ne.s32.totalorder %s13138_s15, 0 }
 0x1ea   : > { %s13169_s30 = sld [smem:[#allocation48_spill]] (!%p13168_p0)  ;;  %s11724_s0 = sand.u32 (!%p13168_p0), 1, %s10906_s22  }
 0x1eb   : > { %779 = sbr.rel (%p13168_p0) target bundleno = 7928 (0x1ef8), region = 80  ;;  %s9604_s20 = sshll.u32 (!%p13168_p0), %s11724_s0, 4 }
 0x1ec   : > { %s782_s25 = scalar_lea.sflag (!%p13168_p0), [#allocation4], %s11724_s0  ;;  %s11730_s18 = scalar_lea.vmem (!%p13168_p0), [#allocation3], %s9604_s20 }
 0x1f0   : > { %p13170_p9 = scmp.ne.s32.totalorder (!%p13168_p0), %s13169_s30, 0 }
 0x1f2   : > { %10849 = dma.done.wait (%p13170_p9), %s782_s25, 256  }
 0x1f3   : > { %10851 = vsyncadd (%p13170_p9), %s782_s25, 4294967040  ;;  %s13171_s4 = sld [smem:[#allocation45_spill]]  ;;  %s11740_s12 = sshll.u32 %s11724_s0, 3 }
 0x1f4   : > { %s794_s24 = scalar_lea.vmem [#allocation6], %s11740_s12 }
 0x1f9   : > { %s11737_s15 = sand.u32 1, %s13171_s4  }
 0x1fa   : > { %s791_s5 = scalar_lea.sflag [#allocation7], %s11737_s15 }
 0x1fb   : > { %10853 = dma.done.wait (%p13170_p9), %s791_s5, 256  }
 0x1fc   : > { %10855 = vsyncadd (%p13170_p9), %s791_s5, 4294967040  ;;  %s803_s6 = scalar_lea.vmem [#allocation8], %s11740_s12  ;;  %s809_s3 = scalar_lea.sflag [#allocation10], %s11737_s15 }
 0x1fd   : > { %10857 = dma.done.wait (%p13170_p9), %s809_s3, 128  }
 0x1fe   : > { %10859 = vsyncadd (%p13170_p9), %s809_s3, 4294967168  ;;  %s13172_s16 = sld [smem:[#allocation38_spill]]  ;;  %s13173_s29 = sld [smem:[#allocation51_spill]] }
 0x204   : > { %s11756_s13 = sand.u32 1, %s13172_s16   ;;  %p13174_p11 = scmp.ne.s32.totalorder %s13173_s29, 0 }
 0x205   : > { %s11759_s10 = sshll.u32 %s11756_s13, 4 }
 0x206   : > { %s821_s1 = scalar_lea.vmem [#allocation11], %s11759_s10 }
 0x207   : > { %10861 = dma.done.wait (%p13174_p11), %s809_s3, 256  }
 0x208   : > { %10863 = vsyncadd (%p13174_p11), %s809_s3, 4294967040  ;;  %s827_s23 = scalar_lea.sflag [#allocation13], %s11737_s15  ;;  %s830_s21 = scalar_lea.vmem [#allocation12], %s11759_s10 }
 0x209   : > { %10865 = dma.done.wait (%p13174_p11), %s827_s23, 512  }
 0x20a   : > { %10867 = vsyncadd (%p13174_p11), %s827_s23, 4294966784  ;;  %s839_s2 = scalar_lea.vmem [#allocation14], %s11759_s10  ;;  %s845_s19 = scalar_lea.sflag [#allocation16], %s11737_s15 }
 0x20b   : > { %s848_s30 = scalar_lea.vmem [#allocation15], %s11759_s10 }
 0x20c   : > { %10869 = dma.done.wait (%p13174_p11), %s845_s19, 512  }
 0x20d   : > { %10871 = vsyncadd (%p13174_p11), %s845_s19, 4294966784  ;;  %s857_s25 = scalar_lea.vmem [#allocation17], %s11759_s10  ;;  %s863_s5 = scalar_lea.sflag [#allocation19], %s11737_s15 }
 0x20e   : > { %10873 = dma.done.wait (%p13174_p11), %s863_s5, 768  }
 0x20f   : > { %10875 = vsyncadd (%p13174_p11), %s863_s5, 4294966528  ;;  %s9614_s16 = sshll.u32 %s11756_s13, 5  ;;  %s881_s19 = scalar_lea.sflag [#allocation22], %s11737_s15 }
 0x210   : > { %s11787_s23 = scalar_lea.vmem [#allocation20], %s9614_s16  ;;  %s11791_s28 = scalar_lea.vmem [#allocation21], %s11759_s10 }
 0x211   : > { %10877 = dma.done.wait (%p13174_p11), %s881_s19, 272  }
 0x212   : > { %10879 = vsyncadd (%p13174_p11), %s881_s19, 4294967024  ;;  %s892_s3 = scalar_lea.vmem [#allocation23], %s11756_s13  ;;  %p13175_p5 = scmp.eq.s32.totalorder %s13171_s4, 0 }
 0x214   : > { %10881 = dma.done.wait (%p13175_p5), [#allocation25], 32   ;;  %p13176_p6 = pmov %p13175_p5 }
 0x215   : > { %s11804_s5 = scalar_lea.vmem [#allocation27], %s9604_s20  ;;  %s13177_s15 = sld [smem:[#allocation42_spill]] }
 0x216   : > { %10883 = vsyncadd (%p13176_p6), [#allocation25], 4294967264 }
 0x21b   : > { %p9619_p10 = scmp.ne.s32.totalorder %s13177_s15, 0 }
 0x21c   : > { %v1016_v0 = vld [vmem:[%s11730_s18] sm:$0xff] (!%p9619_p10)  ;;  %vm1018_vm0 = vcmask (!%p9619_p10), 261120   ;;  %v1017_v1 = vld [vmem:[%s11730_s18 + $0x8] sm:$0xff] (!%p9619_p10) }
 0x21d   : > { %1015 = sbr.rel (%p9619_p10) target bundleno = 548 (0x224), region = 144  ;;  %1019 = vst.msk [vmem:[#allocation2] sm:$0xff] (!%p9619_p10), %vm1018_vm0, %v1016_v0  ;;  %1020 = vst.msk [vmem:[#allocation2 + $0x8] sm:$0xff] (!%p9619_p10), %vm1018_vm0, %v1017_v1 }
 0x224 PF: > { %v10254_v2 = vld [vmem:[%s821_s1] sm:$0xff]   ;;  %v1088_v3 = vlaneseq  ;;  %v10951_v4 = vmov 0.0   ;;  %v10255_v5 = vld [vmem:[%s821_s1 + $0x8] sm:$0xff]   ;;  %vm10952_vm1 = vmmov 0   ;;  %vm1043_vm2 = vcmask 261120   ;;  %s10953_s20 = smov 32  }
 0x225   : > { %9811 = vmatprep.subr.bf16.mxu0 %v10951_v4  ;;  %9825 = vmatprep.subr.bf16.mxu1 %v10951_v4  ;;  %v1021_v6 = vld [vmem:[#allocation2] sm:$0xff]  ;;  %v1022_v7 = vld [vmem:[#allocation2 + $0x8] sm:$0xff]  ;;  %s10954_s18 = smov 112   ;;  %s10955_s4 = smov 120   ;;  %v10958_v25 = vmov 1983009808  }
 0x226   : > { %9812 = vmatpush3.bf16.msra.mxu0 %v10254_v2  ;;  %9815 = vmatprep.mubr.msk.bf16.mxu0 %vm10952_vm1, %v10951_v4  ;;  %v11817_v8 = vshrl.u32 %v1088_v3, 7  ;;  %v11821_v9 = vld [vmem:[%s11791_s28] sm:$0xff]  ;;  %v1026_v11 = vpack.c.bf16 %v1022_v7, %v1021_v6  ;;  %s10956_s29 = smov 104   ;;  %s10957_s1 = smov 96   ;;  %v1129_v26 = vunpack.c.l.s4 %v10958_v25  ;;  %v10959_v28 = vmov 1934713408  }
 0x227   : > { %9813 = vmatprep.subr.bf16.mxu0 %v10951_v4  ;;  %9827 = vmatprep.mubr.msk.bf16.mxu1 %vm10952_vm1, %v10951_v4  ;;  %v1161_v29 = vunpack.c.l.s4 %v10959_v28  ;;  %s10961_s16 = smov 64   ;;  %vm1876_vm3 = vcmask 1043456   ;;  %vm1872_vm4 = vcmask 64512   ;;  %s10963_s19 = smov 8   ;;  %vm2985_vm5 = vcmask 130048  }
 0x228   : > { %v1096_v10 = vsub.s32 1, %v11817_v8  ;;  %v1090_v13 = vsub.s32 0, %v11817_v8  ;;  %v1130_v30 = vunpack.c.0.s8 %v1129_v26  ;;  %vm2987_vm6 = vcmask 195584  }
 0x229   : > { %v1162_v33 = vunpack.c.0.s8 %v1161_v29  ;;  %vm9051_vm7 = vcmask 523264  }
 0x22a   : > { %9814 = vmatpush3.bf16.msra.mxu0 %v10255_v5  ;;  %v1097_v12 = vrot.slane %v11821_v9, %v1096_v10  ;;  %v11842_v16 = vrot.slane %v11821_v9, %v1090_v13  ;;  %v11860_v34 = vsub.s32 %v1130_v30, %v11817_v8 }
 0x22b   : > { %9819 = vmatprep.subr.bf16.mxu0 %v10951_v4  ;;  %v11863_v40 = vsub.s32 %v1162_v33, %v11817_v8 }
 0x22c   : > { %1099 = vrot.lane.b32.xlu0 %v1097_v12, %s10953_s20 }
 0x22d   : > { %9816 = vmatmul.mubr.msk.bf16.vlgmr.msra.gmra.mrb[0].mxu0 %vm1043_vm2, %v1026_v11 }
 0x22e   : > { %9821 = vmatprep.mubr.msk.bf16.mxu0 %vm10952_vm1, %v10951_v4 }
 0x29e   : > { %v11835_v14 = vpop.permute.xlu0 %1099 }
 0x300   : > { %v11837_v15 = vpop.f32.mrb[0].mxu0 }
 0x301   : > { %v1102_v17 = vadd.f32 %v11835_v14, %v11837_v15  ;;  %v9817_v18 = vpop.f32.mrb[1].mxu0  ;;  %v11878_v62 = vadd.f32 %v11842_v16, %v11837_v15 }
 0x302   : > { %v11846_v19 = vpop.f32.mrb[2].mxu0 }
 0x303   : > { %v11850_v20 = vadd.f32 %v11842_v16, %v11846_v19  ;;  %1205 = vrot.lane.b32.xlu1 %v1102_v17, %s10954_s18  ;;  %1203 = vrot.lane.b32.xlu0 %v1102_v17, %s10955_s4  ;;  %v9818_v21 = vpop.f32.mrb[3].mxu0 }
 0x307   : > { %1207 = vrot.lane.b32.xlu1 %v1102_v17, %s10956_s29  ;;  %1209 = vrot.lane.b32.xlu0 %v1102_v17, %s10957_s1 }
 0x375   : > { %v1206_v22 = vpop.permute.xlu1 %1205  ;;  %v1204_v23 = vpop.permute.xlu0 %1203 }
 0x376   : > { %1213 = vrot.lane.b32.xlu0 %v1206_v22, %s10957_s1  ;;  %1211 = vrot.lane.b32.xlu1 %v1204_v23, %s10957_s1 }
 0x379   : > { %v1208_v24 = vpop.permute.xlu1 %1207  ;;  %v1210_v27 = vpop.permute.xlu0 %1209 }
 0x37a   : > { %1215 = vrot.lane.b32.xlu1 %v1208_v24, %s10957_s1 }
 0x3e8   : > { %v1212_v31 = vpop.permute.xlu1 %1211  ;;  %v1214_v32 = vpop.permute.xlu0 %1213 }
 0x3e9   : > { %v1221_v35 = vcombine.low %v1210_v27, %v1214_v32  ;;  %v1222_v36 = vcombine.high %v1210_v27, %v1214_v32 }
 0x3eb   : > { %v1229_v41 = vrot.slane %v1221_v35, %v11860_v34  ;;  %v1236_v42 = vrot.slane %v1222_v36, %v11860_v34 }
 0x3ec   : > { %v1216_v37 = vpop.permute.xlu1 %1215 }
 0x3ed   : > { %v1237_v38 = vcombine.low %v1212_v31, %v1216_v37  ;;  %v1238_v39 = vcombine.high %v1212_v31, %v1216_v37 }
 0x3ef   : > { %v1245_v43 = vrot.slane %v1237_v38, %v11860_v34  ;;  %v1252_v44 = vrot.slane %v1238_v39, %v11860_v34 }
 0x3f1   : > { %v1269_v45 = vcombine.low %v1236_v42, %v1252_v44  ;;  %v1253_v46 = vcombine.low %v1229_v41, %v1245_v43  ;;  %v1270_v47 = vcombine.high %v1236_v42, %v1252_v44  ;;  %v1254_v48 = vcombine.high %v1229_v41, %v1245_v43 }
 0x3f2   : > { %v10960_v41 = vmov 0  }
 0x3f3   : > { %v1277_v49 = vrot.slane %v1269_v45, %v11863_v40  ;;  %v1261_v50 = vrot.slane %v1253_v46, %v11863_v40  ;;  %v1284_v53 = vrot.slane %v1270_v47, %v11863_v40  ;;  %v1268_v54 = vrot.slane %v1254_v48, %v11863_v40 }
 0x3f5   : > { %v1293_v51 = vpack.c.bf16 %v1277_v49, %v1277_v49  ;;  %v1289_v52 = vpack.c.bf16 %v1261_v50, %v1261_v50  ;;  %v1295_v55 = vpack.c.bf16 %v1284_v53, %v1284_v53  ;;  %v1291_v56 = vpack.c.bf16 %v1268_v54, %v1268_v54 }
 0x3f6   : > { %v1286_v57 = vcombine.high %v1268_v54, %v10951_v4  ;;  %v1285_v58 = vcombine.high %v1261_v50, %v10951_v4  ;;  %v1287_v61 = vcombine.high %v1277_v49, %v10951_v4  ;;  %v1288_v0 = vcombine.high %v1284_v53, %v10951_v4 }
 0x3f7   : > { %1518 = vxpose.xlu1.c.b16.start.end [1/1] (short) (narrow) %v1293_v51, 16  ;;  %1454 = vxpose.xlu0.c.b16.start.end [1/1] (short) (narrow) %v1289_v52, 16 }
 0x3f8   : > { %v1292_v59 = vpack.c.bf16 %v1286_v57, %v1286_v57  ;;  %v1290_v60 = vpack.c.bf16 %v1285_v58, %v1285_v58  ;;  %v1294_v63 = vpack.c.bf16 %v1287_v61, %v1287_v61  ;;  %v1296_v1 = vpack.c.bf16 %v1288_v0, %v1288_v0 }
 0x3f9   : > { %v1106_v58 = vsub.s32 2, %v11817_v8 }
 0x3fb   : > { %1550 = vxpose.xlu1.c.b16.start.end [1/1] (short) (narrow) %v1295_v55, 16  ;;  %1486 = vxpose.xlu0.c.b16.start.end [1/1] (short) (narrow) %v1291_v56, 16 }
 0x3ff   : > { %1502 = vxpose.xlu0.c.b16.start.end [1/1] (short) (narrow) %v1292_v59, 16  ;;  %1470 = vxpose.xlu1.c.b16.start.end [1/1] (short) (narrow) %v1290_v60, 16  ;;  %v1107_v59 = vrot.slane %v11821_v9, %v1106_v58 }
 0x403   : > { %1534 = vxpose.xlu0.c.b16.start.end [1/1] (short) (narrow) %v1294_v63, 16  ;;  %1117 = vrot.lane.b32.xlu1 %v11878_v62, %s10955_s4 }
 0x407   : > { %1566 = vxpose.xlu0.c.b16.start.end [1/1] (short) (narrow) %v1296_v1, 16  ;;  %1123 = vrot.lane.b32.xlu1 %v11878_v62, %s10956_s29 }
 0x410   : > { %1120 = vrot.lane.b32.xlu0 %v11878_v62, %s10954_s18 }
 0x45d   : > { %v1462_v2 = vpop.trf.xlu0  ;;  %v1526_v3 = vpop.trf.xlu1 }
 0x45e   : > { %v1582_v17 = vcombine.low %v1462_v2, %v1526_v3 }
 0x460   : > { %v1589_v23 = vrot.slane %v1582_v17, %v11860_v34 }
 0x461   : > { %v1494_v5 = vpop.trf.xlu0  ;;  %v1558_v6 = vpop.trf.xlu1 }
 0x462   : > { %v1590_v11 = vcombine.low %v1494_v5, %v1558_v6 }
 0x464   : > { %v1597_v18 = vrot.slane %v1590_v11, %v11860_v34 }
 0x465   : > { %v1510_v7 = vpop.trf.xlu0  ;;  %v1478_v16 = vpop.trf.xlu1 }
 0x466   : > { %v1598_v25 = vcombine.low %v1589_v23, %v1597_v18  ;;  %v1599_v26 = vcombine.high %v1589_v23, %v1597_v18 }
 0x468   : > { %v1606_v31 = vrot.slane %v1598_v25, %v11863_v40  ;;  %v1613_v32 = vrot.slane %v1599_v26, %v11863_v40 }
 0x469   : > { %v1542_v12 = vpop.trf.xlu0 }
 0x46a   : > { %v1616_v21 = vcombine.low %v1478_v16, %v1542_v12  ;;  %v1654_v43 = vshrl.u32 %v1606_v31, 16  ;;  %v1670_v44 = vshrl.u32 %v1613_v32, 16  ;;  %v1614_v45 = vcombine.high %v1606_v31, %v10960_v41 }
 0x46b   : > { %v1615_v51 = vcombine.high %v1613_v32, %v10960_v41 }
 0x46c   : > { %v1623_v27 = vrot.slane %v1616_v21, %v11860_v34  ;;  %v1662_v50 = vshrl.u32 %v1614_v45, 16 }
 0x46d   : > { %v1574_v22 = vpop.trf.xlu0  ;;  %v1678_v55 = vshrl.u32 %v1615_v51, 16 }
 0x46e   : > { %v1624_v24 = vcombine.low %v1510_v7, %v1574_v22 }
 0x470   : > { %v1631_v28 = vrot.slane %v1624_v24, %v11860_v34 }
 0x472   : > { %v1632_v29 = vcombine.low %v1623_v27, %v1631_v28  ;;  %v1633_v30 = vcombine.high %v1623_v27, %v1631_v28 }
 0x474   : > { %v1640_v33 = vrot.slane %v1632_v29, %v11863_v40  ;;  %v1647_v35 = vrot.slane %v1633_v30, %v11863_v40 }
 0x475   : > { %v1118_v60 = vpop.permute.xlu1 %1117 }
 0x476   : > { %v1668_v36 = vpack.i.b16 %v1647_v35, %v1613_v32  ;;  %v1652_v37 = vpack.i.b16 %v1640_v33, %v1606_v31  ;;  %v1655_v38 = vshrl.u32 %v1640_v33, 16  ;;  %v1671_v39 = vshrl.u32 %v1647_v35, 16 }
 0x477   : > { %v1648_v42 = vcombine.high %v1640_v33, %v10960_v41  ;;  %v1649_v49 = vcombine.high %v1647_v35, %v10960_v41 }
 0x478   : > { %1746 = vxpose.xlu0.c.b16.start.end [1/1] (short) (narrow) %v1668_v36, 16  ;;  %1682 = vxpose.xlu1.c.b16.start.end [1/1] (short) (narrow) %v1652_v37, 16  ;;  %v1656_v46 = vpack.i.b16 %v1655_v38, %v1654_v43  ;;  %v1672_v47 = vpack.i.b16 %v1671_v39, %v1670_v44 }
 0x479   : > { %v1663_v48 = vshrl.u32 %v1648_v42, 16  ;;  %v1660_v52 = vpack.i.b16 %v1648_v42, %v1614_v45  ;;  %v1679_v54 = vshrl.u32 %v1649_v49, 16  ;;  %v1676_v56 = vpack.i.b16 %v1649_v49, %v1615_v51  ;;  %v1124_v63 = vpop.permute.xlu1 %1123 }
 0x47a   : > { %v1142_v2 = vcombine.low %v1118_v60, %v1124_v63  ;;  %v1143_v3 = vcombine.high %v1118_v60, %v1124_v63 }
 0x47b   : > { %v1664_v53 = vpack.i.b16 %v1663_v48, %v1662_v50  ;;  %v1680_v57 = vpack.i.b16 %v1679_v54, %v1678_v55 }
 0x47c   : > { %1698 = vxpose.xlu0.c.b16.start.end [1/1] (short) (narrow) %v1656_v46, 16  ;;  %1762 = vxpose.xlu1.c.b16.start.end [1/1] (short) (narrow) %v1672_v47, 16  ;;  %v1150_v7 = vrot.slane %v1142_v2, %v11860_v34  ;;  %v1157_v9 = vrot.slane %v1143_v3, %v11860_v34 }
 0x480   : > { %1714 = vxpose.xlu0.c.b16.start.end [1/1] (short) (narrow) %v1660_v52, 16  ;;  %1730 = vxpose.xlu1.c.b16.start.end [1/1] (short) (narrow) %v1664_v53, 16 }
 0x482   : > { %v1121_v61 = vpop.permute.xlu0 %1120 }
 0x483   : > { %v1126_v0 = vcombine.low %v11878_v62, %v1121_v61  ;;  %v1127_v1 = vcombine.high %v11878_v62, %v1121_v61 }
 0x484   : > { %1778 = vxpose.xlu0.c.b16.start.end [1/1] (short) (narrow) %v1676_v56, 16  ;;  %1794 = vxpose.xlu1.c.b16.start.end [1/1] (short) (narrow) %v1680_v57, 16 }
 0x485   : > { %v1134_v5 = vrot.slane %v1126_v0, %v11860_v34  ;;  %v1141_v6 = vrot.slane %v1127_v1, %v11860_v34 }
 0x487   : > { %v1158_v11 = vcombine.low %v1134_v5, %v1150_v7  ;;  %v1159_v12 = vcombine.high %v1134_v5, %v1150_v7  ;;  %v1174_v16 = vcombine.low %v1141_v6, %v1157_v9  ;;  %v1175_v17 = vcombine.high %v1141_v6, %v1157_v9 }
 0x489   : > { %v1166_v18 = vrot.slane %v1158_v11, %v11863_v40  ;;  %v1173_v21 = vrot.slane %v1159_v12, %v11863_v40  ;;  %v1182_v62 = vrot.slane %v1174_v16, %v11863_v40  ;;  %v1189_v22 = vrot.slane %v1175_v17, %v11863_v40 }
 0x48b   : > { %v1190_v25 = vcombine.high %v1166_v18, %v10951_v4  ;;  %v1191_v26 = vcombine.high %v1173_v21, %v10951_v4  ;;  %v1192_v27 = vcombine.high %v1182_v62, %v10951_v4  ;;  %v1193_v28 = vcombine.high %v1189_v22, %v10951_v4 }
 0x48c   : > { %v9623_v33 = vpack.c.bf16 %v1182_v62, %v1166_v18  ;;  %v9624_v35 = vpack.c.bf16 %v1189_v22, %v1173_v21 }
 0x48d   : > { %1109 = vrot.lane.b32.xlu0 %v1107_v59, %s10961_s16  ;;  %v9625_v31 = vpack.c.bf16 %v1192_v27, %v1190_v25  ;;  %v9626_v32 = vpack.c.bf16 %v1193_v28, %v1191_v26 }
 0x48e   : > { %v1399_v44 = vrot.slane %v9623_v33, %v11860_v34  ;;  %v1407_v45 = vrot.slane %v9624_v35, %v11860_v34  ;;  %v1103_v33 = vadd.f32 %v11835_v14, %v11846_v19 }
 0x48f   : > { %v1424_v42 = vrot.slane %v9625_v31, %v11860_v34  ;;  %v1432_v43 = vrot.slane %v9626_v32, %v11860_v34 }
 0x490   : > { %v1408_v55 = vcombine.low %v1399_v44, %v1407_v45 }
 0x491   : > { %v1433_v52 = vcombine.low %v1424_v42, %v1432_v43 }
 0x492   : > { %v1415_v63 = vrot.slane %v1408_v55, %v11863_v40 }
 0x493   : > { %v1440_v61 = vrot.slane %v1433_v52, %v11863_v40 }
 0x494   : > { %v1445_v21 = vshrl.u32 %v1415_v63, 16  ;;  %v1416_v26 = vcombine.high %v1415_v63, %v10960_v41 }
 0x495   : > { %v1446_v9 = vshrl.u32 %v1440_v61, 16  ;;  %v1444_v18 = vpack.i.b16 %v1440_v61, %v1415_v63 }
 0x4de   : > { %v1754_v23 = vpop.trf.xlu0  ;;  %v1690_v24 = vpop.trf.xlu1 }
 0x4df   : > { %v1810_v38 = vcombine.low %v1690_v24, %v1754_v23  ;;  %v1447_v23 = vpack.i.b16 %v1446_v9, %v1445_v21  ;;  %v1441_v24 = vcombine.high %v1440_v61, %v10960_v41 }
 0x4e1   : > { %v1817_v48 = vrot.slane %v1810_v38, %v11860_v34  ;;  %v1452_v27 = vshrl.u32 %v1441_v24, 16 }
 0x4e2   : > { %v1706_v29 = vpop.trf.xlu0  ;;  %v1770_v30 = vpop.trf.xlu1 }
 0x4e3   : > { %v1835_v39 = vcombine.low %v1706_v29, %v1770_v30  ;;  %v1450_v29 = vpack.i.b16 %v1441_v24, %v1416_v26  ;;  %v1451_v30 = vshrl.u32 %v1416_v26, 16 }
 0x4e5   : > { %v1842_v49 = vrot.slane %v1835_v39, %v11860_v34  ;;  %v1453_v32 = vpack.i.b16 %v1452_v27, %v1451_v30 }
 0x4e6   : > { %v1722_v36 = vpop.trf.xlu0  ;;  %v1738_v37 = vpop.trf.xlu1 }
 0x4ea   : > { %v1786_v46 = vpop.trf.xlu0  ;;  %v1802_v47 = vpop.trf.xlu1 }
 0x4eb   : > { %v1818_v50 = vcombine.low %v1722_v36, %v1786_v46  ;;  %v1843_v51 = vcombine.low %v1738_v37, %v1802_v47 }
 0x4ed   : > { %v1825_v53 = vrot.slane %v1818_v50, %v11860_v34  ;;  %v1850_v54 = vrot.slane %v1843_v51, %v11860_v34 }
 0x4ef   : > { %v1826_v56 = vcombine.low %v1817_v48, %v1825_v53  ;;  %v1851_v57 = vcombine.low %v1842_v49, %v1850_v54 }
 0x4f1   : > { %v1833_v59 = vrot.slane %v1826_v56, %v11863_v40  ;;  %v1858_v60 = vrot.slane %v1851_v57, %v11863_v40 }
 0x4f3   : > { %v1862_v0 = vpack.i.b16 %v1858_v60, %v1833_v59  ;;  %v1863_v1 = vshrl.u32 %v1833_v59, 16  ;;  %v1864_v2 = vshrl.u32 %v1858_v60, 16  ;;  %v1834_v3 = vcombine.high %v1833_v59, %v10960_v41 }
 0x4f4   : > { %v1859_v5 = vcombine.high %v1858_v60, %v10960_v41 }
 0x4f5   : > { %v1878_v6 = vsel %vm1876_vm3, %v1862_v0, 0  ;;  %v1865_v7 = vpack.i.b16 %v1864_v2, %v1863_v1  ;;  %v1869_v11 = vshrl.u32 %v1834_v3, 16 }
 0x4f6   : > { %9820 = vmatpush3.bf16.msra.mxu0 %v1878_v6  ;;  %v1868_v12 = vpack.i.b16 %v1859_v5, %v1834_v3  ;;  %v1870_v16 = vshrl.u32 %v1859_v5, 16 }
 0x4f7   : > { %v1924_v17 = vsel %vm1876_vm3, %v1865_v7, 0  ;;  %9831 = vmatprep.subr.bf16.mxu0 %v10951_v4 }
 0x4f8   : > { %9826 = vmatpush3.bf16.msra.mxu1 %v1924_v17  ;;  %v1970_v62 = vsel %vm1876_vm3, %v1868_v12, 0  ;;  %v1871_v22 = vpack.i.b16 %v1870_v16, %v1869_v11 }
 0x4f9   : > { %9822 = vmatmul.mubr.msk.bf16.vlgmr.msra.gmra.mrb[4].mxu0 %vm1872_vm4, %v1444_v18  ;;  %9837 = vmatprep.subr.bf16.mxu1 %v10951_v4 }
 0x4fa   : > { %9832 = vmatpush3.bf16.msra.mxu0 %v1970_v62  ;;  %v2016_v25 = vsel %vm1876_vm3, %v1871_v22, 0  ;;  %9833 = vmatprep.mubr.msk.bf16.mxu0 %vm10952_vm1, %v10951_v4 }
 0x4fb   : > { %9828 = vmatmul.mubr.msk.bf16.vlgmr.msra.gmra.mrb[0].mxu1 %vm1872_vm4, %v1447_v23  ;;  %9843 = vmatprep.subr.bf16.mxu0 %v10951_v4 }
 0x4fc   : > { %9838 = vmatpush3.bf16.msra.mxu1 %v2016_v25  ;;  %9839 = vmatprep.mubr.msk.bf16.mxu1 %vm10952_vm1, %v10951_v4 }
 0x4fd   : > { %9849 = vmatprep.subr.bf16.mxu1 %v10951_v4 }
 0x4ff   : > { %v11948_v28 = vpop.permute.xlu0 %1109 }
 0x500   : > { %v1112_v31 = vadd.f32 %v11948_v28, %v11837_v15 }
 0x501   : > { %9834 = vmatmul.mubr.msk.bf16.vlgmr.msra.gmra.mrb[8].mxu0 %vm1872_vm4, %v1450_v29 }
 0x502   : > { %1302 = vrot.lane.b32.xlu0 %v1112_v31, %s10956_s29  ;;  %1298 = vrot.lane.b32.xlu1 %v1112_v31, %s10955_s4 }
 0x503   : > { %9840 = vmatmul.mubr.msk.bf16.vlgmr.msra.gmra.mrb[4].mxu1 %vm1872_vm4, %v1453_v32  ;;  %9845 = vmatprep.mubr.msk.bf16.mxu0 %vm10952_vm1, %v10951_v4 }
 0x504   : > { %9851 = vmatprep.mubr.msk.bf16.mxu1 %vm10952_vm1, %v10951_v4 }
 0x506   : > { %1300 = vrot.lane.b32.xlu1 %v1112_v31, %s10954_s18  ;;  %3081 = vrot.lane.b32.xlu0 %v1103_v33, %s10954_s18 }
 0x50a   : > { %3079 = vrot.lane.b32.xlu1 %v1103_v33, %s10955_s4 }
 0x50e   : > { %3083 = vrot.lane.b32.xlu1 %v1103_v33, %s10956_s29 }
 0x512   : > { %1304 = vrot.lane.b32.xlu1 %v1112_v31, %s10961_s16 }
 0x574   : > { %v1299_v15 = vpop.permute.xlu1 %1298  ;;  %v1303_v35 = vpop.permute.xlu0 %1302 }
 0x575   : > { %1306 = vrot.lane.b32.xlu0 %v1299_v15, %s10961_s16 }
 0x578   : > { %v1301_v36 = vpop.permute.xlu1 %1300  ;;  %v3082_v14 = vpop.permute.xlu0 %3081 }
 0x579   : > { %3085 = vrot.lane.b32.xlu0 %v1103_v33, %s10957_s1  ;;  %1308 = vrot.lane.b32.xlu1 %v1301_v36, %s10961_s16 }
 0x57c   : > { %v3080_v37 = vpop.permute.xlu1 %3079 }
 0x57d   : > { %3089 = vrot.lane.b32.xlu0 %v3082_v14, %s10957_s1  ;;  %1310 = vrot.lane.b32.xlu1 %v1303_v35, %s10961_s16 }
 0x580   : > { %v3084_v38 = vpop.permute.xlu1 %3083 }
 0x581   : > { %3087 = vrot.lane.b32.xlu1 %v3080_v37, %s10957_s1 }
 0x584   : > { %v1305_v57 = vpop.permute.xlu1 %1304 }
 0x585   : > { %3091 = vrot.lane.b32.xlu1 %v3084_v38, %s10957_s1 }
 0x5cc   : > { %v11974_v39 = vpop.f32.mrb[4].mxu0 }
 0x5cd   : > { %v9823_v42 = vpop.f32.mrb[5].mxu0 }
 0x5ce   : > { %v1917_v43 = vpop.f32.mrb[6].mxu0  ;;  %v11976_v44 = vpop.f32.mrb[0].mxu1 }
 0x5cf   : > { %v9824_v45 = vpop.f32.mrb[7].mxu0  ;;  %v9829_v46 = vpop.f32.mrb[1].mxu1 }
 0x5d0   : > { %v1963_v47 = vpop.f32.mrb[2].mxu1 }
 0x5d1   : > { %v9830_v48 = vpop.f32.mrb[3].mxu1 }
 0x5d4   : > { %v11978_v49 = vpop.f32.mrb[8].mxu0 }
 0x5d5   : > { %v9835_v50 = vpop.f32.mrb[9].mxu0 }
 0x5d6   : > { %v2009_v51 = vpop.f32.mrb[10].mxu0  ;;  %v11980_v52 = vpop.f32.mrb[4].mxu1 }
 0x5d7   : > { %v9836_v53 = vpop.f32.mrb[11].mxu0  ;;  %v9841_v54 = vpop.f32.mrb[5].mxu1 }
 0x5d8   : > { %v2055_v55 = vpop.f32.mrb[6].mxu1 }
 0x5d9   : > { %v9842_v56 = vpop.f32.mrb[7].mxu1 }
 0x5e7   : > { %v1307_v59 = vpop.permute.xlu0 %1306 }
 0x5eb   : > { %v1309_v60 = vpop.permute.xlu1 %1308  ;;  %v3086_v61 = vpop.permute.xlu0 %3085 }
 0x5ec   : > { %v1316_v63 = vcombine.low %v1305_v57, %v1309_v60  ;;  %v1317_v1 = vcombine.high %v1305_v57, %v1309_v60 }
 0x5ee   : > { %v1324_v5 = vrot.slane %v1316_v63, %v11860_v34  ;;  %v1331_v11 = vrot.slane %v1317_v1, %v11860_v34 }
 0x5ef   : > { %v1311_v0 = vpop.permute.xlu1 %1310  ;;  %v3090_v12 = vpop.permute.xlu0 %3089 }
 0x5f0   : > { %v1332_v2 = vcombine.low %v1307_v59, %v1311_v0  ;;  %v1333_v3 = vcombine.high %v1307_v59, %v1311_v0  ;;  %v3097_v62 = vcombine.low %v3086_v61, %v3090_v12  ;;  %v3098_v38 = vcombine.high %v3086_v61, %v3090_v12 }
 0x5f2   : > { %v1340_v6 = vrot.slane %v1332_v2, %v11860_v34  ;;  %v1347_v7 = vrot.slane %v1333_v3, %v11860_v34  ;;  %v3105_v32 = vrot.slane %v3097_v62, %v11860_v34  ;;  %v3112_v50 = vrot.slane %v3098_v38, %v11860_v34 }
 0x5f3   : > { %v3088_v9 = vpop.permute.xlu1 %3087 }
 0x5f4   : > { %v1348_v16 = vcombine.low %v1324_v5, %v1340_v6  ;;  %v1349_v17 = vcombine.high %v1324_v5, %v1340_v6  ;;  %v1364_v21 = vcombine.low %v1331_v11, %v1347_v7  ;;  %v1365_v31 = vcombine.high %v1331_v11, %v1347_v7 }
 0x5f6   : > { %v1356_v18 = vrot.slane %v1348_v16, %v11863_v40  ;;  %v1363_v26 = vrot.slane %v1349_v17, %v11863_v40  ;;  %v1372_v30 = vrot.slane %v1364_v21, %v11863_v40  ;;  %v1379_v14 = vrot.slane %v1365_v31, %v11863_v40 }
 0x5f7   : > { %v3092_v22 = vpop.permute.xlu1 %3091 }
 0x5f8   : > { %v3113_v23 = vcombine.low %v3088_v9, %v3092_v22  ;;  %v1384_v24 = vpack.c.bf16 %v1356_v18, %v1356_v18  ;;  %v1380_v25 = vcombine.high %v1356_v18, %v10951_v4  ;;  %v1386_v33 = vpack.c.bf16 %v1363_v26, %v1363_v26 }
 0x5f9   : > { %v1381_v15 = vcombine.high %v1363_v26, %v10951_v4  ;;  %v3114_v35 = vcombine.high %v3088_v9, %v3092_v22  ;;  %v1388_v36 = vpack.c.bf16 %v1372_v30, %v1372_v30  ;;  %v1382_v43 = vcombine.high %v1372_v30, %v10951_v4 }
 0x5fa   : > { %v3121_v27 = vrot.slane %v3113_v23, %v11860_v34  ;;  %2106 = vxpose.xlu0.c.b16.start.end [1/1] (short) (narrow) %v1384_v24, 16  ;;  %v1385_v29 = vpack.c.bf16 %v1380_v25, %v1380_v25  ;;  %v1390_v46 = vpack.c.bf16 %v1379_v14, %v1379_v14  ;;  %v1383_v53 = vcombine.high %v1379_v14, %v10951_v4 }
 0x5fb   : > { %v1387_v42 = vpack.c.bf16 %v1381_v15, %v1381_v15  ;;  %v3128_v45 = vrot.slane %v3114_v35, %v11860_v34  ;;  %v1389_v51 = vpack.c.bf16 %v1382_v43, %v1382_v43 }
 0x5fc   : > { %2122 = vxpose.xlu1.c.b16.start.end [1/1] (short) (narrow) %v1385_v29, 16  ;;  %v3129_v37 = vcombine.low %v3105_v32, %v3121_v27  ;;  %v3130_v48 = vcombine.high %v3105_v32, %v3121_v27  ;;  %v1391_v57 = vpack.c.bf16 %v1383_v53, %v1383_v53 }
 0x5fd   : > { %v3145_v56 = vcombine.low %v3112_v50, %v3128_v45  ;;  %v3146_v63 = vcombine.high %v3112_v50, %v3128_v45 }
 0x5fe   : > { %2138 = vxpose.xlu0.c.b16.start.end [1/1] (short) (narrow) %v1386_v33, 16  ;;  %v3137_v47 = vrot.slane %v3129_v37, %v11863_v40  ;;  %v3144_v55 = vrot.slane %v3130_v48, %v11863_v40 }
 0x5ff   : > { %v3153_v61 = vrot.slane %v3145_v56, %v11863_v40  ;;  %v3160_v3 = vrot.slane %v3146_v63, %v11863_v40 }
 0x600   : > { %2170 = vxpose.xlu1.c.b16.start.end [1/1] (short) (narrow) %v1388_v36, 16  ;;  %v3165_v54 = vpack.c.bf16 %v3137_v47, %v3137_v47  ;;  %v3161_v59 = vcombine.high %v3137_v47, %v10951_v4  ;;  %v3167_v60 = vpack.c.bf16 %v3144_v55, %v3144_v55  ;;  %v3162_v1 = vcombine.high %v3144_v55, %v10951_v4 }
 0x601   : > { %v3169_v2 = vpack.c.bf16 %v3153_v61, %v3153_v61  ;;  %v3163_v6 = vcombine.high %v3153_v61, %v10951_v4  ;;  %v3171_v7 = vpack.c.bf16 %v3160_v3, %v3160_v3  ;;  %v3164_v11 = vcombine.high %v3160_v3, %v10951_v4 }
 0x602   : > { %2154 = vxpose.xlu0.c.b16.start.end [1/1] (short) (narrow) %v1387_v42, 16  ;;  %v3166_v0 = vpack.c.bf16 %v3161_v59, %v3161_v59  ;;  %v3168_v5 = vpack.c.bf16 %v3162_v1, %v3162_v1 }
 0x603   : > { %v3170_v9 = vpack.c.bf16 %v3163_v6, %v3163_v6  ;;  %v3172_v12 = vpack.c.bf16 %v3164_v11, %v3164_v11 }
 0x604   : > { %2202 = vxpose.xlu1.c.b16.start.end [1/1] (short) (narrow) %v1390_v46, 16 }
 0x606   : > { %2186 = vxpose.xlu0.c.b16.start.end [1/1] (short) (narrow) %v1389_v51, 16 }
 0x608   : > { %3330 = vxpose.xlu1.c.b16.start.end [1/1] (short) (narrow) %v3165_v54, 16 }
 0x60a   : > { %2218 = vxpose.xlu0.c.b16.start.end [1/1] (short) (narrow) %v1391_v57, 16 }
 0x60c   : > { %3362 = vxpose.xlu1.c.b16.start.end [1/1] (short) (narrow) %v3167_v60, 16 }
 0x60e   : > { %3346 = vxpose.xlu0.c.b16.start.end [1/1] (short) (narrow) %v3166_v0, 16 }
 0x610   : > { %3394 = vxpose.xlu1.c.b16.start.end [1/1] (short) (narrow) %v3169_v2, 16 }
 0x612   : > { %3378 = vxpose.xlu0.c.b16.start.end [1/1] (short) (narrow) %v3168_v5, 16 }
 0x614   : > { %3426 = vxpose.xlu1.c.b16.start.end [1/1] (short) (narrow) %v3171_v7, 16 }
 0x616   : > { %3410 = vxpose.xlu0.c.b16.start.end [1/1] (short) (narrow) %v3170_v9, 16 }
 0x61a   : > { %3442 = vxpose.xlu0.c.b16.start.end [1/1] (short) (narrow) %v3172_v12, 16 }
 0x660   : > { %v2114_v16 = vpop.trf.xlu0 }
 0x662   : > { %v2130_v17 = vpop.trf.xlu1 }
 0x664   : > { %v2146_v18 = vpop.trf.xlu0 }
 0x666   : > { %v2178_v21 = vpop.trf.xlu1 }
 0x667   : > { %v2234_v23 = vcombine.low %v2114_v16, %v2178_v21 }
 0x668   : > { %v2162_v62 = vpop.trf.xlu0 }
 0x669   : > { %v2241_v29 = vrot.slane %v2234_v23, %v11860_v34 }
 0x66a   : > { %v2210_v22 = vpop.trf.xlu1 }
 0x66b   : > { %v2242_v24 = vcombine.low %v2146_v18, %v2210_v22 }
 0x66c   : > { %v2194_v25 = vpop.trf.xlu0 }
 0x66d   : > { %v2249_v26 = vrot.slane %v2242_v24, %v11860_v34  ;;  %v2268_v30 = vcombine.low %v2130_v17, %v2194_v25 }
 0x66e   : > { %v3338_v27 = vpop.trf.xlu1 }
 0x66f   : > { %v2250_v32 = vcombine.low %v2241_v29, %v2249_v26  ;;  %v2251_v35 = vcombine.high %v2241_v29, %v2249_v26  ;;  %v2275_v36 = vrot.slane %v2268_v30, %v11860_v34 }
 0x670   : > { %v2226_v31 = vpop.trf.xlu0 }
 0x671   : > { %v2276_v33 = vcombine.low %v2162_v62, %v2226_v31  ;;  %v2258_v43 = vrot.slane %v2250_v32, %v11863_v40  ;;  %v2265_v46 = vrot.slane %v2251_v35, %v11863_v40 }
 0x672   : > { %v3370_v15 = vpop.trf.xlu1 }
 0x673   : > { %v2283_v14 = vrot.slane %v2276_v33, %v11860_v34  ;;  %v2306_v54 = vshrl.u32 %v2258_v43, 16  ;;  %v2266_v59 = vcombine.high %v2258_v43, %v10960_v41  ;;  %v2322_v0 = vshrl.u32 %v2265_v46, 16 }
 0x674   : > { %v3354_v37 = vpop.trf.xlu0  ;;  %v2267_v11 = vcombine.high %v2265_v46, %v10960_v41 }
 0x675   : > { %v2284_v38 = vcombine.low %v2275_v36, %v2283_v14  ;;  %v2285_v42 = vcombine.high %v2275_v36, %v2283_v14  ;;  %v2314_v9 = vshrl.u32 %v2266_v59, 16 }
 0x676   : > { %v3402_v45 = vpop.trf.xlu1  ;;  %v2330_v24 = vshrl.u32 %v2267_v11, 16 }
 0x677   : > { %v2299_v47 = vrot.slane %v2285_v42, %v11863_v40  ;;  %v2292_v48 = vrot.slane %v2284_v38, %v11863_v40  ;;  %v3458_v50 = vcombine.low %v3338_v27, %v3402_v45 }
 0x678   : > { %v3386_v51 = vpop.trf.xlu0 }
 0x679   : > { %v2304_v53 = vpack.i.b16 %v2292_v48, %v2258_v43  ;;  %v2307_v55 = vshrl.u32 %v2292_v48, 16  ;;  %v2323_v56 = vshrl.u32 %v2299_v47, 16  ;;  %v2300_v60 = vcombine.high %v2292_v48, %v10960_v41  ;;  %v1114_v43 = vld [vmem:[%s803_s6] sm:$0xf] }
 0x67a   : > { %v3434_v57 = vpop.trf.xlu1  ;;  %v3465_v1 = vrot.slane %v3458_v50, %v11860_v34  ;;  %v2301_v7 = vcombine.high %v2299_v47, %v10960_v41  ;;  %v2320_v27 = vpack.i.b16 %v2299_v47, %v2265_v46 }
 0x67b   : > { %v3466_v61 = vcombine.low %v3370_v15, %v3434_v57  ;;  %2334 = vxpose.xlu1.c.b16.start.end [1/1] (short) (narrow) %v2304_v53, 16  ;;  %v2308_v63 = vpack.i.b16 %v2307_v55, %v2306_v54  ;;  %v2324_v5 = vpack.i.b16 %v2323_v56, %v2322_v0  ;;  %v2315_v6 = vshrl.u32 %v2300_v60, 16 }
 0x67c   : > { %v3418_v2 = vpop.trf.xlu0  ;;  %v2312_v18 = vpack.i.b16 %v2300_v60, %v2266_v59  ;;  %v2331_v23 = vshrl.u32 %v2301_v7, 16  ;;  %v2328_v35 = vpack.i.b16 %v2301_v7, %v2267_v11  ;;  %v1115_v59 = vunpack.c.l.bf16 %v1114_v43 }
 0x67d   : > { %v3473_v3 = vrot.slane %v3466_v61, %v11860_v34  ;;  %2350 = vxpose.xlu0.c.b16.start.end [1/1] (short) (narrow) %v2308_v63, 16  ;;  %v3492_v17 = vcombine.low %v3354_v37, %v3418_v2  ;;  %v2316_v22 = vpack.i.b16 %v2315_v6, %v2314_v9 }
 0x67e   : > { %v2332_v33 = vpack.i.b16 %v2331_v23, %v2330_v24  ;;  %v1961_v63 = vadd.f32 %v11976_v44, %v1115_v59  ;;  %v2007_v2 = vadd.f32 %v11978_v49, %v1115_v59 }
 0x67f   : > { %v3474_v12 = vcombine.low %v3465_v1, %v3473_v3  ;;  %v3475_v16 = vcombine.high %v3465_v1, %v3473_v3  ;;  %2414 = vxpose.xlu1.c.b16.start.end [1/1] (short) (narrow) %v2324_v5, 16  ;;  %v3499_v25 = vrot.slane %v3492_v17, %v11860_v34  ;;  %v1915_v1 = vadd.f32 %v11974_v39, %v1115_v59 }
 0x680   : > { %v3450_v21 = vpop.trf.xlu0  ;;  %v2061_v0 = vsel %vm1872_vm4, %v1961_v63, -inf  ;;  %v2053_v5 = vadd.f32 %v11980_v52, %v1115_v59  ;;  %v2064_v6 = vsel %vm1872_vm4, %v2007_v2, -inf }
 0x681   : > { %v3500_v62 = vcombine.low %v3386_v51, %v3450_v21  ;;  %2366 = vxpose.xlu0.c.b16.start.end [1/1] (short) (narrow) %v2312_v18, 16  ;;  %v3482_v29 = vrot.slane %v3474_v12, %v11863_v40  ;;  %v12024_v30 = vrot.slane %v3475_v16, %v11863_v40  ;;  %v2058_v3 = vsel %vm1872_vm4, %v1915_v1, -inf }
 0x682   : > { %v2067_v7 = vsel %vm1872_vm4, %v2053_v5, -inf }
 0x683   : > { %v3507_v26 = vrot.slane %v3500_v62, %v11860_v34  ;;  %2382 = vxpose.xlu1.c.b16.start.end [1/1] (short) (narrow) %v2316_v22, 16  ;;  %v3490_v14 = vcombine.high %v3482_v29, %v10960_v41  ;;  %v12033_v37 = vcombine.high %v12024_v30, %v10960_v41  ;;  %v3546_v46 = vshrl.u32 %v12024_v30, 16 }
 0x684   : > { %v3530_v44 = vshrl.u32 %v3482_v29, 16 }
 0x685   : > { %v3508_v31 = vcombine.low %v3499_v25, %v3507_v26  ;;  %v3509_v32 = vcombine.high %v3499_v25, %v3507_v26  ;;  %2398 = vxpose.xlu0.c.b16.start.end [1/1] (short) (narrow) %v2320_v27, 16  ;;  %v3538_v51 = vshrl.u32 %v3490_v14, 16  ;;  %v3554_v56 = vshrl.u32 %v12033_v37, 16 }
 0x687   : > { %v12027_v15 = vrot.slane %v3509_v32, %v11863_v40  ;;  %2446 = vxpose.xlu1.c.b16.start.end [1/1] (short) (narrow) %v2332_v33, 16  ;;  %v3516_v36 = vrot.slane %v3508_v31, %v11863_v40 }
 0x689   : > { %2430 = vxpose.xlu0.c.b16.start.end [1/1] (short) (narrow) %v2328_v35, 16  ;;  %v3524_v38 = vcombine.high %v3516_v36, %v10960_v41  ;;  %v3544_v42 = vpack.i.b16 %v12027_v15, %v12024_v30  ;;  %v12042_v45 = vcombine.high %v12027_v15, %v10960_v41  ;;  %v3547_v47 = vshrl.u32 %v12027_v15, 16 }
 0x68a   : > { %v3528_v48 = vpack.i.b16 %v3516_v36, %v3482_v29  ;;  %v3531_v9 = vshrl.u32 %v3516_v36, 16 }
 0x68b   : > { %v3536_v50 = vpack.i.b16 %v3524_v38, %v3490_v14  ;;  %v3539_v53 = vshrl.u32 %v3524_v38, 16  ;;  %v3552_v54 = vpack.i.b16 %v12042_v45, %v12033_v37  ;;  %v12048_v55 = vpack.i.b16 %v3547_v47, %v3546_v46 }
 0x68c   : > { %v3555_v57 = vshrl.u32 %v12042_v45, 16  ;;  %v3532_v11 = vpack.i.b16 %v3531_v9, %v3530_v44 }
 0x68d   : > { %3558 = vxpose.xlu0.c.b16.start.end [1/1] (short) (narrow) %v3528_v48, 16  ;;  %v3540_v60 = vpack.i.b16 %v3539_v53, %v3538_v51  ;;  %v1113_v53 = vadd.f32 %v11948_v28, %v11846_v19 }
 0x68e   : > { %v12052_v61 = vpack.i.b16 %v3555_v57, %v3554_v56 }
 0x694   : > { %2062 = vmax.xlane.f32.xlu1 %v2061_v0 }
 0x69a   : > { %2059 = vmax.xlane.f32.xlu0 %v2058_v3 }
 0x69e   : > { %2065 = vmax.xlane.f32.xlu0 %v2064_v6 }
 0x6a2   : > { %2068 = vmax.xlane.f32.xlu0 %v2067_v7 }
 0x6c1   : > { %3574 = vxpose.xlu1.c.b16.start.end [1/1] (short) (narrow) %v3532_v11, 16 }
 0x6cf   : > { %3590 = vxpose.xlu0.c.b16.start.end [1/1] (short) (narrow) %v3536_v50, 16 }
 0x6e1   : > { %v2342_v39 = vpop.trf.xlu1 }
 0x6e3   : > { %v2358_v12 = vpop.trf.xlu0 }
 0x6e5   : > { %v2422_v49 = vpop.trf.xlu1 }
 0x6e7   : > { %v2374_v16 = vpop.trf.xlu0 }
 0x6e9   : > { %v2390_v18 = vpop.trf.xlu1 }
 0x6eb   : > { %v2406_v17 = vpop.trf.xlu0 }
 0x6ec   : > { %v2462_v30 = vcombine.low %v2342_v39, %v2406_v17 }
 0x6ed   : > { %v2454_v62 = vpop.trf.xlu1 }
 0x6ee   : > { %v2469_v19 = vrot.slane %v2462_v30, %v11860_v34 }
 0x6ef   : > { %v2438_v21 = vpop.trf.xlu0 }
 0x6f0   : > { %v2470_v15 = vcombine.low %v2374_v16, %v2438_v21 }
 0x6f2   : > { %v2477_v28 = vrot.slane %v2470_v15, %v11860_v34 }
 0x6f3   : > { %v12062_v22 = vpop.trf.xlu0 }
 0x721   : > { %v2063_v52 = vpop.xlane.xlu1 %2062 }
 0x722   : > { %v2071_v23 = vsub.f32 %v1961_v63, %v2063_v52 }
 0x724   : > { %v2076_v24 = vmul.f32 1.442695, %v2071_v23 }
 0x726   : > { %10271 = vpow2.f32 %v2076_v24 }
 0x727   : > { %v2060_v25 = vpop.xlane.xlu0 %2059  ;;  %v12092_v59 = vpop.trf.xlu1 }
 0x728   : > { %v2070_v26 = vsub.f32 %v1915_v1, %v2060_v25 }
 0x72a   : > { %v2074_v27 = vmul.f32 1.442695, %v2070_v26 }
 0x72b   : > { %v2066_v35 = vpop.xlane.xlu0 %2065 }
 0x72c   : > { %10273 = vpow2.f32 %v2074_v27  ;;  %v2072_v47 = vsub.f32 %v2007_v2, %v2066_v35 }
 0x72e   : > { %v2078_v48 = vmul.f32 1.442695, %v2072_v47 }
 0x72f   : > { %v2069_v36 = vpop.xlane.xlu0 %2068 }
 0x730   : > { %v10272_v29 = vpop.eup %10271  ;;  %v2073_v14 = vsub.f32 %v2053_v5, %v2069_v36 }
 0x731   : > { %v2085_v31 = vsel %vm1872_vm4, %v10272_v29, 0.0 }
 0x732   : > { %2086 = vadd.xlane.f32.xlu0 %v2085_v31  ;;  %v2080_v38 = vmul.f32 1.442695, %v2073_v14 }
 0x734   : > { %10275 = vpow2.f32 %v2080_v38 }
 0x735   : > { %10277 = vpow2.f32 %v2078_v48  ;;  %v12089_v56 = vpop.trf.xlu0 }
 0x736   : > { %v10274_v32 = vpop.eup %10273 }
 0x737   : > { %v2082_v33 = vsel %vm1872_vm4, %v10274_v32, 0.0 }
 0x738   : > { %2083 = vadd.xlane.f32.xlu1 %v2082_v33 }
 0x73e   : > { %v12068_v43 = vpop.eup %10275 }
 0x73f   : > { %v2091_v46 = vsel %vm1872_vm4, %v12068_v43, 0.0  ;;  %v12076_v50 = vpop.eup %10277 }
 0x740   : > { %v2088_v51 = vsel %vm1872_vm4, %v12076_v50, 0.0 }
 0x748   : > { %2996 = vrot.lane.b32.xlu0 %v11850_v20, %s10954_s18 }
 0x765   : > { %3606 = vxpose.xlu1.c.b16.start.end [1/1] (short) (narrow) %v3540_v60, 16  ;;  %v2487_v60 = vcombine.low %v2358_v12, %v2422_v49 }
 0x767   : > { %2092 = vadd.xlane.f32.xlu0 %v2091_v46  ;;  %v2494_v37 = vrot.slane %v2487_v60, %v11860_v34 }
 0x769   : > { %2993 = vrot.lane.b32.xlu1 %v11850_v20, %s10955_s4 }
 0x76d   : > { %2999 = vrot.lane.b32.xlu1 %v11850_v20, %s10956_s29 }
 0x791   : > { %2089 = vadd.xlane.f32.xlu1 %v2088_v51 }
 0x794   : > { %3622 = vxpose.xlu0.c.b16.start.end [1/1] (short) (narrow) %v3544_v42, 16  ;;  %v2495_v42 = vcombine.low %v2390_v18, %v2454_v62 }
 0x796   : > { %v2502_v45 = vrot.slane %v2495_v42, %v11860_v34 }
 0x798   : > { %3654 = vxpose.xlu0.c.b16.start.end [1/1] (short) (narrow) %v3552_v54, 16  ;;  %v2503_v63 = vcombine.low %v2494_v37, %v2502_v45 }
 0x79a   : > { %v2510_v2 = vrot.slane %v2503_v63, %v11863_v40 }
 0x79c   : > { %v2516_v9 = vshrl.u32 %v2510_v2, 16  ;;  %v12121_v23 = vcombine.high %v2510_v2, %v10960_v41 }
 0x7a1   : > { %3174 = vrot.lane.b32.xlu0 %v1113_v53, %s10955_s4 }
 0x7be   : > { %3638 = vxpose.xlu1.c.b16.start.end [1/1] (short) (narrow) %v12048_v55, 16  ;;  %v2478_v55 = vcombine.low %v2469_v19, %v2477_v28 }
 0x7bf   : > { %v2087_v57 = vpop.xlane.xlu0 %2086 }
 0x7c0   : > { %10279 = vrcp.f32 %v2087_v57 }
 0x7c2   : > { %3670 = vxpose.xlu1.c.b16.start.end [1/1] (short) (narrow) %v12052_v61, 16  ;;  %v2485_v61 = vrot.slane %v2478_v55, %v11863_v40 }
 0x7c3   : > { %v2997_v49 = vpop.permute.xlu0 %2996 }
 0x7c4   : > { %v2515_v7 = vshrl.u32 %v2485_v61, 16  ;;  %v2514_v16 = vpack.i.b16 %v2510_v2, %v2485_v61  ;;  %v12118_v52 = vcombine.high %v2485_v61, %v10960_v41  ;;  %v3002_v38 = vcombine.low %v11850_v20, %v2997_v49 }
 0x7c5   : > { %v2084_v54 = vpop.xlane.xlu1 %2083 }
 0x7c6   : > { %10281 = vrcp.f32 %v2084_v54  ;;  %3176 = vrot.lane.b32.xlu1 %v1113_v53, %s10954_s18  ;;  %v2517_v39 = vpack.i.b16 %v2516_v9, %v2515_v7  ;;  %v2521_v27 = vshrl.u32 %v12118_v52, 16  ;;  %v3010_v51 = vrot.slane %v3002_v38, %v11860_v34 }
 0x7ca   : > { %v10280_v0 = vpop.eup %10279  ;;  %3178 = vrot.lane.b32.xlu1 %v1113_v53, %s10956_s29 }
 0x7cb   : > { %v2099_v1 = vmul.f32 %v10280_v0, %v10272_v29  ;;  %v12114_v21 = vpop.trf.xlu1  ;;  %v2522_v29 = vshrl.u32 %v12121_v23, 16 }
 0x7cd   : > { %v2103_v3 = vpack.c.bf16 %v2099_v1, %v2099_v1 }
 0x7ce   : > { %3180 = vrot.lane.b32.xlu1 %v1113_v53, %s10961_s16 }
 0x7cf   : > { %v2574_v5 = vsel %vm1872_vm4, %v2103_v3, 0 }
 0x7d0   : > { %v10282_v6 = vpop.eup %10281  ;;  %9850 = vmatpush3.bf16.xpose.msra.mxu1 %v2574_v5 }
 0x7d1   : > { %v2098_v44 = vmul.f32 %v10282_v6, %v10274_v32  ;;  %9861 = vmatprep.subr.bf16.mxu1 %v10951_v4  ;;  %v2523_v32 = vpack.i.b16 %v2522_v29, %v2521_v27 }
 0x7d3   : > { %v2102_v11 = vpack.c.bf16 %v2098_v44, %v2098_v44 }
 0x7d5   : > { %v2528_v12 = vsel %vm1872_vm4, %v2102_v11, 0 }
 0x7d6   : > { %9844 = vmatpush3.bf16.xpose.msra.mxu0 %v2528_v12 }
 0x7d7   : > { %9852 = vmatmul.mubr.msk.bf16.vlgmr.msra.gmra.mrb[8].mxu1 %vm1872_vm4, %v2517_v39  ;;  %9855 = vmatprep.subr.bf16.mxu0 %v10951_v4 }
 0x7d8   : > { %9863 = vmatprep.mubr.msk.bf16.mxu1 %vm10952_vm1, %v10951_v4 }
 0x7db   : > { %v2994_v26 = vpop.permute.xlu1 %2993 }
 0x7dd   : > { %9846 = vmatmul.mubr.msk.bf16.vlgmr.msra.gmra.mrb[12].mxu0 %vm1872_vm4, %v2514_v16 }
 0x7de   : > { %9857 = vmatprep.mubr.msk.bf16.mxu0 %vm10952_vm1, %v10951_v4 }
 0x7df   : > { %v3000_v33 = vpop.permute.xlu1 %2999 }
 0x7e0   : > { %v3018_v35 = vcombine.low %v2994_v26, %v3000_v33  ;;  %v3019_v36 = vcombine.high %v2994_v26, %v3000_v33 }
 0x7e2   : > { %v3026_v46 = vrot.slane %v3018_v35, %v11860_v34  ;;  %v3033_v47 = vrot.slane %v3019_v36, %v11860_v34 }
 0x7e4   : > { %v3034_v57 = vcombine.low %v3010_v51, %v3026_v46  ;;  %v3035_v60 = vcombine.high %v3010_v51, %v3026_v46  ;;  %v2520_v51 = vpack.i.b16 %v12121_v23, %v12118_v52 }
 0x7e6   : > { %v3042_v42 = vrot.slane %v3034_v57, %v11863_v40  ;;  %v3049_v37 = vrot.slane %v3035_v60, %v11863_v40 }
 0x7e8   : > { %v3066_v28 = vcombine.high %v3042_v42, %v10951_v4  ;;  %v3067_v45 = vcombine.high %v3049_v37, %v10951_v4 }
 0x7f4   : > { %v2093_v17 = vpop.xlane.xlu0 %2092 }
 0x7f5   : > { %10283 = vrcp.f32 %v2093_v17 }
 0x7fa   : > { %v3630_v31 = vpop.trf.xlu0 }
 0x7fb   : > { %v3686_v1 = vcombine.low %v12062_v22, %v3630_v31 }
 0x7fd   : > { %v3693_v9 = vrot.slane %v3686_v1, %v11860_v34 }
 0x7fe   : > { %v3662_v14 = vpop.trf.xlu0 }
 0x7ff   : > { %v10284_v18 = vpop.eup %10283  ;;  %v3694_v0 = vcombine.low %v12089_v56, %v3662_v14 }
 0x800   : > { %v2101_v62 = vmul.f32 %v10284_v18, %v12068_v43  ;;  %v3003_v43 = vcombine.high %v11850_v20, %v2997_v49 }
 0x801   : > { %v3701_v3 = vrot.slane %v3694_v0, %v11860_v34 }
 0x802   : > { %v2105_v24 = vpack.c.bf16 %v2101_v62, %v2101_v62  ;;  %v3017_v53 = vrot.slane %v3003_v43, %v11860_v34 }
 0x803   : > { %v3702_v12 = vcombine.low %v3693_v9, %v3701_v3 }
 0x804   : > { %v2666_v25 = vsel %vm1872_vm4, %v2105_v24, 0  ;;  %v3050_v30 = vcombine.low %v3017_v53, %v3033_v47  ;;  %v3051_v15 = vcombine.high %v3017_v53, %v3033_v47 }
 0x805   : > { %9862 = vmatpush3.bf16.xpose.msra.mxu1 %v2666_v25  ;;  %v3709_v24 = vrot.slane %v3702_v12, %v11863_v40 }
 0x806   : > { %9873 = vmatprep.subr.bf16.mxu1 %v10951_v4  ;;  %v3058_v20 = vrot.slane %v3050_v30, %v11863_v40  ;;  %v3065_v19 = vrot.slane %v3051_v15, %v11863_v40 }
 0x807   : > { %v3739_v35 = vshrl.u32 %v3709_v24, 16 }
 0x808   : > { %v3068_v55 = vcombine.high %v3058_v20, %v10951_v4  ;;  %v3069_v63 = vcombine.high %v3065_v19, %v10951_v4  ;;  %v9638_v6 = vpack.c.bf16 %v3058_v20, %v3042_v42  ;;  %v9639_v7 = vpack.c.bf16 %v3065_v19, %v3049_v37 }
 0x80a   : > { %v9640_v61 = vpack.c.bf16 %v3068_v55, %v3066_v28  ;;  %v9641_v2 = vpack.c.bf16 %v3069_v63, %v3067_v45  ;;  %v3275_v22 = vrot.slane %v9638_v6, %v11860_v34  ;;  %v3283_v49 = vrot.slane %v9639_v7, %v11860_v34 }
 0x80c   : > { %9864 = vmatmul.mubr.msk.bf16.vlgmr.msra.gmra.mrb[12].mxu1 %vm1872_vm4, %v2523_v32  ;;  %v3300_v44 = vrot.slane %v9640_v61, %v11860_v34  ;;  %v3308_v11 = vrot.slane %v9641_v2, %v11860_v34  ;;  %v3284_v29 = vcombine.low %v3275_v22, %v3283_v49 }
 0x80d   : > { %9875 = vmatprep.mubr.msk.bf16.mxu1 %vm10952_vm1, %v10951_v4 }
 0x80e   : > { %v3309_v62 = vcombine.low %v3300_v44, %v3308_v11 }
 0x810   : > { %v3316_v33 = vrot.slane %v3309_v62, %v11863_v40 }
 0x812   : > { %v3322_v46 = vshrl.u32 %v3316_v33, 16  ;;  %v3317_v42 = vcombine.high %v3316_v33, %v10960_v41 }
 0x813   : > { %v3175_v48 = vpop.permute.xlu0 %3174 }
 0x814   : > { %3182 = vrot.lane.b32.xlu0 %v3175_v48, %s10961_s16  ;;  %v3328_v19 = vshrl.u32 %v3317_v42, 16 }
 0x81e   : > { %v2090_v54 = vpop.xlane.xlu1 %2089 }
 0x81f   : > { %10285 = vrcp.f32 %v2090_v54 }
 0x824   : > { %v3646_v5 = vpop.trf.xlu1 }
 0x825   : > { %v3711_v39 = vcombine.low %v12092_v59, %v3646_v5 }
 0x827   : > { %v3718_v25 = vrot.slane %v3711_v39, %v11860_v34  ;;  %v9637_v39 = vld [vmem:[%s803_s6 + $0x4] sm:$0xf]  ;;  %s10962_s6 = smov 16  }
 0x828   : > { %v3678_v56 = vpop.trf.xlu1 }
 0x829   : > { %v10286_v16 = vpop.eup %10285  ;;  %v3719_v17 = vcombine.low %v12114_v21, %v3678_v56  ;;  %v3710_v21 = vcombine.high %v3709_v24, %v10960_v41 }
 0x82a   : > { %v2100_v18 = vmul.f32 %v10286_v16, %v12076_v50  ;;  %v3291_v50 = vrot.slane %v3284_v29, %v11863_v40  ;;  %v2991_v16 = vunpack.c.l.bf16 %v9637_v39 }
 0x82b   : > { %v3726_v26 = vrot.slane %v3719_v17, %v11860_v34  ;;  %v3745_v47 = vshrl.u32 %v3710_v21, 16 }
 0x82c   : > { %v2104_v27 = vpack.c.bf16 %v2100_v18, %v2100_v18  ;;  %v3321_v57 = vshrl.u32 %v3291_v50, 16  ;;  %v3292_v23 = vcombine.high %v3291_v50, %v10960_v41  ;;  %v3320_v28 = vpack.i.b16 %v3316_v33, %v3291_v50 }
 0x82d   : > { %v3727_v59 = vcombine.low %v3718_v25, %v3726_v26 }
 0x82e   : > { %v2620_v31 = vsel %vm1872_vm4, %v2104_v27, 0  ;;  %v3323_v15 = vpack.i.b16 %v3322_v46, %v3321_v57  ;;  %v3327_v45 = vshrl.u32 %v3292_v23, 16  ;;  %v3326_v63 = vpack.i.b16 %v3317_v42, %v3292_v23 }
 0x82f   : > { %v3734_v32 = vrot.slane %v3727_v59, %v11863_v40  ;;  %9856 = vmatpush3.bf16.xpose.msra.mxu0 %v2620_v31 }
 0x830   : > { %9867 = vmatprep.subr.bf16.mxu0 %v10951_v4  ;;  %v3329_v55 = vpack.i.b16 %v3328_v19, %v3327_v45 }
 0x831   : > { %v3740_v36 = vshrl.u32 %v3734_v32, 16  ;;  %v3735_v14 = vcombine.high %v3734_v32, %v10960_v41  ;;  %v3738_v38 = vpack.i.b16 %v3734_v32, %v3709_v24 }
 0x833   : > { %v3741_v43 = vpack.i.b16 %v3740_v36, %v3739_v35  ;;  %v3746_v48 = vshrl.u32 %v3735_v14, 16  ;;  %v3752_v30 = vsel %vm1876_vm3, %v3738_v38, 0  ;;  %v3744_v20 = vpack.i.b16 %v3735_v14, %v3710_v21 }
 0x835   : > { %v3798_v53 = vsel %vm1876_vm3, %v3741_v43, 0  ;;  %v3747_v60 = vpack.i.b16 %v3746_v48, %v3745_v47  ;;  %v3844_v54 = vsel %vm1876_vm3, %v3744_v20, 0 }
 0x836   : > { %9858 = vmatmul.mubr.msk.bf16.vlgmr.msra.gmra.mrb[16].mxu0 %vm1872_vm4, %v2520_v51  ;;  %9874 = vmatpush3.bf16.msra.mxu1 %v3798_v53 }
 0x837   : > { %9868 = vmatpush3.bf16.msra.mxu0 %v3752_v30  ;;  %9885 = vmatprep.subr.bf16.mxu1 %v10951_v4  ;;  %v3890_v52 = vsel %vm1876_vm3, %v3747_v60, 0 }
 0x838   : > { %v3177_v37 = vpop.permute.xlu1 %3176  ;;  %9869 = vmatprep.mubr.msk.bf16.mxu0 %vm10952_vm1, %v10951_v4  ;;  %9879 = vmatprep.subr.bf16.mxu0 %v10951_v4 }
 0x839   : > { %3184 = vrot.lane.b32.xlu1 %v3177_v37, %s10961_s16  ;;  %9876 = vmatmul.mubr.msk.bf16.vlgmr.msra.gmra.mrb[16].mxu1 %vm1872_vm4, %v3323_v15 }
 0x83a   : > { %9886 = vmatpush3.bf16.msra.mxu1 %v3890_v52  ;;  %9887 = vmatprep.mubr.msk.bf16.mxu1 %vm10952_vm1, %v10951_v4 }
 0x83b   : > { %9897 = vmatprep.subr.bf16.mxu1 %v10951_v4 }
 0x83c   : > { %v3179_v53 = vpop.permute.xlu1 %3178 }
 0x83e   : > { %9870 = vmatmul.mubr.msk.bf16.vlgmr.msra.gmra.mrb[20].mxu0 %vm1872_vm4, %v3320_v28 }
 0x83f   : > { %9880 = vmatpush3.bf16.msra.mxu0 %v3844_v54  ;;  %9881 = vmatprep.mubr.msk.bf16.mxu0 %vm10952_vm1, %v10951_v4 }
 0x840   : > { %9891 = vmatprep.subr.bf16.mxu0 %v10951_v4  ;;  %v3181_v57 = vpop.permute.xlu1 %3180 }
 0x841   : > { %9888 = vmatmul.mubr.msk.bf16.vlgmr.msra.gmra.mrb[20].mxu1 %vm1872_vm4, %v3329_v55 }
 0x842   : > { %9899 = vmatprep.mubr.msk.bf16.mxu1 %vm10952_vm1, %v10951_v4 }
 0x846   : > { %9882 = vmatmul.mubr.msk.bf16.vlgmr.msra.gmra.mrb[24].mxu0 %vm1872_vm4, %v3326_v63 }
 0x847   : > { %9893 = vmatprep.mubr.msk.bf16.mxu0 %vm10952_vm1, %v10951_v4 }
 0x886   : > { %v3183_v42 = vpop.permute.xlu0 %3182 }
 0x8aa   : > { %v12194_v0 = vpop.f32.mrb[8].mxu1 }
 0x8ab   : > { %v9853_v1 = vpop.f32.mrb[9].mxu1  ;;  %v3185_v60 = vpop.permute.xlu1 %3184 }
 0x8ac   : > { %v2613_v61 = vpop.f32.mrb[10].mxu1  ;;  %v3192_v15 = vcombine.low %v3181_v57, %v3185_v60  ;;  %v3193_v52 = vcombine.high %v3181_v57, %v3185_v60 }
 0x8ad   : > { %v9854_v2 = vpop.f32.mrb[11].mxu1 }
 0x8ae   : > { %v3200_v19 = vrot.slane %v3192_v15, %v11860_v34  ;;  %v3207_v54 = vrot.slane %v3193_v52, %v11860_v34 }
 0x8b0   : > { %v12196_v3 = vpop.f32.mrb[12].mxu0 }
 0x8b1   : > { %v9847_v5 = vpop.f32.mrb[13].mxu0 }
 0x8b2   : > { %v2567_v6 = vpop.f32.mrb[14].mxu0 }
 0x8b3   : > { %v9848_v7 = vpop.f32.mrb[15].mxu0 }
 0x8df   : > { %v12198_v9 = vpop.f32.mrb[12].mxu1 }
 0x8e0   : > { %v9865_v44 = vpop.f32.mrb[13].mxu1 }
 0x8e1   : > { %v2705_v11 = vpop.f32.mrb[14].mxu1 }
 0x8e2   : > { %v9866_v12 = vpop.f32.mrb[15].mxu1 }
 0x909   : > { %v12202_v56 = vpop.f32.mrb[16].mxu0 }
 0x90a   : > { %v9859_v22 = vpop.f32.mrb[17].mxu0 }
 0x90b   : > { %v2659_v49 = vpop.f32.mrb[18].mxu0 }
 0x90c   : > { %v9860_v17 = vpop.f32.mrb[19].mxu0  ;;  %v3834_v18 = vpop.f32.mrb[16].mxu1 }
 0x90d   : > { %v12204_v62 = vadd.f32 %v3834_v18, %v2991_v16  ;;  %v9877_v24 = vpop.f32.mrb[17].mxu1 }
 0x90e   : > { %v3837_v25 = vpop.f32.mrb[18].mxu1 }
 0x90f   : > { %v9878_v26 = vpop.f32.mrb[19].mxu1  ;;  %v3935_v27 = vsel %vm1872_vm4, %v12204_v62, -inf }
 0x910   : > { %3936 = vmax.xlane.f32.xlu1 %v3935_v27 }
 0x911   : > { %v3788_v29 = vpop.f32.mrb[20].mxu0 }
 0x912   : > { %v12208_v59 = vadd.f32 %v3788_v29, %v2991_v16  ;;  %v9871_v31 = vpop.f32.mrb[21].mxu0 }
 0x913   : > { %v3791_v32 = vpop.f32.mrb[22].mxu0 }
 0x914   : > { %v9872_v33 = vpop.f32.mrb[23].mxu0  ;;  %v3926_v21 = vpop.f32.mrb[20].mxu1  ;;  %v3932_v50 = vsel %vm1872_vm4, %v12208_v59, -inf }
 0x915   : > { %v12212_v35 = vadd.f32 %v3926_v21, %v2991_v16  ;;  %v9889_v36 = vpop.f32.mrb[21].mxu1  ;;  %3933 = vmax.xlane.f32.xlu0 %v3932_v50 }
 0x916   : > { %v3929_v14 = vpop.f32.mrb[22].mxu1 }
 0x917   : > { %v9890_v38 = vpop.f32.mrb[23].mxu1  ;;  %v3941_v17 = vsel %vm1872_vm4, %v12212_v35, -inf }
 0x919   : > { %v3880_v43 = vpop.f32.mrb[24].mxu0 }
 0x91a   : > { %v12214_v46 = vadd.f32 %v3880_v43, %v2991_v16  ;;  %v9883_v47 = vpop.f32.mrb[25].mxu0 }
 0x91b   : > { %v3883_v48 = vpop.f32.mrb[26].mxu0 }
 0x91c   : > { %v9884_v51 = vpop.f32.mrb[27].mxu0  ;;  %v3938_v49 = vsel %vm1872_vm4, %v12214_v46, -inf }
 0x921   : > { %3186 = vrot.lane.b32.xlu1 %v3179_v53, %s10961_s16 }
 0x99d   : > { %v12217_v30 = vpop.xlane.xlu1 %3936 }
 0x9a1   : > { %v3187_v37 = vpop.permute.xlu1 %3186 }
 0x9a2   : > { %v3208_v23 = vcombine.low %v3183_v42, %v3187_v37  ;;  %v3209_v20 = vcombine.high %v3183_v42, %v3187_v37  ;;  %v3934_v31 = vpop.xlane.xlu0 %3933 }
 0x9a4   : > { %v3216_v28 = vrot.slane %v3208_v23, %v11860_v34  ;;  %v3223_v45 = vrot.slane %v3209_v20, %v11860_v34 }
 0x9a6   : > { %v3224_v55 = vcombine.low %v3200_v19, %v3216_v28  ;;  %v3225_v63 = vcombine.high %v3200_v19, %v3216_v28  ;;  %v3240_v1 = vcombine.low %v3207_v54, %v3223_v45  ;;  %v3241_v7 = vcombine.high %v3207_v54, %v3223_v45 }
 0x9a8   : > { %v3232_v61 = vrot.slane %v3224_v55, %v11863_v40  ;;  %v3239_v6 = vrot.slane %v3225_v63, %v11863_v40  ;;  %v3248_v11 = vrot.slane %v3240_v1, %v11863_v40  ;;  %v3255_v16 = vrot.slane %v3241_v7, %v11863_v40 }
 0x9aa   : > { %v3260_v2 = vpack.c.bf16 %v3232_v61, %v3232_v61  ;;  %v3256_v5 = vcombine.high %v3232_v61, %v10951_v4  ;;  %v3262_v12 = vpack.c.bf16 %v3239_v6, %v3239_v6  ;;  %v3264_v39 = vpack.c.bf16 %v3248_v11, %v3248_v11 }
 0x9ab   : > { %v3266_v22 = vpack.c.bf16 %v3255_v16, %v3255_v16  ;;  %v3257_v18 = vcombine.high %v3239_v6, %v10951_v4  ;;  %v3258_v25 = vcombine.high %v3248_v11, %v10951_v4  ;;  %v3259_v27 = vcombine.high %v3255_v16, %v10951_v4 }
 0x9ac   : > { %3980 = vxpose.xlu0.c.b16.start.end [1/1] (short) (narrow) %v3260_v2, 16  ;;  %v3261_v44 = vpack.c.bf16 %v3256_v5, %v3256_v5  ;;  %v3944_v5 = vsub.f32 %v12208_v59, %v3934_v31  ;;  %v3945_v11 = vsub.f32 %v12204_v62, %v12217_v30 }
 0x9ad   : > { %v3263_v24 = vpack.c.bf16 %v3257_v18, %v3257_v18  ;;  %v3265_v26 = vpack.c.bf16 %v3258_v25, %v3258_v25  ;;  %v3267_v29 = vpack.c.bf16 %v3259_v27, %v3259_v27 }
 0x9ae   : > { %3996 = vxpose.xlu1.c.b16.start.end [1/1] (short) (narrow) %v3261_v44, 16  ;;  %v3950_v59 = vmul.f32 1.442695, %v3945_v11 }
 0x9b0   : > { %4012 = vxpose.xlu0.c.b16.start.end [1/1] (short) (narrow) %v3262_v12, 16 }
 0x9b2   : > { %4044 = vxpose.xlu1.c.b16.start.end [1/1] (short) (narrow) %v3264_v39, 16 }
 0x9b6   : > { %4076 = vxpose.xlu1.c.b16.start.end [1/1] (short) (narrow) %v3266_v22, 16  ;;  %v3948_v22 = vmul.f32 1.442695, %v3944_v5 }
 0x9b8   : > { %10287 = vpow2.f32 %v3948_v22 }
 0x9b9   : > { %10289 = vpow2.f32 %v3950_v59 }
 0x9bd   : > { %3939 = vmax.xlane.f32.xlu0 %v3938_v49 }
 0x9c1   : > { %3942 = vmax.xlane.f32.xlu0 %v3941_v17 }
 0x9ee   : > { %4028 = vxpose.xlu0.c.b16.start.end [1/1] (short) (narrow) %v3263_v24, 16 }
 0x9f2   : > { %4060 = vxpose.xlu0.c.b16.start.end [1/1] (short) (narrow) %v3265_v26, 16 }
 0x9f6   : > { %4092 = vxpose.xlu0.c.b16.start.end [1/1] (short) (narrow) %v3267_v29, 16  ;;  %v10288_v29 = vpop.eup %10287 }
 0x9f7   : > { %v3956_v31 = vsel %vm1872_vm4, %v10288_v29, 0.0 }
 0xa12   : > { %v3988_v32 = vpop.trf.xlu0 }
 0xa14   : > { %v4004_v33 = vpop.trf.xlu1 }
 0xa16   : > { %v4020_v21 = vpop.trf.xlu0 }
 0xa18   : > { %v4052_v36 = vpop.trf.xlu1 }
 0xa19   : > { %v4108_v43 = vcombine.low %v3988_v32, %v4052_v36 }
 0xa1b   : > { %v4115_v51 = vrot.slane %v4108_v43, %v11860_v34 }
 0xa1c   : > { %v4084_v38 = vpop.trf.xlu1 }
 0xa1d   : > { %v4116_v47 = vcombine.low %v4020_v21, %v4084_v38 }
 0xa1f   : > { %v4123_v53 = vrot.slane %v4116_v47, %v11860_v34 }
 0xa21   : > { %v4124_v15 = vcombine.low %v4115_v51, %v4123_v53  ;;  %v4125_v54 = vcombine.high %v4115_v51, %v4123_v53 }
 0xa23   : > { %v4132_v20 = vrot.slane %v4124_v15, %v11863_v40  ;;  %v4139_v12 = vrot.slane %v4125_v54, %v11863_v40 }
 0xa25   : > { %v4180_v55 = vshrl.u32 %v4132_v20, 16  ;;  %v4140_v61 = vcombine.high %v4132_v20, %v10960_v41  ;;  %v4196_v26 = vshrl.u32 %v4139_v12, 16 }
 0xa27   : > { %v4188_v16 = vshrl.u32 %v4140_v61, 16 }
 0xa4a   : > { %v3940_v50 = vpop.xlane.xlu0 %3939 }
 0xa4b   : > { %v3946_v49 = vsub.f32 %v12214_v46, %v3940_v50  ;;  %v10290_v46 = vpop.eup %10289 }
 0xa4d   : > { %v3952_v27 = vmul.f32 1.442695, %v3946_v49 }
 0xa4e   : > { %v3943_v14 = vpop.xlane.xlu0 %3942 }
 0xa4f   : > { %v3947_v24 = vsub.f32 %v12212_v35, %v3943_v14  ;;  %10291 = vpow2.f32 %v3952_v27  ;;  %v3959_v35 = vsel %vm1872_vm4, %v10290_v46, 0.0  ;;  %v4141_v14 = vcombine.high %v4139_v12, %v10960_v41 }
 0xa51   : > { %v3954_v30 = vmul.f32 1.442695, %v3947_v24  ;;  %v4204_v47 = vshrl.u32 %v4141_v14, 16 }
 0xa53   : > { %10293 = vpow2.f32 %v3954_v30 }
 0xa54   : > { %v4036_v48 = vpop.trf.xlu0 }
 0xa58   : > { %v4068_v57 = vpop.trf.xlu0 }
 0xa59   : > { %v4142_v60 = vcombine.low %v4004_v33, %v4068_v57  ;;  %v10292_v32 = vpop.eup %10291 }
 0xa5a   : > { %v3962_v21 = vsel %vm1872_vm4, %v10292_v32, 0.0 }
 0xa5b   : > { %v4149_v52 = vrot.slane %v4142_v60, %v11860_v34 }
 0xa5c   : > { %v4100_v42 = vpop.trf.xlu0 }
 0xa5d   : > { %v4150_v37 = vcombine.low %v4036_v48, %v4100_v42  ;;  %v10294_v33 = vpop.eup %10293 }
 0xa5e   : > { %v3965_v50 = vsel %vm1872_vm4, %v10294_v33, 0.0 }
 0xa5f   : > { %v4157_v23 = vrot.slane %v4150_v37, %v11860_v34 }
 0xa61   : > { %v4158_v19 = vcombine.low %v4149_v52, %v4157_v23  ;;  %v4159_v28 = vcombine.high %v4149_v52, %v4157_v23 }
 0xa63   : > { %v4166_v45 = vrot.slane %v4158_v19, %v11863_v40  ;;  %v4173_v6 = vrot.slane %v4159_v28, %v11863_v40 }
 0xa65   : > { %v4178_v63 = vpack.i.b16 %v4166_v45, %v4132_v20  ;;  %v4181_v1 = vshrl.u32 %v4166_v45, 16  ;;  %v4174_v2 = vcombine.high %v4166_v45, %v10960_v41  ;;  %v4197_v18 = vshrl.u32 %v4173_v6, 16 }
 0xa66   : > { %v4194_v25 = vpack.i.b16 %v4173_v6, %v4139_v12  ;;  %v4175_v36 = vcombine.high %v4173_v6, %v10960_v41 }
 0xa67   : > { %4208 = vxpose.xlu1.c.b16.start.end [1/1] (short) (narrow) %v4178_v63, 16  ;;  %v4182_v7 = vpack.i.b16 %v4181_v1, %v4180_v55  ;;  %v4189_v44 = vshrl.u32 %v4174_v2, 16  ;;  %v4186_v39 = vpack.i.b16 %v4174_v2, %v4140_v61  ;;  %v4198_v62 = vpack.i.b16 %v4197_v18, %v4196_v26 }
 0xa68   : > { %v4205_v38 = vshrl.u32 %v4175_v36, 16  ;;  %v4202_v43 = vpack.i.b16 %v4175_v36, %v4141_v14 }
 0xa69   : > { %4224 = vxpose.xlu0.c.b16.start.end [1/1] (short) (narrow) %v4182_v7, 16  ;;  %v4190_v17 = vpack.i.b16 %v4189_v44, %v4188_v16 }
 0xa6a   : > { %v4206_v48 = vpack.i.b16 %v4205_v38, %v4204_v47 }
 0xa6b   : > { %4240 = vxpose.xlu1.c.b16.start.end [1/1] (short) (narrow) %v4186_v39, 16 }
 0xa6d   : > { %4256 = vxpose.xlu0.c.b16.start.end [1/1] (short) (narrow) %v4190_v17, 16 }
 0xa6f   : > { %4272 = vxpose.xlu1.c.b16.start.end [1/1] (short) (narrow) %v4194_v25, 16 }
 0xa71   : > { %4288 = vxpose.xlu0.c.b16.start.end [1/1] (short) (narrow) %v4198_v62, 16 }
 0xa7c   : > { %3957 = vadd.xlane.f32.xlu1 %v3956_v31 }
 0xa7e   : > { %3960 = vadd.xlane.f32.xlu0 %v3959_v35 }
 0xa80   : > { %3963 = vadd.xlane.f32.xlu1 %v3962_v21 }
 0xa82   : > { %3966 = vadd.xlane.f32.xlu0 %v3965_v50 }
 0xaad   : > { %4304 = vxpose.xlu1.c.b16.start.end [1/1] (short) (narrow) %v4202_v43, 16 }
 0xaaf   : > { %4320 = vxpose.xlu0.c.b16.start.end [1/1] (short) (narrow) %v4206_v48, 16 }
 0xab3   : > { %2740 = vxpose.xlu0.b32.start.end [1/1] (short) (narrow) %v12194_v0, 8 }
 0xab7   : > { %2772 = vxpose.xlu0.b32.start.end [1/1] (short) (narrow) %v12202_v56, 8  ;;  %2708 = vxpose.xlu1.b32.start.end [1/1] (short) (narrow) %v12196_v3, 8 }
 0xabb   : > { %2804 = vxpose.xlu1.b32.start.end [1/1] (short) (narrow) %v12198_v9, 8 }
 0xacd   : > { %v4216_v51 = vpop.trf.xlu1 }
 0xacf   : > { %v4232_v53 = vpop.trf.xlu0 }
 0xad1   : > { %v4248_v57 = vpop.trf.xlu1 }
 0xad3   : > { %v4264_v60 = vpop.trf.xlu0 }
 0xad5   : > { %v4280_v15 = vpop.trf.xlu1 }
 0xad6   : > { %v4336_v0 = vcombine.low %v4216_v51, %v4280_v15 }
 0xad7   : > { %v4296_v42 = vpop.trf.xlu0 }
 0xad8   : > { %v4361_v3 = vcombine.low %v4232_v53, %v4296_v42  ;;  %v4343_v55 = vrot.slane %v4336_v0, %v11860_v34 }
 0xada   : > { %v4368_v6 = vrot.slane %v4361_v3, %v11860_v34 }
 0xb09   : > { %v3958_v37 = vpop.xlane.xlu1 %3957 }
 0xb0a   : > { %10295 = vrcp.f32 %v3958_v37 }
 0xb0b   : > { %v3961_v52 = vpop.xlane.xlu0 %3960 }
 0xb0c   : > { %10297 = vrcp.f32 %v3961_v52 }
 0xb0d   : > { %v3964_v23 = vpop.xlane.xlu1 %3963 }
 0xb0e   : > { %10299 = vrcp.f32 %v3964_v23 }
 0xb0f   : > { %v3967_v20 = vpop.xlane.xlu0 %3966 }
 0xb10   : > { %10301 = vrcp.f32 %v3967_v20 }
 0xb13   : > { %v4312_v56 = vpop.trf.xlu1 }
 0xb14   : > { %v10296_v19 = vpop.eup %10295  ;;  %v4344_v28 = vcombine.low %v4248_v57, %v4312_v56 }
 0xb15   : > { %v4328_v9 = vpop.trf.xlu0  ;;  %v3972_v45 = vmul.f32 %v10296_v19, %v10288_v29 }
 0xb16   : > { %v10298_v54 = vpop.eup %10297  ;;  %v4351_v63 = vrot.slane %v4344_v28, %v11860_v34  ;;  %v4369_v1 = vcombine.low %v4264_v60, %v4328_v9 }
 0xb17   : > { %v3976_v61 = vpack.c.bf16 %v3972_v45, %v3972_v45  ;;  %v3973_v2 = vmul.f32 %v10298_v54, %v10290_v46 }
 0xb18   : > { %v10300_v5 = vpop.eup %10299  ;;  %v4352_v7 = vcombine.low %v4343_v55, %v4351_v63  ;;  %v4376_v44 = vrot.slane %v4369_v1, %v11860_v34 }
 0xb19   : > { %v4402_v11 = vsel %vm1872_vm4, %v3976_v61, 0  ;;  %v3977_v12 = vpack.c.bf16 %v3973_v2, %v3973_v2  ;;  %v3974_v39 = vmul.f32 %v10300_v5, %v10292_v32 }
 0xb1a   : > { %v10302_v16 = vpop.eup %10301  ;;  %v4359_v22 = vrot.slane %v4352_v7, %v11863_v40  ;;  %v4377_v49 = vcombine.low %v4368_v6, %v4376_v44  ;;  %9892 = vmatpush3.bf16.xpose.msra.mxu0 %v4402_v11 }
 0xb1b   : > { %v4448_v17 = vsel %vm1872_vm4, %v3977_v12, 0  ;;  %9903 = vmatprep.subr.bf16.mxu0 %v10951_v4  ;;  %v3975_v18 = vmul.f32 %v10302_v16, %v10294_v33  ;;  %v3978_v24 = vpack.c.bf16 %v3974_v39, %v3974_v39 }
 0xb1c   : > { %v4384_v59 = vrot.slane %v4377_v49, %v11863_v40  ;;  %9898 = vmatpush3.bf16.xpose.msra.mxu1 %v4448_v17  ;;  %v4389_v25 = vshrl.u32 %v4359_v22, 16  ;;  %v4360_v31 = vcombine.high %v4359_v22, %v10960_v41 }
 0xb1d   : > { %9909 = vmatprep.subr.bf16.mxu1 %v10951_v4  ;;  %v3979_v62 = vpack.c.bf16 %v3975_v18, %v3975_v18  ;;  %v4494_v46 = vsel %vm1872_vm4, %v3978_v24, 0 }
 0xb1e   : > { %v4390_v26 = vshrl.u32 %v4384_v59, 16  ;;  %v4388_v27 = vpack.i.b16 %v4384_v59, %v4359_v22  ;;  %v4385_v29 = vcombine.high %v4384_v59, %v10960_v41  ;;  %v4395_v21 = vshrl.u32 %v4360_v31, 16 }
 0xb1f   : > { %v4540_v32 = vsel %vm1872_vm4, %v3979_v62, 0 }
 0xb20   : > { %v4391_v30 = vpack.i.b16 %v4390_v26, %v4389_v25  ;;  %v4396_v35 = vshrl.u32 %v4385_v29, 16  ;;  %v4394_v33 = vpack.i.b16 %v4385_v29, %v4360_v31 }
 0xb21   : > { %9894 = vmatmul.mubr.msk.bf16.vlgmr.msra.gmra.mrb[28].mxu0 %vm1872_vm4, %v4388_v27 }
 0xb22   : > { %9904 = vmatpush3.bf16.xpose.msra.mxu0 %v4494_v46  ;;  %9905 = vmatprep.mubr.msk.bf16.mxu0 %vm10952_vm1, %v10951_v4  ;;  %v4397_v50 = vpack.i.b16 %v4396_v35, %v4395_v21 }
 0xb23   : > { %9900 = vmatmul.mubr.msk.bf16.vlgmr.msra.gmra.mrb[24].mxu1 %vm1872_vm4, %v4391_v30  ;;  %9915 = vmatprep.subr.bf16.mxu0 %v10951_v4 }
 0xb24   : > { %9910 = vmatpush3.bf16.xpose.msra.mxu1 %v4540_v32  ;;  %9911 = vmatprep.mubr.msk.bf16.mxu1 %vm10952_vm1, %v10951_v4 }
 0xb25   : > { %9923 = vmatprep.subr.bf16.mxu1 %v10951_v4 }
 0xb29   : > { %9906 = vmatmul.mubr.msk.bf16.vlgmr.msra.gmra.mrb[32].mxu0 %vm1872_vm4, %v4394_v33 }
 0xb2a   : > { %9919 = vmatprep.mubr.msk.bf16.mxu0 %vm10952_vm1, %v10951_v4 }
 0xb2b   : > { %9912 = vmatmul.mubr.msk.bf16.vlgmr.msra.gmra.mrb[28].mxu1 %vm1872_vm4, %v4397_v50 }
 0xb2c   : > { %9927 = vmatprep.mubr.msk.bf16.mxu1 %vm10952_vm1, %v10951_v4 }
 0xb33   : > { %v2756_v36 = vpop.trf.xlu0 }
 0xb37   : > { %v2724_v14 = vpop.trf.xlu1  ;;  %v2788_v38 = vpop.trf.xlu0 }
 0xb38   : > { %v2836_v47 = vcombine.low %v2724_v14, %v2788_v38  ;;  %v2837_v48 = vcombine.high %v2724_v14, %v2788_v38 }
 0xb3a   : > { %v2844_v57 = vrot.slane %v2836_v47, %v11860_v34  ;;  %v2851_v60 = vrot.slane %v2837_v48, %v11860_v34 }
 0xb3b   : > { %v2820_v43 = vpop.trf.xlu1 }
 0xb3c   : > { %v2852_v51 = vcombine.low %v2756_v36, %v2820_v43  ;;  %v2853_v53 = vcombine.high %v2756_v36, %v2820_v43 }
 0xb3e   : > { %v2860_v15 = vrot.slane %v2852_v51, %v11860_v34  ;;  %v2867_v42 = vrot.slane %v2853_v53, %v11860_v34 }
 0xb40   : > { %v2868_v37 = vcombine.low %v2844_v57, %v2860_v15  ;;  %v2869_v52 = vcombine.high %v2844_v57, %v2860_v15  ;;  %v2884_v23 = vcombine.low %v2851_v60, %v2867_v42  ;;  %v2885_v20 = vcombine.high %v2851_v60, %v2867_v42 }
 0xb42   : > { %v2876_v45 = vrot.slane %v2868_v37, %v11863_v40  ;;  %v2883_v54 = vrot.slane %v2869_v52, %v11863_v40  ;;  %v2892_v55 = vrot.slane %v2884_v23, %v11863_v40  ;;  %v2899_v63 = vrot.slane %v2885_v20, %v11863_v40 }
 0xb44   : > { %v2904_v2 = vcombine.low %v2876_v45, %v2883_v54  ;;  %v9635_v5 = vcombine.high %v2876_v45, %v2883_v54  ;;  %v2920_v6 = vcombine.low %v2892_v55, %v2899_v63  ;;  %v9636_v7 = vcombine.high %v2892_v55, %v2899_v63 }
 0xb46   : > { %v2911_v49 = vrot.slane %v2904_v2, %v11860_v34  ;;  %v2919_v17 = vrot.slane %v9635_v5, %v11860_v34  ;;  %v2927_v18 = vrot.slane %v2920_v6, %v11860_v34  ;;  %v2935_v59 = vrot.slane %v9636_v7, %v11860_v34 }
 0xb48   : > { %v2936_v26 = vcombine.low %v2911_v49, %v2919_v17  ;;  %v2952_v27 = vcombine.low %v2927_v18, %v2935_v59  ;;  %v2937_v52 = vcombine.high %v2911_v49, %v2919_v17  ;;  %v2953_v23 = vcombine.high %v2927_v18, %v2935_v59 }
 0xb4a   : > { %v12301_v62 = vrot.slane %v2936_v26, %v11863_v40  ;;  %v12304_v30 = vrot.slane %v2952_v27, %v11863_v40  ;;  %v2951_v55 = vrot.slane %v2937_v52, %v11863_v40  ;;  %v2967_v63 = vrot.slane %v2953_v23, %v11863_v40 }
 0xb4c   : > { %v2968_v29 = vcombine.low %v12301_v62, %v12304_v30 }
 0xbf4   : > { %v4438_v0 = vpop.f32.mrb[28].mxu0 }
 0xbf5   : > { %4582 = vxpose.xlu0.b32.start.end [1/1] (short) (narrow) %v4438_v0, 8  ;;  %v9895_v56 = vpop.f32.mrb[29].mxu0 }
 0xbf6   : > { %v4441_v19 = vpop.f32.mrb[30].mxu0  ;;  %v4484_v3 = vpop.f32.mrb[24].mxu1 }
 0xbf7   : > { %4614 = vxpose.xlu1.b32.start.end [1/1] (short) (narrow) %v4484_v3, 8  ;;  %v9896_v28 = vpop.f32.mrb[31].mxu0  ;;  %v9901_v9 = vpop.f32.mrb[25].mxu1  ;;  %v10256_v3 = vld [vmem:[%s830_s21] sm:$0xff]  }
 0xbf8   : > { %v4487_v1 = vpop.f32.mrb[26].mxu1  ;;  %9916 = vmatpush3.bf16.msra.mxu0 %v10256_v3  ;;  %v10349_v3 = vld [vmem:[#allocation2 + $0x8] sm:$0xff] }
 0xbf9   : > { %v9902_v61 = vpop.f32.mrb[27].mxu1  ;;  %9917 = vmatprep.subr.bf16.mxu0 %v10951_v4 }
 0xbfc   : > { %v4530_v44 = vpop.f32.mrb[32].mxu0 }
 0xbfd   : > { %4646 = vxpose.xlu0.b32.start.end [1/1] (short) (narrow) %v4530_v44, 8  ;;  %v9907_v11 = vpop.f32.mrb[33].mxu0 }
 0xbfe   : > { %v4533_v12 = vpop.f32.mrb[34].mxu0  ;;  %v4576_v39 = vpop.f32.mrb[28].mxu1 }
 0xbff   : > { %4678 = vxpose.xlu1.b32.start.end [1/1] (short) (narrow) %v4576_v39, 8  ;;  %v9908_v16 = vpop.f32.mrb[35].mxu0  ;;  %v9913_v22 = vpop.f32.mrb[29].mxu1  ;;  %v10257_v12 = vld [vmem:[%s830_s21 + $0x8] sm:$0xff]   ;;  %v2970_v39 = vcombine.low %v2951_v55, %v2967_v63  ;;  %s10964_s21 = smov 24  }
 0xc00   : > { %v4579_v24 = vpop.f32.mrb[30].mxu1  ;;  %v2969_v22 = vcombine.high %v12301_v62, %v12304_v30  ;;  %9918 = vmatpush3.bf16.msra.mxu0 %v10257_v12  ;;  %v10258_v30 = vld [vmem:[%s848_s30] sm:$0xff]  }
 0xc01   : > { %v9914_v25 = vpop.f32.mrb[31].mxu1  ;;  %9931 = vmatprep.subr.bf16.mxu0 %v10951_v4 }
 0xc02   : > { %v2971_v25 = vcombine.high %v2951_v55, %v2967_v63  ;;  %v5101_v63 = vsub.s32 5, %v11817_v8 }
 0xc75   : > { %v4598_v46 = vpop.trf.xlu0 }
 0xc77   : > { %v4630_v31 = vpop.trf.xlu1 }
 0xc7d   : > { %v4662_v32 = vpop.trf.xlu0 }
 0xc7e   : > { %v4710_v35 = vcombine.low %v4598_v46, %v4662_v32  ;;  %v4711_v33 = vcombine.high %v4598_v46, %v4662_v32 }
 0xc7f   : > { %v4694_v21 = vpop.trf.xlu1 }
 0xc80   : > { %v4726_v50 = vcombine.low %v4630_v31, %v4694_v21  ;;  %v4727_v36 = vcombine.high %v4630_v31, %v4694_v21  ;;  %v4718_v14 = vrot.slane %v4710_v35, %v11860_v34  ;;  %v4725_v38 = vrot.slane %v4711_v33, %v11860_v34 }
 0xc82   : > { %v4734_v43 = vrot.slane %v4726_v50, %v11860_v34  ;;  %v4741_v47 = vrot.slane %v4727_v36, %v11860_v34 }
 0xc84   : > { %v4742_v48 = vcombine.low %v4718_v14, %v4734_v43  ;;  %v4743_v51 = vcombine.high %v4718_v14, %v4734_v43  ;;  %v4758_v53 = vcombine.low %v4725_v38, %v4741_v47  ;;  %v4759_v57 = vcombine.high %v4725_v38, %v4741_v47 }
 0xc86   : > { %v4750_v60 = vrot.slane %v4742_v48, %v11863_v40  ;;  %v4757_v15 = vrot.slane %v4743_v51, %v11863_v40  ;;  %v4766_v42 = vrot.slane %v4758_v53, %v11863_v40  ;;  %v4773_v37 = vrot.slane %v4759_v57, %v11863_v40  ;;  %v10259_v51 = vld [vmem:[%s848_s30 + $0x8] sm:$0xff]  }
 0xc87   : > { %v10260_v53 = vld [vmem:[%s794_s24] sm:$0xff]   ;;  %v4868_v57 = vsub.s32 3, %v11817_v8  ;;  %s13178_s24 = scalar_lea.vmem [#allocation9], %s11740_s12  ;;  %s13180_s12 = scalar_lea.vmem [#allocation18], %s11759_s10 }
 0xc88   : > { %v4778_v20 = vcombine.low %v4750_v60, %v4757_v15  ;;  %v9650_v0 = vcombine.high %v4750_v60, %v4757_v15  ;;  %v4794_v56 = vcombine.low %v4766_v42, %v4773_v37  ;;  %v9651_v19 = vcombine.high %v4766_v42, %v4773_v37  ;;  %v12362_v60 = vld [vmem:[%s11791_s28] sm:$0xff]  ;;  %s13181_s30 = smov %s13180_s12 }
 0xc89   : > { %v4869_v15 = vrot.slane %v12362_v60, %v4868_v57 }
 0xc8a   : > { %v4785_v28 = vrot.slane %v4778_v20, %v11860_v34  ;;  %v4793_v9 = vrot.slane %v9650_v0, %v11860_v34  ;;  %v4801_v45 = vrot.slane %v4794_v56, %v11860_v34  ;;  %v4809_v54 = vrot.slane %v9651_v19, %v11860_v34  ;;  %v10348_v20 = vld [vmem:[#allocation2] sm:$0xff] }
 0xc8c   : > { %v4811_v1 = vcombine.high %v4785_v28, %v4793_v9  ;;  %v4827_v61 = vcombine.high %v4801_v45, %v4809_v54  ;;  %v4810_v2 = vcombine.low %v4785_v28, %v4793_v9  ;;  %v4826_v5 = vcombine.low %v4801_v45, %v4809_v54 }
 0xc8e   : > { %v4825_v6 = vrot.slane %v4811_v1, %v11863_v40  ;;  %v4841_v7 = vrot.slane %v4827_v61, %v11863_v40  ;;  %v4818_v44 = vrot.slane %v4810_v2, %v11863_v40  ;;  %v4834_v11 = vrot.slane %v4826_v5, %v11863_v40 }
 0xc8f   : > { %v5102_v1 = vrot.slane %v12362_v60, %v5101_v63 }
 0xc90   : > { %v4844_v16 = vcombine.low %v4825_v6, %v4841_v7  ;;  %v4843_v49 = vcombine.high %v4818_v44, %v4834_v11  ;;  %v4842_v17 = vcombine.low %v4818_v44, %v4834_v11  ;;  %v4845_v24 = vcombine.high %v4825_v6, %v4841_v7 }
 0xc92   : > { %v10229_v18 = vpack.i.bf16 %v4844_v16, %v2970_v39  ;;  %v10224_v59 = vpack.i.bf16 %v4843_v49, %v2969_v22  ;;  %v10234_v26 = vpack.i.bf16 %v4845_v24, %v2971_v25  ;;  %v10262_v24 = vld [vmem:[%s839_s2 + $0x8] sm:$0xff]  }
 0xc94   : > { %10230 = vrot.lane.b32.xlu1 %v10229_v18, %s10962_s6  ;;  %10225 = vrot.lane.b32.xlu0 %v10224_v59, %s10963_s19  ;;  %v10261_v59 = vld [vmem:[%s839_s2] sm:$0xff]   ;;  %s13179_s2 = smov %s13178_s24 }
 0xc95   : > { %9924 = vmatpush3.bf16.msra.mxu1 %v10261_v59 }
 0xc96   : > { %9925 = vmatprep.subr.bf16.mxu1 %v10951_v4 }
 0xc98   : > { %10235 = vrot.lane.b32.xlu1 %v10234_v26, %s10964_s21 }
 0xc99   : > { %9926 = vmatpush3.bf16.msra.mxu1 %v10262_v24 }
 0xc9a   : > { %9939 = vmatprep.subr.bf16.mxu1 %v10951_v4 }
 0xd06   : > { %v10231_v27 = vpop.permute.xlu1 %10230  ;;  %v10226_v46 = vpop.permute.xlu0 %10225 }
 0xd07   : > { %v10228_v31 = vunpack.i.h.bf16 %v10226_v46  ;;  %v10227_v32 = vunpack.i.l.bf16 %v10226_v46  ;;  %v10233_v35 = vunpack.i.h.bf16 %v10231_v27  ;;  %v10232_v33 = vunpack.i.l.bf16 %v10231_v27 }
 0xd09   : > { %v2984_v21 = vsel %vm1872_vm4, %v2968_v29, %v10227_v32  ;;  %v4858_v50 = vsel %vm1872_vm4, %v4842_v17, %v10228_v31 }
 0xd0a   : > { %v10236_v36 = vpop.permute.xlu1 %10235  ;;  %v2986_v43 = vsel %vm2985_vm5, %v2984_v21, %v10232_v33  ;;  %v4859_v47 = vsel %vm2985_vm5, %v4858_v50, %v10233_v35 }
 0xd0b   : > { %v10238_v14 = vunpack.i.h.bf16 %v10236_v36  ;;  %v10237_v38 = vunpack.i.l.bf16 %v10236_v36  ;;  %v1024_v36 = vld [vmem:[%s11791_s28 + $0x8] sm:$0x7f] }
 0xd0d   : > { %v2988_v48 = vsel %vm2987_vm6, %v2986_v43, %v10237_v38  ;;  %v4860_v62 = vsel %vm2987_vm6, %v4859_v47, %v10238_v14 }
 0xd0e   : > { %v4861_v29 = vpack.c.bf16 %v4860_v62, %v2988_v48 }
 0xd10   : > { %9920 = vmatmul.mubr.msk.bf16.vlgmr.msra.gmra.mrb[36].mxu0 %vm1043_vm2, %v4861_v29 }
 0xd11   : > { %9932 = vmatpush3.bf16.msra.mxu0 %v10258_v30  ;;  %9935 = vmatprep.mubr.msk.bf16.mxu0 %vm10952_vm1, %v10951_v4  ;;  %v4958_v30 = vrot.slane %v1024_v36, %v1096_v10 }
 0xd12   : > { %9933 = vmatprep.subr.bf16.mxu0 %v10951_v4 }
 0xd15   : > { %9934 = vmatpush3.bf16.msra.mxu0 %v10259_v51 }
 0xd16   : > { %9945 = vmatprep.subr.bf16.mxu0 %v10951_v4 }
 0xd18   : > { %9936 = vmatmul.mubr.msk.bf16.vlgmr.msra.gmra.mrb[40].mxu0 %vm1043_vm2, %v10260_v53 }
 0xd19   : > { %9947 = vmatprep.mubr.msk.bf16.mxu0 %vm10952_vm1, %v10951_v4 }
 0xde3   : > { %v4919_v42 = vpop.f32.mrb[36].mxu0 }
 0xde4   : > { %v4920_v37 = vadd.f32 %v4919_v42, %v4869_v15  ;;  %v9921_v52 = vpop.f32.mrb[37].mxu0  ;;  %v4964_v42 = vrot.slane %v1024_v36, %v1106_v58 }
 0xde5   : > { %v4922_v23 = vpop.f32.mrb[38].mxu0 }
 0xde6   : > { %v4926_v0 = vadd.f32 %v10348_v20, %v4920_v37  ;;  %v4923_v56 = vadd.f32 %v4922_v23, %v4869_v15  ;;  %v9922_v19 = vpop.f32.mrb[39].mxu0 }
 0xde8   : > { %v4927_v28 = vadd.f32 %v10349_v3, %v4923_v56  ;;  %v4928_v9 = vsel %vm1043_vm2, %v4926_v0, 0.0 }
 0xde9   : > { %4929 = vadd.xlane.f32.xlu1 %v4928_v9 }
 0xdea   : > { %v4931_v45 = vsel %vm1043_vm2, %v4927_v28, 0.0 }
 0xdeb   : > { %4932 = vadd.xlane.f32.xlu0 %v4931_v45  ;;  %v12369_v54 = vpop.f32.mrb[40].mxu0 }
 0xdec   : > { %v9937_v55 = vpop.f32.mrb[41].mxu0  ;;  %v5103_v18 = vadd.f32 %v5102_v1, %v12369_v54 }
 0xded   : > { %v12375_v61 = vpop.f32.mrb[42].mxu0 }
 0xdee   : > { %v12378_v2 = vadd.f32 %v5102_v1, %v12375_v61  ;;  %v9938_v5 = vpop.f32.mrb[43].mxu0 }
 0xe76   : > { %v4930_v6 = vpop.xlane.xlu1 %4929 }
 0xe77   : > { %v4935_v7 = vmul.f32 0.03125, %v4930_v6 }
 0xe78   : > { %v4933_v44 = vpop.xlane.xlu0 %4932 }
 0xe79   : > { %v4937_v11 = vsub.f32 %v4926_v0, %v4935_v7  ;;  %v4936_v12 = vmul.f32 0.03125, %v4933_v44 }
 0xe7b   : > { %v4938_v39 = vsub.f32 %v4927_v28, %v4936_v12  ;;  %v4939_v16 = vmul.f32 %v4937_v11, %v4937_v11 }
 0xe7d   : > { %v4941_v22 = vsel %vm1043_vm2, %v4939_v16, 0.0  ;;  %v4940_v49 = vmul.f32 %v4938_v39, %v4938_v39 }
 0xe7e   : > { %4942 = vadd.xlane.f32.xlu0 %v4941_v22 }
 0xe7f   : > { %v4944_v17 = vsel %vm1043_vm2, %v4940_v49, 0.0 }
 0xe80   : > { %4945 = vadd.xlane.f32.xlu1 %v4944_v17 }
 0xe91   : > { %5207 = vrot.lane.b32.xlu1 %v5103_v18, %s10954_s18 }
 0xe94   : > { %5204 = vrot.lane.b32.xlu0 %v5103_v18, %s10955_s4 }
 0xe95   : > { %5210 = vrot.lane.b32.xlu1 %v5103_v18, %s10956_s29 }
 0xf0b   : > { %v4943_v25 = vpop.xlane.xlu0 %4942 }
 0xf0c   : > { %v4947_v26 = vmul.f32 0.03125, %v4943_v25 }
 0xf0d   : > { %v4946_v27 = vpop.xlane.xlu1 %4945 }
 0xf0e   : > { %v4949_v46 = vadd.f32 1e-05, %v4947_v26  ;;  %v4948_v31 = vmul.f32 0.03125, %v4946_v27 }
 0xf0f   : > { %v5205_v33 = vpop.permute.xlu0 %5204 }
 0xf10   : > { %10303 = vrsqrt.f32 %v4949_v46  ;;  %v4950_v32 = vadd.f32 1e-05, %v4948_v31 }
 0xf11   : > { %v5208_v35 = vpop.permute.xlu1 %5207 }
 0xf12   : > { %10305 = vrsqrt.f32 %v4950_v32  ;;  %v5213_v21 = vcombine.low %v5103_v18, %v5208_v35  ;;  %v5214_v14 = vcombine.high %v5103_v18, %v5208_v35 }
 0xf14   : > { %v5221_v47 = vrot.slane %v5213_v21, %v11860_v34  ;;  %v5228_v51 = vrot.slane %v5214_v14, %v11860_v34 }
 0xf15   : > { %v5211_v50 = vpop.permute.xlu1 %5210 }
 0xf16   : > { %v5229_v38 = vcombine.low %v5205_v33, %v5211_v50  ;;  %v5230_v43 = vcombine.high %v5205_v33, %v5211_v50 }
 0xf18   : > { %v5237_v48 = vrot.slane %v5229_v38, %v11860_v34  ;;  %v5244_v62 = vrot.slane %v5230_v43, %v11860_v34 }
 0xf1a   : > { %v10304_v29 = vpop.eup %10303  ;;  %v5245_v53 = vcombine.low %v5221_v47, %v5237_v48  ;;  %v5246_v15 = vcombine.high %v5221_v47, %v5237_v48  ;;  %v5261_v23 = vcombine.low %v5228_v51, %v5244_v62  ;;  %v5262_v45 = vcombine.high %v5228_v51, %v5244_v62 }
 0xf1b   : > { %v4953_v37 = vmul.f32 %v10304_v29, %v4937_v11 }
 0xf1c   : > { %v10306_v52 = vpop.eup %10305  ;;  %v5253_v20 = vrot.slane %v5245_v53, %v11863_v40  ;;  %v5260_v10 = vrot.slane %v5246_v15, %v11863_v40  ;;  %v5269_v58 = vrot.slane %v5261_v23, %v11863_v40  ;;  %v5276_v11 = vrot.slane %v5262_v45, %v11863_v40 }
 0xf1d   : > { %v4959_v0 = vmul.f32 %v4958_v30, %v4953_v37  ;;  %v4954_v56 = vmul.f32 %v10306_v52, %v4938_v39 }
 0xf1e   : > { %v5281_v19 = vpack.c.bf16 %v5253_v20, %v5253_v20  ;;  %v5277_v3 = vcombine.high %v5253_v20, %v10951_v4  ;;  %v5283_v5 = vpack.c.bf16 %v5260_v10, %v5260_v10  ;;  %v5278_v6 = vcombine.high %v5260_v10, %v10951_v4 }
 0xf1f   : > { %v4960_v28 = vmul.f32 %v4958_v30, %v4954_v56  ;;  %v12404_v9 = vadd.f32 %v4964_v42, %v4959_v0  ;;  %v5285_v44 = vpack.c.bf16 %v5269_v58, %v5269_v58  ;;  %v5279_v39 = vcombine.high %v5269_v58, %v10951_v4 }
 0xf20   : > { %5446 = vxpose.xlu0.c.b16.start.end [1/1] (short) (narrow) %v5281_v19, 16  ;;  %v5282_v55 = vpack.c.bf16 %v5277_v3, %v5277_v3  ;;  %v5284_v12 = vpack.c.bf16 %v5278_v6, %v5278_v6  ;;  %v5287_v16 = vpack.c.bf16 %v5276_v11, %v5276_v11  ;;  %v5280_v49 = vcombine.high %v5276_v11, %v10951_v4 }
 0xf21   : > { %v12407_v1 = vadd.f32 %v4964_v42, %v4960_v28  ;;  %v5286_v22 = vpack.c.bf16 %v5279_v39, %v5279_v39 }
 0xf22   : > { %5462 = vxpose.xlu1.c.b16.start.end [1/1] (short) (narrow) %v5282_v55, 16  ;;  %v5288_v17 = vpack.c.bf16 %v5280_v49, %v5280_v49 }
 0xf23   : > { %v4967_v7 = vpack.c.bf16 %v12407_v1, %v12404_v9 }
 0xf24   : > { %5478 = vxpose.xlu0.c.b16.start.end [1/1] (short) (narrow) %v5283_v5, 16 }
 0xf25   : > { %9928 = vmatmul.mubr.msk.bf16.vlgmr.msra.gmra.mrb[32].mxu1 %vm1043_vm2, %v4967_v7 }
 0xf26   : > { %5510 = vxpose.xlu1.c.b16.start.end [1/1] (short) (narrow) %v5285_v44, 16  ;;  %9941 = vmatprep.mubr.msk.bf16.mxu1 %vm10952_vm1, %v10951_v4 }
 0xf28   : > { %5494 = vxpose.xlu0.c.b16.start.end [1/1] (short) (narrow) %v5284_v12, 16  ;;  %v4974_v12 = vsub.s32 4, %v11817_v8 }
 0xf2a   : > { %5542 = vxpose.xlu1.c.b16.start.end [1/1] (short) (narrow) %v5287_v16, 16  ;;  %v4975_v39 = vrot.slane %v12362_v60, %v4974_v12 }
 0xf2c   : > { %5526 = vxpose.xlu0.c.b16.start.end [1/1] (short) (narrow) %v5286_v22, 16 }
 0xf30   : > { %5558 = vxpose.xlu0.c.b16.start.end [1/1] (short) (narrow) %v5288_v17, 16 }
 0xf86   : > { %v5454_v18 = vpop.trf.xlu0 }
 0xf88   : > { %v5470_v59 = vpop.trf.xlu1 }
 0xf8a   : > { %v5486_v24 = vpop.trf.xlu0 }
 0xf8c   : > { %v5518_v25 = vpop.trf.xlu1 }
 0xf8d   : > { %v5574_v27 = vcombine.low %v5454_v18, %v5518_v25 }
 0xf8e   : > { %v5502_v26 = vpop.trf.xlu0 }
 0xf8f   : > { %v5581_v35 = vrot.slane %v5574_v27, %v11860_v34 }
 0xf90   : > { %v5550_v46 = vpop.trf.xlu1 }
 0xf91   : > { %v5582_v31 = vcombine.low %v5486_v24, %v5550_v46  ;;  %v5107_v24 = vsub.s32 6, %v11817_v8 }
 0xf92   : > { %v5534_v32 = vpop.trf.xlu0 }
 0xf93   : > { %v5608_v33 = vcombine.low %v5470_v59, %v5534_v32  ;;  %v5589_v21 = vrot.slane %v5582_v31, %v11860_v34  ;;  %v5108_v25 = vrot.slane %v12362_v60, %v5107_v24 }
 0xf95   : > { %v5590_v50 = vcombine.low %v5581_v35, %v5589_v21  ;;  %v5591_v14 = vcombine.high %v5581_v35, %v5589_v21  ;;  %v5615_v38 = vrot.slane %v5608_v33, %v11860_v34 }
 0xf96   : > { %v5566_v36 = vpop.trf.xlu0 }
 0xf97   : > { %v5616_v43 = vcombine.low %v5502_v26, %v5566_v36  ;;  %v5598_v47 = vrot.slane %v5590_v50, %v11863_v40  ;;  %v5605_v62 = vrot.slane %v5591_v14, %v11863_v40 }
 0xf99   : > { %v5623_v48 = vrot.slane %v5616_v43, %v11860_v34  ;;  %v5646_v51 = vshrl.u32 %v5598_v47, 16  ;;  %v5607_v53 = vcombine.high %v5605_v62, %v10960_v41  ;;  %v5662_v37 = vshrl.u32 %v5605_v62, 16 }
 0xf9a   : > { %v5606_v52 = vcombine.high %v5598_v47, %v10960_v41 }
 0xf9b   : > { %v5624_v30 = vcombine.low %v5615_v38, %v5623_v48  ;;  %v5625_v29 = vcombine.high %v5615_v38, %v5623_v48  ;;  %v5670_v10 = vshrl.u32 %v5607_v53, 16 }
 0xf9c   : > { %v5654_v55 = vshrl.u32 %v5606_v52, 16 }
 0xf9d   : > { %v5632_v15 = vrot.slane %v5624_v30, %v11863_v40  ;;  %v5639_v42 = vrot.slane %v5625_v29, %v11863_v40 }
 0xf9f   : > { %v5660_v23 = vpack.i.b16 %v5639_v42, %v5605_v62  ;;  %v5644_v20 = vpack.i.b16 %v5632_v15, %v5598_v47  ;;  %v5647_v0 = vshrl.u32 %v5632_v15, 16  ;;  %v5663_v56 = vshrl.u32 %v5639_v42, 16 }
 0xfa0   : > { %v5640_v19 = vcombine.high %v5632_v15, %v10960_v41  ;;  %v5641_v3 = vcombine.high %v5639_v42, %v10960_v41 }
 0xfa1   : > { %5738 = vxpose.xlu0.c.b16.start.end [1/1] (short) (narrow) %v5660_v23, 16  ;;  %5674 = vxpose.xlu1.c.b16.start.end [1/1] (short) (narrow) %v5644_v20, 16  ;;  %v5648_v28 = vpack.i.b16 %v5647_v0, %v5646_v51  ;;  %v5664_v45 = vpack.i.b16 %v5663_v56, %v5662_v37 }
 0xfa2   : > { %v5655_v58 = vshrl.u32 %v5640_v19, 16  ;;  %v5668_v5 = vpack.i.b16 %v5641_v3, %v5607_v53  ;;  %v5671_v6 = vshrl.u32 %v5641_v3, 16  ;;  %v5652_v44 = vpack.i.b16 %v5640_v19, %v5606_v52 }
 0xfa4   : > { %v5672_v7 = vpack.i.b16 %v5671_v6, %v5670_v10  ;;  %v5656_v11 = vpack.i.b16 %v5655_v58, %v5654_v55 }
 0xfa5   : > { %5690 = vxpose.xlu0.c.b16.start.end [1/1] (short) (narrow) %v5648_v28, 16  ;;  %5754 = vxpose.xlu1.c.b16.start.end [1/1] (short) (narrow) %v5664_v45, 16 }
 0xfa9   : > { %5706 = vxpose.xlu0.c.b16.start.end [1/1] (short) (narrow) %v5652_v44, 16  ;;  %5722 = vxpose.xlu1.c.b16.start.end [1/1] (short) (narrow) %v5656_v11, 16 }
 0xff8   : > { %v5025_v16 = vpop.f32.mrb[32].mxu1 }
 0xff9   : > { %v5026_v22 = vadd.f32 %v5025_v16, %v4975_v39  ;;  %v9929_v49 = vpop.f32.mrb[33].mxu1 }
 0xffa   : > { %v5028_v17 = vpop.f32.mrb[34].mxu1 }
 0xffb   : > { %v12434_v18 = vadd.f32 %v5028_v17, %v4975_v39  ;;  %v9930_v59 = vpop.f32.mrb[35].mxu1  ;;  %5118 = vrot.lane.b32.xlu1 %v5026_v22, %s10955_s4  ;;  %5121 = vrot.lane.b32.xlu0 %v5026_v22, %s10954_s18 }
 0xfff   : > { %5124 = vrot.lane.b32.xlu1 %v5026_v22, %s10956_s29 }
0x1007   : > { %v5746_v26 = vpop.trf.xlu0  ;;  %v5682_v27 = vpop.trf.xlu1 }
0x1008   : > { %v5802_v3 = vcombine.low %v5682_v27, %v5746_v26 }
0x100a   : > { %v5809_v55 = vrot.slane %v5802_v3, %v11860_v34 }
0x100b   : > { %v5698_v46 = vpop.trf.xlu0  ;;  %v5762_v31 = vpop.trf.xlu1 }
0x100c   : > { %v5827_v11 = vcombine.low %v5698_v46, %v5762_v31 }
0x100f   : > { %v5730_v32 = vpop.trf.xlu1  ;;  %v5714_v35 = vpop.trf.xlu0 }
0x1019   : > { %5770 = vxpose.xlu0.c.b16.start.end [1/1] (short) (narrow) %v5668_v5, 16 }
0x1022   : > { %5786 = vxpose.xlu1.c.b16.start.end [1/1] (short) (narrow) %v5672_v7, 16  ;;  %5110 = vrot.lane.b32.xlu0 %v5108_v25, %s10953_s20  ;;  %v5834_v25 = vrot.slane %v5827_v11, %v11860_v34 }
0x106d   : > { %v5119_v33 = vpop.permute.xlu1 %5118  ;;  %v5122_v21 = vpop.permute.xlu0 %5121 }
0x106e   : > { %v5127_v50 = vcombine.low %v5026_v22, %v5122_v21  ;;  %v5128_v36 = vcombine.high %v5026_v22, %v5122_v21 }
0x1070   : > { %v5135_v47 = vrot.slane %v5127_v50, %v11860_v34  ;;  %v5142_v60 = vrot.slane %v5128_v36, %v11860_v34 }
0x1071   : > { %v5125_v14 = vpop.permute.xlu1 %5124 }
0x1072   : > { %v5143_v38 = vcombine.low %v5119_v33, %v5125_v14  ;;  %v5144_v43 = vcombine.high %v5119_v33, %v5125_v14 }
0x1074   : > { %v5151_v48 = vrot.slane %v5143_v38, %v11860_v34  ;;  %v5158_v62 = vrot.slane %v5144_v43, %v11860_v34 }
0x1076   : > { %v5159_v30 = vcombine.low %v5135_v47, %v5151_v48  ;;  %v5160_v29 = vcombine.high %v5135_v47, %v5151_v48  ;;  %v5175_v51 = vcombine.low %v5142_v60, %v5158_v62  ;;  %v5176_v53 = vcombine.high %v5142_v60, %v5158_v62 }
0x1078   : > { %v5167_v15 = vrot.slane %v5159_v30, %v11863_v40  ;;  %v5174_v42 = vrot.slane %v5160_v29, %v11863_v40  ;;  %v5183_v37 = vrot.slane %v5175_v51, %v11863_v40  ;;  %v5190_v52 = vrot.slane %v5176_v53, %v11863_v40 }
0x107a   : > { %v5191_v23 = vcombine.high %v5167_v15, %v10951_v4  ;;  %v5192_v20 = vcombine.high %v5174_v42, %v10951_v4  ;;  %v5193_v0 = vcombine.high %v5183_v37, %v10951_v4  ;;  %v5194_v56 = vcombine.high %v5190_v52, %v10951_v4 }
0x107b   : > { %v9662_v58 = vpack.c.bf16 %v5183_v37, %v5167_v15  ;;  %v9663_v5 = vpack.c.bf16 %v5190_v52, %v5174_v42 }
0x107c   : > { %v9664_v28 = vpack.c.bf16 %v5193_v0, %v5191_v23  ;;  %v9665_v45 = vpack.c.bf16 %v5194_v56, %v5192_v20 }
0x107d   : > { %v5391_v39 = vrot.slane %v9662_v58, %v11860_v34  ;;  %v5399_v16 = vrot.slane %v9663_v5, %v11860_v34 }
0x107e   : > { %v5416_v7 = vrot.slane %v9664_v28, %v11860_v34  ;;  %v5424_v44 = vrot.slane %v9665_v45, %v11860_v34 }
0x107f   : > { %v5778_v19 = vpop.trf.xlu0  ;;  %v5400_v27 = vcombine.low %v5391_v39, %v5399_v16 }
0x1080   : > { %v5810_v10 = vcombine.low %v5714_v35, %v5778_v19  ;;  %v5425_v59 = vcombine.low %v5416_v7, %v5424_v44 }
0x1081   : > { %v5407_v31 = vrot.slane %v5400_v27, %v11863_v40 }
0x1082   : > { %v5817_v6 = vrot.slane %v5810_v10, %v11860_v34  ;;  %v5432_v21 = vrot.slane %v5425_v59, %v11863_v40 }
0x1083   : > { %v5437_v42 = vshrl.u32 %v5407_v31, 16  ;;  %v5408_v0 = vcombine.high %v5407_v31, %v10960_v41 }
0x1084   : > { %v5818_v22 = vcombine.low %v5809_v55, %v5817_v6  ;;  %v5438_v43 = vshrl.u32 %v5432_v21, 16  ;;  %v5436_v15 = vpack.i.b16 %v5432_v21, %v5407_v31  ;;  %v5433_v20 = vcombine.high %v5432_v21, %v10960_v41 }
0x1085   : > { %v5443_v3 = vshrl.u32 %v5408_v0, 16 }
0x1086   : > { %v5825_v35 = vrot.slane %v5818_v22, %v11863_v40  ;;  %v5439_v23 = vpack.i.b16 %v5438_v43, %v5437_v42  ;;  %v5444_v56 = vshrl.u32 %v5433_v20, 16  ;;  %v5442_v19 = vpack.i.b16 %v5433_v20, %v5408_v0 }
0x1088   : > { %v5794_v49 = vpop.trf.xlu1  ;;  %v5826_v50 = vcombine.high %v5825_v35, %v10960_v41  ;;  %v5855_v14 = vshrl.u32 %v5825_v35, 16  ;;  %v5445_v10 = vpack.i.b16 %v5444_v56, %v5443_v3 }
0x1089   : > { %v5835_v17 = vcombine.low %v5730_v32, %v5794_v49 }
0x108a   : > { %v5861_v29 = vshrl.u32 %v5826_v50, 16 }
0x108b   : > { %v5842_v26 = vrot.slane %v5835_v17, %v11860_v34 }
0x108d   : > { %v5843_v33 = vcombine.low %v5834_v25, %v5842_v26 }
0x108f   : > { %v5850_v46 = vrot.slane %v5843_v33, %v11863_v40 }
0x1091   : > { %v5854_v36 = vpack.i.b16 %v5850_v46, %v5825_v35  ;;  %v5856_v32 = vshrl.u32 %v5850_v46, 16  ;;  %v5851_v38 = vcombine.high %v5850_v46, %v10960_v41 }
0x1093   : > { %v5868_v47 = vsel %vm1876_vm3, %v5854_v36, 0  ;;  %v5857_v60 = vpack.i.b16 %v5856_v32, %v5855_v14  ;;  %v5860_v48 = vpack.i.b16 %v5851_v38, %v5826_v50  ;;  %v5862_v62 = vshrl.u32 %v5851_v38, 16 }
0x1094   : > { %9940 = vmatpush3.bf16.msra.mxu1 %v5868_v47  ;;  %v12471_v30 = vpop.permute.xlu0 %5110 }
0x1095   : > { %v5113_v51 = vadd.f32 %v12471_v30, %v12369_v54  ;;  %v5914_v53 = vsel %vm1876_vm3, %v5857_v60, 0  ;;  %9951 = vmatprep.subr.bf16.mxu1 %v10951_v4  ;;  %v5863_v37 = vpack.i.b16 %v5862_v62, %v5861_v29  ;;  %v5960_v52 = vsel %vm1876_vm3, %v5860_v48, 0 }
0x1096   : > { %9946 = vmatpush3.bf16.msra.mxu0 %v5914_v53 }
0x1097   : > { %9942 = vmatmul.mubr.msk.bf16.vlgmr.msra.gmra.mrb[36].mxu1 %vm1872_vm4, %v5436_v15  ;;  %5294 = vrot.lane.b32.xlu0 %v5113_v51, %s10956_s29  ;;  %v6006_v54 = vsel %vm1876_vm3, %v5863_v37, 0 }
0x1098   : > { %5290 = vrot.lane.b32.xlu1 %v5113_v51, %s10955_s4  ;;  %9952 = vmatpush3.bf16.msra.mxu1 %v5960_v52 }
0x1099   : > { %9948 = vmatmul.mubr.msk.bf16.vlgmr.msra.gmra.mrb[44].mxu0 %vm1872_vm4, %v5439_v23  ;;  %9957 = vmatprep.subr.bf16.mxu0 %v10951_v4 }
0x109a   : > { %9958 = vmatpush3.bf16.msra.mxu0 %v6006_v54  ;;  %9953 = vmatprep.mubr.msk.bf16.mxu1 %vm10952_vm1, %v10951_v4 }
0x109b   : > { %5296 = vrot.lane.b32.xlu0 %v5113_v51, %s10957_s1  ;;  %9959 = vmatprep.mubr.msk.bf16.mxu0 %vm10952_vm1, %v10951_v4 }
0x109c   : > { %5292 = vrot.lane.b32.xlu1 %v5113_v51, %s10954_s18  ;;  %9963 = vmatprep.subr.bf16.mxu1 %v10951_v4 }
0x109d   : > { %9969 = vmatprep.subr.bf16.mxu0 %v10951_v4 }
0x109f   : > { %9954 = vmatmul.mubr.msk.bf16.vlgmr.msra.gmra.mrb[40].mxu1 %vm1872_vm4, %v5442_v19 }
0x10a0   : > { %9965 = vmatprep.mubr.msk.bf16.mxu1 %vm10952_vm1, %v10951_v4 }
0x10a1   : > { %9960 = vmatmul.mubr.msk.bf16.vlgmr.msra.gmra.mrb[48].mxu0 %vm1872_vm4, %v5445_v10 }
0x10a2   : > { %9971 = vmatprep.mubr.msk.bf16.mxu0 %vm10952_vm1, %v10951_v4 }
0x1109   : > { %v5295_v28 = vpop.permute.xlu0 %5294 }
0x110a   : > { %v5291_v45 = vpop.permute.xlu1 %5290  ;;  %5302 = vrot.lane.b32.xlu0 %v5295_v28, %s10957_s1 }
0x110b   : > { %5298 = vrot.lane.b32.xlu1 %v5291_v45, %s10957_s1 }
0x110d   : > { %v5297_v33 = vpop.permute.xlu0 %5296 }
0x110e   : > { %v5293_v55 = vpop.permute.xlu1 %5292  ;;  %7070 = vrot.lane.b32.xlu0 %v12378_v2, %s10954_s18 }
0x110f   : > { %5300 = vrot.lane.b32.xlu1 %v5293_v55, %s10957_s1 }
0x1113   : > { %7067 = vrot.lane.b32.xlu1 %v12378_v2, %s10955_s4 }
0x1117   : > { %7073 = vrot.lane.b32.xlu1 %v12378_v2, %s10956_s29 }
0x116a   : > { %v12509_v58 = vpop.f32.mrb[36].mxu1 }
0x116b   : > { %v9943_v5 = vpop.f32.mrb[37].mxu1 }
0x116c   : > { %v5907_v6 = vpop.f32.mrb[38].mxu1  ;;  %v12511_v7 = vpop.f32.mrb[44].mxu0 }
0x116d   : > { %v9944_v44 = vpop.f32.mrb[39].mxu1  ;;  %v9949_v11 = vpop.f32.mrb[45].mxu0 }
0x116e   : > { %v5953_v39 = vpop.f32.mrb[46].mxu0 }
0x116f   : > { %v9950_v16 = vpop.f32.mrb[47].mxu0 }
0x1172   : > { %v12513_v22 = vpop.f32.mrb[40].mxu1 }
0x1173   : > { %v9955_v49 = vpop.f32.mrb[41].mxu1 }
0x1174   : > { %v5999_v17 = vpop.f32.mrb[42].mxu1  ;;  %v12515_v59 = vpop.f32.mrb[48].mxu0 }
0x1175   : > { %v9956_v25 = vpop.f32.mrb[43].mxu1  ;;  %v9961_v26 = vpop.f32.mrb[49].mxu0 }
0x1176   : > { %v6045_v27 = vpop.f32.mrb[50].mxu0 }
0x1177   : > { %v9962_v35 = vpop.f32.mrb[51].mxu0 }
0x117c   : > { %v5303_v21 = vpop.permute.xlu0 %5302 }
0x117d   : > { %v5299_v46 = vpop.permute.xlu1 %5298 }
0x117e   : > { %v5324_v31 = vcombine.low %v5299_v46, %v5303_v21  ;;  %v5325_v36 = vcombine.high %v5299_v46, %v5303_v21 }
0x1180   : > { %v5332_v38 = vrot.slane %v5324_v31, %v11860_v34  ;;  %v5339_v48 = vrot.slane %v5325_v36, %v11860_v34  ;;  %v7071_v51 = vpop.permute.xlu0 %7070 }
0x1181   : > { %v5301_v50 = vpop.permute.xlu1 %5300  ;;  %v7076_v42 = vcombine.low %v12378_v2, %v7071_v51  ;;  %v7077_v11 = vcombine.high %v12378_v2, %v7071_v51 }
0x1182   : > { %v5308_v14 = vcombine.low %v5297_v33, %v5301_v50  ;;  %v5309_v32 = vcombine.high %v5297_v33, %v5301_v50 }
0x1183   : > { %v7084_v10 = vrot.slane %v7076_v42, %v11860_v34  ;;  %v7091_v27 = vrot.slane %v7077_v11, %v11860_v34 }
0x1184   : > { %v5316_v43 = vrot.slane %v5308_v14, %v11860_v34  ;;  %v5323_v47 = vrot.slane %v5309_v32, %v11860_v34 }
0x1185   : > { %v7068_v60 = vpop.permute.xlu1 %7067 }
0x1186   : > { %v5340_v62 = vcombine.low %v5316_v43, %v5332_v38  ;;  %v5341_v29 = vcombine.high %v5316_v43, %v5332_v38  ;;  %v5356_v15 = vcombine.low %v5323_v47, %v5339_v48  ;;  %v5357_v0 = vcombine.high %v5323_v47, %v5339_v48 }
0x1188   : > { %v5348_v53 = vrot.slane %v5340_v62, %v11863_v40  ;;  %v5355_v54 = vrot.slane %v5341_v29, %v11863_v40  ;;  %v5364_v3 = vrot.slane %v5356_v15, %v11863_v40  ;;  %v5371_v44 = vrot.slane %v5357_v0, %v11863_v40 }
0x1189   : > { %v7074_v37 = vpop.permute.xlu1 %7073 }
0x118a   : > { %v7092_v52 = vcombine.low %v7068_v60, %v7074_v37  ;;  %v5376_v23 = vpack.c.bf16 %v5348_v53, %v5348_v53  ;;  %v5372_v20 = vcombine.high %v5348_v53, %v10951_v4  ;;  %v5378_v28 = vpack.c.bf16 %v5355_v54, %v5355_v54 }
0x118b   : > { %v5373_v45 = vcombine.high %v5355_v54, %v10951_v4  ;;  %v7093_v55 = vcombine.high %v7068_v60, %v7074_v37  ;;  %v5380_v6 = vpack.c.bf16 %v5364_v3, %v5364_v3  ;;  %v5374_v16 = vcombine.high %v5364_v3, %v10951_v4 }
0x118c   : > { %v7100_v56 = vrot.slane %v7092_v52, %v11860_v34  ;;  %6096 = vxpose.xlu0.c.b16.start.end [1/1] (short) (narrow) %v5376_v23, 16  ;;  %v5377_v19 = vpack.c.bf16 %v5372_v20, %v5372_v20  ;;  %v5382_v25 = vpack.c.bf16 %v5371_v44, %v5371_v44  ;;  %v5375_v33 = vcombine.high %v5371_v44, %v10951_v4 }
0x118d   : > { %v5379_v39 = vpack.c.bf16 %v5373_v45, %v5373_v45  ;;  %v7107_v49 = vrot.slane %v7093_v55, %v11860_v34  ;;  %v5381_v35 = vpack.c.bf16 %v5374_v16, %v5374_v16 }
0x118e   : > { %6112 = vxpose.xlu1.c.b16.start.end [1/1] (short) (narrow) %v5377_v19, 16  ;;  %v7108_v5 = vcombine.low %v7084_v10, %v7100_v56  ;;  %v7109_v17 = vcombine.high %v7084_v10, %v7100_v56  ;;  %v5383_v31 = vpack.c.bf16 %v5375_v33, %v5375_v33 }
0x118f   : > { %v7124_v21 = vcombine.low %v7091_v27, %v7107_v49  ;;  %v7125_v36 = vcombine.high %v7091_v27, %v7107_v49 }
0x1190   : > { %6128 = vxpose.xlu0.c.b16.start.end [1/1] (short) (narrow) %v5378_v28, 16  ;;  %v7116_v26 = vrot.slane %v7108_v5, %v11863_v40  ;;  %v7123_v46 = vrot.slane %v7109_v17, %v11863_v40 }
0x1191   : > { %v7132_v32 = vrot.slane %v7124_v21, %v11863_v40  ;;  %v7139_v60 = vrot.slane %v7125_v36, %v11863_v40 }
0x1192   : > { %6160 = vxpose.xlu1.c.b16.start.end [1/1] (short) (narrow) %v5380_v6, 16  ;;  %v7144_v2 = vpack.c.bf16 %v7116_v26, %v7116_v26  ;;  %v7140_v50 = vcombine.high %v7116_v26, %v10951_v4  ;;  %v7146_v14 = vpack.c.bf16 %v7123_v46, %v7123_v46  ;;  %v7141_v43 = vcombine.high %v7123_v46, %v10951_v4 }
0x1193   : > { %v7148_v47 = vpack.c.bf16 %v7132_v32, %v7132_v32  ;;  %v7142_v62 = vcombine.high %v7132_v32, %v10951_v4  ;;  %v7150_v29 = vpack.c.bf16 %v7139_v60, %v7139_v60  ;;  %v7143_v53 = vcombine.high %v7139_v60, %v10951_v4 }
0x1194   : > { %6144 = vxpose.xlu0.c.b16.start.end [1/1] (short) (narrow) %v5379_v39, 16  ;;  %v7145_v38 = vpack.c.bf16 %v7140_v50, %v7140_v50  ;;  %v7147_v48 = vpack.c.bf16 %v7141_v43, %v7141_v43 }
0x1195   : > { %v7149_v51 = vpack.c.bf16 %v7142_v62, %v7142_v62  ;;  %v7151_v15 = vpack.c.bf16 %v7143_v53, %v7143_v53 }
0x1196   : > { %6192 = vxpose.xlu1.c.b16.start.end [1/1] (short) (narrow) %v5382_v25, 16 }
0x1198   : > { %6176 = vxpose.xlu0.c.b16.start.end [1/1] (short) (narrow) %v5381_v35, 16 }
0x119a   : > { %7309 = vxpose.xlu1.c.b16.start.end [1/1] (short) (narrow) %v7144_v2, 16 }
0x119c   : > { %6208 = vxpose.xlu0.c.b16.start.end [1/1] (short) (narrow) %v5383_v31, 16 }
0x119e   : > { %7341 = vxpose.xlu1.c.b16.start.end [1/1] (short) (narrow) %v7146_v14, 16 }
0x11a0   : > { %7325 = vxpose.xlu0.c.b16.start.end [1/1] (short) (narrow) %v7145_v38, 16 }
0x11a2   : > { %7373 = vxpose.xlu1.c.b16.start.end [1/1] (short) (narrow) %v7148_v47, 16 }
0x11a4   : > { %7357 = vxpose.xlu0.c.b16.start.end [1/1] (short) (narrow) %v7147_v48, 16 }
0x11a6   : > { %7405 = vxpose.xlu1.c.b16.start.end [1/1] (short) (narrow) %v7150_v29, 16 }
0x11a8   : > { %7389 = vxpose.xlu0.c.b16.start.end [1/1] (short) (narrow) %v7149_v51, 16 }
0x11ac   : > { %7421 = vxpose.xlu0.c.b16.start.end [1/1] (short) (narrow) %v7151_v15, 16 }
0x11f2   : > { %v6104_v42 = vpop.trf.xlu0 }
0x11f4   : > { %v6120_v37 = vpop.trf.xlu1 }
0x11f6   : > { %v6136_v52 = vpop.trf.xlu0 }
0x11f8   : > { %v6168_v23 = vpop.trf.xlu1 }
0x11f9   : > { %v6224_v54 = vcombine.low %v6104_v42, %v6168_v23 }
0x11fa   : > { %v6152_v20 = vpop.trf.xlu0 }
0x11fb   : > { %v6231_v3 = vrot.slane %v6224_v54, %v11860_v34 }
0x11fc   : > { %v6200_v0 = vpop.trf.xlu1 }
0x11fd   : > { %v6232_v56 = vcombine.low %v6136_v52, %v6200_v0 }
0x11fe   : > { %v6184_v19 = vpop.trf.xlu0 }
0x11ff   : > { %v6239_v10 = vrot.slane %v6232_v56, %v11860_v34  ;;  %v6258_v55 = vcombine.low %v6120_v37, %v6184_v19 }
0x1200   : > { %v7317_v28 = vpop.trf.xlu1 }
0x1201   : > { %v6240_v45 = vcombine.low %v6231_v3, %v6239_v10  ;;  %v6265_v39 = vrot.slane %v6258_v55, %v11860_v34  ;;  %v6241_v26 = vcombine.high %v6231_v3, %v6239_v10 }
0x1202   : > { %v6216_v5 = vpop.trf.xlu0 }
0x1203   : > { %v6266_v6 = vcombine.low %v6152_v20, %v6216_v5  ;;  %v6248_v44 = vrot.slane %v6240_v45, %v11863_v40  ;;  %v6255_v32 = vrot.slane %v6241_v26, %v11863_v40 }
0x1204   : > { %v7349_v11 = vpop.trf.xlu1 }
0x1205   : > { %v6273_v16 = vrot.slane %v6266_v6, %v11860_v34  ;;  %v6256_v35 = vcombine.high %v6248_v44, %v10960_v41  ;;  %v6296_v50 = vshrl.u32 %v6248_v44, 16  ;;  %v6312_v52 = vshrl.u32 %v6255_v32, 16 }
0x1206   : > { %v7333_v49 = vpop.trf.xlu0  ;;  %v6257_v0 = vcombine.high %v6255_v32, %v10960_v41 }
0x1207   : > { %v6274_v17 = vcombine.low %v6265_v39, %v6273_v16  ;;  %v6275_v25 = vcombine.high %v6265_v39, %v6273_v16  ;;  %v6304_v38 = vshrl.u32 %v6256_v35, 16 }
0x1208   : > { %v7381_v27 = vpop.trf.xlu1 }
0x1209   : > { %v6282_v33 = vrot.slane %v6274_v17, %v11863_v40  ;;  %v7437_v21 = vcombine.low %v7317_v28, %v7381_v27  ;;  %v6289_v2 = vrot.slane %v6275_v25, %v11863_v40 }
0x120a   : > { %v7365_v46 = vpop.trf.xlu0 }
0x120b   : > { %v6294_v31 = vpack.i.b16 %v6282_v33, %v6248_v44  ;;  %v6297_v36 = vshrl.u32 %v6282_v33, 16  ;;  %v6290_v14 = vcombine.high %v6282_v33, %v10960_v41  ;;  %v7444_v60 = vrot.slane %v7437_v21, %v11860_v34 }
0x120c   : > { %v7413_v43 = vpop.trf.xlu1  ;;  %v6313_v51 = vshrl.u32 %v6289_v2, 16  ;;  %v6291_v37 = vcombine.high %v6289_v2, %v10960_v41  ;;  %v6310_v6 = vpack.i.b16 %v6289_v2, %v6255_v32  ;;  %v6320_v44 = vshrl.u32 %v6257_v0, 16 }
0x120d   : > { %6324 = vxpose.xlu1.c.b16.start.end [1/1] (short) (narrow) %v6294_v31, 16  ;;  %v6298_v47 = vpack.i.b16 %v6297_v36, %v6296_v50  ;;  %v6305_v48 = vshrl.u32 %v6290_v14, 16  ;;  %v7445_v62 = vcombine.low %v7349_v11, %v7413_v43  ;;  %v6302_v23 = vpack.i.b16 %v6290_v14, %v6256_v35  ;;  %v5115_v35 = vld [vmem:[%s13178_s24] sm:$0xf] }
0x120e   : > { %v7397_v29 = vpop.trf.xlu0  ;;  %v6314_v10 = vpack.i.b16 %v6313_v51, %v6312_v52  ;;  %v6321_v28 = vshrl.u32 %v6291_v37, 16  ;;  %v6318_v27 = vpack.i.b16 %v6291_v37, %v6257_v0  ;;  %v5116_v32 = vunpack.c.l.bf16 %v5115_v35 }
0x120f   : > { %6340 = vxpose.xlu0.c.b16.start.end [1/1] (short) (narrow) %v6298_v47, 16  ;;  %v7471_v53 = vcombine.low %v7333_v49, %v7397_v29  ;;  %v6306_v15 = vpack.i.b16 %v6305_v48, %v6304_v38  ;;  %v7452_v42 = vrot.slane %v7445_v62, %v11860_v34 }
0x1210   : > { %v6322_v16 = vpack.i.b16 %v6321_v28, %v6320_v44  ;;  %v5905_v29 = vadd.f32 %v12509_v58, %v5116_v32  ;;  %v12595_v51 = vadd.f32 %v12515_v59, %v5116_v32  ;;  %v12602_v37 = vadd.f32 %v12513_v22, %v5116_v32 }
0x1211   : > { %6372 = vxpose.xlu1.c.b16.start.end [1/1] (short) (narrow) %v6306_v15, 16  ;;  %v7453_v20 = vcombine.low %v7444_v60, %v7452_v42  ;;  %v7454_v54 = vcombine.high %v7444_v60, %v7452_v42  ;;  %v7478_v19 = vrot.slane %v7471_v53, %v11860_v34  ;;  %v5951_v15 = vadd.f32 %v12511_v7, %v5116_v32 }
0x1212   : > { %v7429_v56 = vpop.trf.xlu0  ;;  %v6048_v53 = vsel %vm1872_vm4, %v5905_v29, -inf  ;;  %v6057_v42 = vsel %vm1872_vm4, %v12595_v51, -inf  ;;  %v6054_v58 = vsel %vm1872_vm4, %v12602_v37, -inf }
0x1213   : > { %6356 = vxpose.xlu0.c.b16.start.end [1/1] (short) (narrow) %v6302_v23, 16  ;;  %v7479_v3 = vcombine.low %v7365_v46, %v7429_v56  ;;  %v12559_v45 = vrot.slane %v7454_v54, %v11863_v40  ;;  %v7461_v5 = vrot.slane %v7453_v20, %v11863_v40  ;;  %v6051_v52 = vsel %vm1872_vm4, %v5951_v15, -inf }
0x1215   : > { %v7486_v55 = vrot.slane %v7479_v3, %v11860_v34  ;;  %6404 = vxpose.xlu1.c.b16.start.end [1/1] (short) (narrow) %v6314_v10, 16  ;;  %v7469_v49 = vcombine.high %v7461_v5, %v10960_v41  ;;  %v12566_v17 = vcombine.high %v12559_v45, %v10960_v41  ;;  %v7525_v33 = vshrl.u32 %v12559_v45, 16 }
0x1216   : > { %v7509_v59 = vshrl.u32 %v7461_v5, 16 }
0x1217   : > { %v7487_v11 = vcombine.low %v7478_v19, %v7486_v55  ;;  %v7488_v39 = vcombine.high %v7478_v19, %v7486_v55  ;;  %6388 = vxpose.xlu0.c.b16.start.end [1/1] (short) (narrow) %v6310_v6, 16  ;;  %v7517_v46 = vshrl.u32 %v7469_v49, 16  ;;  %v7533_v14 = vshrl.u32 %v12566_v17, 16 }
0x1219   : > { %v7495_v25 = vrot.slane %v7487_v11, %v11863_v40  ;;  %v12570_v26 = vrot.slane %v7488_v39, %v11863_v40  ;;  %6436 = vxpose.xlu1.c.b16.start.end [1/1] (short) (narrow) %v6322_v16, 16 }
0x121b   : > { %6420 = vxpose.xlu0.c.b16.start.end [1/1] (short) (narrow) %v6318_v27, 16  ;;  %v7507_v21 = vpack.i.b16 %v7495_v25, %v7461_v5  ;;  %v7503_v2 = vcombine.high %v7495_v25, %v10960_v41  ;;  %v7523_v31 = vpack.i.b16 %v12570_v26, %v12559_v45  ;;  %v12580_v50 = vcombine.high %v12570_v26, %v10960_v41 }
0x121c   : > { %v7526_v36 = vshrl.u32 %v12570_v26, 16  ;;  %v7510_v23 = vshrl.u32 %v7495_v25, 16 }
0x121d   : > { %v7518_v38 = vshrl.u32 %v7503_v2, 16  ;;  %v7531_v43 = vpack.i.b16 %v12580_v50, %v12566_v17  ;;  %v7534_v60 = vshrl.u32 %v12580_v50, 16  ;;  %v7515_v54 = vpack.i.b16 %v7503_v2, %v7469_v49 }
0x121e   : > { %v12586_v47 = vpack.i.b16 %v7526_v36, %v7525_v33  ;;  %v7511_v20 = vpack.i.b16 %v7510_v23, %v7509_v59 }
0x121f   : > { %7537 = vxpose.xlu0.c.b16.start.end [1/1] (short) (narrow) %v7507_v21, 16  ;;  %v12589_v48 = vpack.i.b16 %v7518_v38, %v7517_v46  ;;  %v12591_v62 = vpack.i.b16 %v7534_v60, %v7533_v14 }
0x1226   : > { %6049 = vmax.xlane.f32.xlu1 %v6048_v53 }
0x122a   : > { %6058 = vmax.xlane.f32.xlu1 %v6057_v42 }
0x122c   : > { %6052 = vmax.xlane.f32.xlu0 %v6051_v52 }
0x1230   : > { %6055 = vmax.xlane.f32.xlu0 %v6054_v58 }
0x1257   : > { %7553 = vxpose.xlu1.c.b16.start.end [1/1] (short) (narrow) %v7511_v20, 16 }
0x125d   : > { %7569 = vxpose.xlu0.c.b16.start.end [1/1] (short) (narrow) %v7515_v54, 16 }
0x1273   : > { %v6332_v7 = vpop.trf.xlu1 }
0x1275   : > { %v6348_v0 = vpop.trf.xlu0 }
0x1277   : > { %v6380_v56 = vpop.trf.xlu1 }
0x1279   : > { %v6364_v19 = vpop.trf.xlu0 }
0x127b   : > { %v6412_v3 = vpop.trf.xlu1 }
0x127c   : > { %v6477_v22 = vcombine.low %v6348_v0, %v6412_v3 }
0x127d   : > { %v6396_v10 = vpop.trf.xlu0 }
0x127e   : > { %v6452_v28 = vcombine.low %v6332_v7, %v6396_v10  ;;  %v6484_v6 = vrot.slane %v6477_v22, %v11860_v34 }
0x127f   : > { %v6444_v55 = vpop.trf.xlu1 }
0x1280   : > { %v6485_v44 = vcombine.low %v6380_v56, %v6444_v55  ;;  %v6459_v5 = vrot.slane %v6452_v28, %v11860_v34 }
0x1281   : > { %v6428_v11 = vpop.trf.xlu0 }
0x1282   : > { %v6460_v39 = vcombine.low %v6364_v19, %v6428_v11  ;;  %v6492_v16 = vrot.slane %v6485_v44, %v11860_v34  ;;  %v5114_v11 = vadd.f32 %v12471_v30, %v12375_v61 }
0x1284   : > { %v6467_v49 = vrot.slane %v6460_v39, %v11860_v34  ;;  %v6493_v25 = vcombine.low %v6484_v6, %v6492_v16 }
0x1285   : > { %v12637_v58 = vpop.trf.xlu0 }
0x1286   : > { %v6468_v27 = vcombine.low %v6459_v5, %v6467_v49  ;;  %v12612_v35 = vrot.slane %v6493_v25, %v11863_v40 }
0x1288   : > { %v12615_v33 = vrot.slane %v6468_v27, %v11863_v40  ;;  %v12619_v21 = vcombine.high %v12612_v35, %v10960_v41  ;;  %v6506_v2 = vshrl.u32 %v12612_v35, 16 }
0x128a   : > { %v12624_v46 = vcombine.high %v12615_v33, %v10960_v41  ;;  %v6505_v36 = vshrl.u32 %v12615_v33, 16  ;;  %v6504_v14 = vpack.i.b16 %v12612_v35, %v12615_v33  ;;  %v6512_v32 = vshrl.u32 %v12619_v21, 16 }
0x128c   : > { %v6511_v38 = vshrl.u32 %v12624_v46, 16  ;;  %v12631_v60 = vpack.i.b16 %v6506_v2, %v6505_v36  ;;  %v6510_v53 = vpack.i.b16 %v12619_v21, %v12624_v46 }
0x128e   : > { %v12635_v42 = vpack.i.b16 %v6512_v32, %v6511_v38 }
0x12b3   : > { %v6050_v52 = vpop.xlane.xlu1 %6049 }
0x12b4   : > { %v6060_v59 = vsub.f32 %v5905_v29, %v6050_v52 }
0x12b6   : > { %v6064_v23 = vmul.f32 1.442695, %v6060_v59 }
0x12b7   : > { %v6059_v22 = vpop.xlane.xlu1 %6058 }
0x12b8   : > { %10307 = vpow2.f32 %v6064_v23  ;;  %v6063_v29 = vsub.f32 %v12595_v51, %v6059_v22 }
0x12b9   : > { %v6053_v20 = vpop.xlane.xlu0 %6052 }
0x12ba   : > { %v6061_v54 = vsub.f32 %v5951_v15, %v6053_v20  ;;  %v6070_v10 = vmul.f32 1.442695, %v6063_v29 }
0x12bc   : > { %v6066_v7 = vmul.f32 1.442695, %v6061_v54 }
0x12bd   : > { %v6056_v55 = vpop.xlane.xlu0 %6055 }
0x12be   : > { %10309 = vpow2.f32 %v6066_v7  ;;  %v6062_v6 = vsub.f32 %v12602_v37, %v6056_v55  ;;  %v12665_v37 = vpop.trf.xlu1 }
0x12bf   : > { %10311 = vpow2.f32 %v6070_v10 }
0x12c0   : > { %v6068_v44 = vmul.f32 1.442695, %v6062_v6 }
0x12c2   : > { %v10308_v0 = vpop.eup %10307  ;;  %10313 = vpow2.f32 %v6068_v44 }
0x12c3   : > { %v6072_v56 = vsel %vm1872_vm4, %v10308_v0, 0.0  ;;  %v12668_v39 = vpop.trf.xlu0 }
0x12c4   : > { %6073 = vadd.xlane.f32.xlu1 %v6072_v56 }
0x12c8   : > { %v10310_v19 = vpop.eup %10309 }
0x12c9   : > { %v6075_v3 = vsel %vm1872_vm4, %v10310_v19, 0.0  ;;  %v10312_v15 = vpop.eup %10311 }
0x12ca   : > { %6076 = vadd.xlane.f32.xlu0 %v6075_v3  ;;  %v6081_v28 = vsel %vm1872_vm4, %v10312_v15, 0.0 }
0x12cc   : > { %v12651_v51 = vpop.eup %10313 }
0x12e0   : > { %6984 = vrot.lane.b32.xlu0 %v12434_v18, %s10954_s18 }
0x12f1   : > { %7585 = vxpose.xlu1.c.b16.start.end [1/1] (short) (narrow) %v12589_v48, 16  ;;  %v6078_v48 = vsel %vm1872_vm4, %v12651_v51, 0.0 }
0x12f5   : > { %6981 = vrot.lane.b32.xlu1 %v12434_v18, %s10955_s4 }
0x12f9   : > { %6987 = vrot.lane.b32.xlu1 %v12434_v18, %s10956_s29 }
0x12ff   : > { %6082 = vadd.xlane.f32.xlu0 %v6081_v28 }
0x131d   : > { %6079 = vadd.xlane.f32.xlu1 %v6078_v48 }
0x132c   : > { %7601 = vxpose.xlu0.c.b16.start.end [1/1] (short) (narrow) %v7523_v31, 16 }
0x1330   : > { %7633 = vxpose.xlu0.c.b16.start.end [1/1] (short) (narrow) %v7531_v43, 16 }
0x1339   : > { %7153 = vrot.lane.b32.xlu0 %v5114_v11, %s10955_s4 }
0x134a   : > { %7617 = vxpose.xlu1.c.b16.start.end [1/1] (short) (narrow) %v12586_v47, 16 }
0x134e   : > { %7649 = vxpose.xlu1.c.b16.start.end [1/1] (short) (narrow) %v12591_v62, 16 }
0x1351   : > { %v6074_v5 = vpop.xlane.xlu1 %6073 }
0x1352   : > { %10315 = vrcp.f32 %v6074_v5  ;;  %7155 = vrot.lane.b32.xlu1 %v5114_v11, %s10954_s18 }
0x1356   : > { %7157 = vrot.lane.b32.xlu1 %v5114_v11, %s10956_s29 }
0x1357   : > { %v6077_v45 = vpop.xlane.xlu0 %6076  ;;  %v7593_v16 = vpop.trf.xlu1 }
0x1358   : > { %10317 = vrcp.f32 %v6077_v45 }
0x135a   : > { %7159 = vrot.lane.b32.xlu1 %v5114_v11, %s10957_s1 }
0x135b   : > { %v6985_v62 = vpop.permute.xlu0 %6984 }
0x135c   : > { %v10316_v61 = vpop.eup %10315  ;;  %v6990_v32 = vcombine.low %v12434_v18, %v6985_v62 }
0x135d   : > { %v6088_v30 = vmul.f32 %v10316_v61, %v10308_v0 }
0x135e   : > { %v6998_v23 = vrot.slane %v6990_v32, %v11860_v34 }
0x135f   : > { %v6092_v17 = vpack.c.bf16 %v6088_v30, %v6088_v30 }
0x1361   : > { %v6518_v26 = vsel %vm1872_vm4, %v6092_v17, 0 }
0x1362   : > { %v10318_v31 = vpop.eup %10317  ;;  %9964 = vmatpush3.bf16.xpose.msra.mxu1 %v6518_v26 }
0x1363   : > { %v6089_v50 = vmul.f32 %v10318_v31, %v10310_v19  ;;  %9975 = vmatprep.subr.bf16.mxu1 %v10951_v4 }
0x1365   : > { %v6093_v43 = vpack.c.bf16 %v6089_v50, %v6089_v50 }
0x1367   : > { %v6564_v47 = vsel %vm1872_vm4, %v6093_v43, 0  ;;  %v6982_v25 = vpop.permute.xlu1 %6981 }
0x1368   : > { %9970 = vmatpush3.bf16.xpose.msra.mxu0 %v6564_v47 }
0x1369   : > { %9966 = vmatmul.mubr.msk.bf16.vlgmr.msra.gmra.mrb[44].mxu1 %vm1872_vm4, %v6504_v14  ;;  %9981 = vmatprep.subr.bf16.mxu0 %v10951_v4 }
0x136a   : > { %9977 = vmatprep.mubr.msk.bf16.mxu1 %vm10952_vm1, %v10951_v4 }
0x136b   : > { %v6988_v35 = vpop.permute.xlu1 %6987 }
0x136c   : > { %v7006_v2 = vcombine.low %v6982_v25, %v6988_v35  ;;  %v7007_v14 = vcombine.high %v6982_v25, %v6988_v35 }
0x136e   : > { %v7014_v52 = vrot.slane %v7006_v2, %v11860_v34  ;;  %v7021_v59 = vrot.slane %v7007_v14, %v11860_v34 }
0x136f   : > { %9972 = vmatmul.mubr.msk.bf16.vlgmr.msra.gmra.mrb[52].mxu0 %vm1872_vm4, %v12631_v60  ;;  %v6991_v60 = vcombine.high %v12434_v18, %v6985_v62 }
0x1370   : > { %9983 = vmatprep.mubr.msk.bf16.mxu0 %vm10952_vm1, %v10951_v4  ;;  %v7022_v7 = vcombine.low %v6998_v23, %v7014_v52  ;;  %v7023_v0 = vcombine.high %v6998_v23, %v7014_v52 }
0x1371   : > { %v7005_v20 = vrot.slane %v6991_v60, %v11860_v34 }
0x1372   : > { %v7030_v18 = vrot.slane %v7022_v7, %v11863_v40  ;;  %v7037_v3 = vrot.slane %v7023_v0, %v11863_v40 }
0x1373   : > { %v7038_v56 = vcombine.low %v7005_v20, %v7021_v59  ;;  %v7039_v19 = vcombine.high %v7005_v20, %v7021_v59 }
0x1374   : > { %v7055_v28 = vcombine.high %v7037_v3, %v10951_v4 }
0x1375   : > { %v7046_v22 = vrot.slane %v7038_v56, %v11863_v40  ;;  %v7053_v29 = vrot.slane %v7039_v19, %v11863_v40 }
0x1377   : > { %v7056_v6 = vcombine.high %v7046_v22, %v10951_v4  ;;  %v9677_v17 = vpack.c.bf16 %v7046_v22, %v7030_v18  ;;  %v9678_v26 = vpack.c.bf16 %v7053_v29, %v7037_v3 }
0x1379   : > { %v7262_v25 = vrot.slane %v9678_v26, %v11860_v34 }
0x138c   : > { %v6083_v49 = vpop.xlane.xlu0 %6082 }
0x138d   : > { %10319 = vrcp.f32 %v6083_v49 }
0x1392   : > { %v7609_v54 = vpop.trf.xlu0 }
0x1393   : > { %v7665_v11 = vcombine.low %v12637_v58, %v7609_v54  ;;  %v7254_v58 = vrot.slane %v9677_v17, %v11860_v34 }
0x1395   : > { %v7672_v31 = vrot.slane %v7665_v11, %v11860_v34 }
0x1396   : > { %v7641_v10 = vpop.trf.xlu0 }
0x1397   : > { %v10320_v27 = vpop.eup %10319  ;;  %v7673_v44 = vcombine.low %v12668_v39, %v7641_v10 }
0x1398   : > { %v6091_v33 = vmul.f32 %v10320_v27, %v10312_v15  ;;  %v7054_v15 = vcombine.high %v7030_v18, %v10951_v4 }
0x1399   : > { %v7680_v61 = vrot.slane %v7673_v44, %v11860_v34 }
0x139a   : > { %v6095_v36 = vpack.c.bf16 %v6091_v33, %v6091_v33  ;;  %v9679_v5 = vpack.c.bf16 %v7056_v6, %v7054_v15 }
0x139b   : > { %v7681_v39 = vcombine.low %v7672_v31, %v7680_v61 }
0x139c   : > { %v6656_v38 = vsel %vm1872_vm4, %v6095_v36, 0  ;;  %v7279_v50 = vrot.slane %v9679_v5, %v11860_v34 }
0x139d   : > { %9982 = vmatpush3.bf16.xpose.msra.mxu0 %v6656_v38  ;;  %v7688_v2 = vrot.slane %v7681_v39, %v11863_v40  ;;  %v7263_v38 = vcombine.low %v7254_v58, %v7262_v25  ;;  %v9676_v58 = vld [vmem:[%s13179_s2 + $0x4] sm:$0xf] }
0x139e   : > { %9993 = vmatprep.subr.bf16.mxu0 %v10951_v4 }
0x139f   : > { %v7718_v23 = vshrl.u32 %v7688_v2, 16 }
0x13a4   : > { %9984 = vmatmul.mubr.msk.bf16.vlgmr.msra.gmra.mrb[56].mxu0 %vm1872_vm4, %v12635_v42  ;;  %v7057_v42 = vcombine.high %v7053_v29, %v10951_v4 }
0x13a5   : > { %9995 = vmatprep.mubr.msk.bf16.mxu0 %vm10952_vm1, %v10951_v4 }
0x13a6   : > { %v9680_v45 = vpack.c.bf16 %v7057_v42, %v7055_v28 }
0x13a8   : > { %v7287_v43 = vrot.slane %v9680_v45, %v11860_v34 }
0x13aa   : > { %v6080_v55 = vpop.xlane.xlu1 %6079  ;;  %v7288_v33 = vcombine.low %v7279_v50, %v7287_v43 }
0x13ab   : > { %10321 = vrcp.f32 %v6080_v55  ;;  %v7154_v48 = vpop.permute.xlu0 %7153 }
0x13ac   : > { %7161 = vrot.lane.b32.xlu0 %v7154_v48, %s10957_s1  ;;  %v7295_v52 = vrot.slane %v7288_v33, %v11863_v40 }
0x13ae   : > { %v7301_v56 = vshrl.u32 %v7295_v52, 16  ;;  %v7296_v28 = vcombine.high %v7295_v52, %v10960_v41 }
0x13b0   : > { %v7625_v30 = vpop.trf.xlu1  ;;  %v7307_v6 = vshrl.u32 %v7296_v28, 16 }
0x13b1   : > { %v7690_v47 = vcombine.low %v12665_v37, %v7625_v30 }
0x13b3   : > { %v7697_v36 = vrot.slane %v7690_v47, %v11860_v34 }
0x13b4   : > { %v7657_v62 = vpop.trf.xlu1 }
0x13b5   : > { %v10322_v49 = vpop.eup %10321  ;;  %v7698_v27 = vcombine.low %v7593_v16, %v7657_v62  ;;  %v7689_v16 = vcombine.high %v7688_v2, %v10960_v41 }
0x13b6   : > { %v6090_v35 = vmul.f32 %v10322_v49, %v12651_v51  ;;  %v7270_v51 = vrot.slane %v7263_v38, %v11863_v40 }
0x13b7   : > { %v7705_v14 = vrot.slane %v7698_v27, %v11860_v34  ;;  %v7724_v19 = vshrl.u32 %v7689_v16, 16  ;;  %v6979_v27 = vunpack.c.l.bf16 %v9676_v58 }
0x13b8   : > { %v6094_v32 = vpack.c.bf16 %v6090_v35, %v6090_v35  ;;  %v7300_v22 = vshrl.u32 %v7270_v51, 16  ;;  %v7271_v46 = vcombine.high %v7270_v51, %v10960_v41  ;;  %v7299_v42 = vpack.i.b16 %v7295_v52, %v7270_v51 }
0x13b9   : > { %v7706_v60 = vcombine.low %v7697_v36, %v7705_v14 }
0x13ba   : > { %v6610_v37 = vsel %vm1872_vm4, %v6094_v32, 0  ;;  %v7302_v15 = vpack.i.b16 %v7301_v56, %v7300_v22  ;;  %v7306_v44 = vshrl.u32 %v7271_v46, 16  ;;  %v7305_v5 = vpack.i.b16 %v7296_v28, %v7271_v46 }
0x13bb   : > { %v7713_v59 = vrot.slane %v7706_v60, %v11863_v40  ;;  %9976 = vmatpush3.bf16.xpose.msra.mxu1 %v6610_v37 }
0x13bc   : > { %9987 = vmatprep.subr.bf16.mxu1 %v10951_v4  ;;  %v7308_v11 = vpack.i.b16 %v7307_v6, %v7306_v44 }
0x13bd   : > { %v7719_v20 = vshrl.u32 %v7713_v59, 16  ;;  %v7714_v54 = vcombine.high %v7713_v59, %v10960_v41  ;;  %v7717_v7 = vpack.i.b16 %v7713_v59, %v7688_v2 }
0x13bf   : > { %v7720_v0 = vpack.i.b16 %v7719_v20, %v7718_v23  ;;  %v7725_v18 = vshrl.u32 %v7714_v54, 16  ;;  %v7731_v10 = vsel %vm1876_vm3, %v7717_v7, 0 }
0x13c1   : > { %v7777_v3 = vsel %vm1876_vm3, %v7720_v0, 0  ;;  %v7726_v29 = vpack.i.b16 %v7725_v18, %v7724_v19 }
0x13c2   : > { %9978 = vmatmul.mubr.msk.bf16.vlgmr.msra.gmra.mrb[48].mxu1 %vm1872_vm4, %v6510_v53  ;;  %9994 = vmatpush3.bf16.msra.mxu0 %v7777_v3  ;;  %v7723_v53 = vpack.i.b16 %v7714_v54, %v7689_v16 }
0x13c3   : > { %9988 = vmatpush3.bf16.msra.mxu1 %v7731_v10  ;;  %10005 = vmatprep.subr.bf16.mxu0 %v10951_v4  ;;  %v7869_v21 = vsel %vm1876_vm3, %v7726_v29, 0 }
0x13c4   : > { %v7156_v55 = vpop.permute.xlu1 %7155  ;;  %9989 = vmatprep.mubr.msk.bf16.mxu1 %vm10952_vm1, %v10951_v4  ;;  %9999 = vmatprep.subr.bf16.mxu1 %v10951_v4  ;;  %v7823_v48 = vsel %vm1876_vm3, %v7723_v53, 0 }
0x13c5   : > { %9996 = vmatmul.mubr.msk.bf16.vlgmr.msra.gmra.mrb[60].mxu0 %vm1872_vm4, %v7302_v15  ;;  %7163 = vrot.lane.b32.xlu1 %v7156_v55, %s10957_s1 }
0x13c6   : > { %10006 = vmatpush3.bf16.msra.mxu0 %v7869_v21  ;;  %10007 = vmatprep.mubr.msk.bf16.mxu0 %vm10952_vm1, %v10951_v4 }
0x13c7   : > { %10017 = vmatprep.subr.bf16.mxu0 %v10951_v4 }
0x13c8   : > { %v7158_v15 = vpop.permute.xlu1 %7157 }
0x13ca   : > { %9990 = vmatmul.mubr.msk.bf16.vlgmr.msra.gmra.mrb[52].mxu1 %vm1872_vm4, %v7299_v42 }
0x13cb   : > { %10000 = vmatpush3.bf16.msra.mxu1 %v7823_v48  ;;  %10001 = vmatprep.mubr.msk.bf16.mxu1 %vm10952_vm1, %v10951_v4 }
0x13cc   : > { %10011 = vmatprep.subr.bf16.mxu1 %v10951_v4  ;;  %v7160_v28 = vpop.permute.xlu1 %7159 }
0x13cd   : > { %10008 = vmatmul.mubr.msk.bf16.vlgmr.msra.gmra.mrb[64].mxu0 %vm1872_vm4, %v7308_v11 }
0x13ce   : > { %10019 = vmatprep.mubr.msk.bf16.mxu0 %vm10952_vm1, %v10951_v4 }
0x13d2   : > { %10002 = vmatmul.mubr.msk.bf16.vlgmr.msra.gmra.mrb[56].mxu1 %vm1872_vm4, %v7305_v5 }
0x13d3   : > { %10013 = vmatprep.mubr.msk.bf16.mxu1 %vm10952_vm1, %v10951_v4 }
0x141e   : > { %v7162_v53 = vpop.permute.xlu0 %7161 }
0x1437   : > { %v7164_v55 = vpop.permute.xlu1 %7163 }
0x1438   : > { %v7171_v46 = vcombine.low %v7160_v28, %v7164_v55  ;;  %v7172_v42 = vcombine.high %v7160_v28, %v7164_v55 }
0x143a   : > { %v7179_v11 = vrot.slane %v7171_v46, %v11860_v34 }
0x143c   : > { %v12757_v45 = vpop.f32.mrb[44].mxu1 }
0x143d   : > { %v9967_v61 = vpop.f32.mrb[45].mxu1 }
0x143e   : > { %v6557_v30 = vpop.f32.mrb[46].mxu1 }
0x143f   : > { %v9968_v17 = vpop.f32.mrb[47].mxu1  ;;  %v7186_v30 = vrot.slane %v7172_v42, %v11860_v34 }
0x1442   : > { %v12759_v26 = vpop.f32.mrb[52].mxu0 }
0x1443   : > { %v9973_v31 = vpop.f32.mrb[53].mxu0 }
0x1444   : > { %v6603_v50 = vpop.f32.mrb[54].mxu0 }
0x1445   : > { %v9974_v43 = vpop.f32.mrb[55].mxu0 }
0x1477   : > { %v12761_v39 = vpop.f32.mrb[56].mxu0 }
0x1478   : > { %v9985_v47 = vpop.f32.mrb[57].mxu0 }
0x1479   : > { %v6695_v62 = vpop.f32.mrb[58].mxu0 }
0x147a   : > { %v9986_v49 = vpop.f32.mrb[59].mxu0 }
0x1495   : > { %v12765_v25 = vpop.f32.mrb[48].mxu1 }
0x1496   : > { %v9979_v35 = vpop.f32.mrb[49].mxu1 }
0x1497   : > { %v6649_v33 = vpop.f32.mrb[50].mxu1 }
0x1498   : > { %v9980_v2 = vpop.f32.mrb[51].mxu1  ;;  %v7813_v36 = vpop.f32.mrb[60].mxu0 }
0x1499   : > { %v12767_v14 = vadd.f32 %v7813_v36, %v6979_v27  ;;  %v9997_v32 = vpop.f32.mrb[61].mxu0 }
0x149a   : > { %v7816_v38 = vpop.f32.mrb[62].mxu0 }
0x149b   : > { %v9998_v60 = vpop.f32.mrb[63].mxu0  ;;  %v7914_v37 = vsel %vm1872_vm4, %v12767_v14, -inf }
0x149c   : > { %7915 = vmax.xlane.f32.xlu1 %v7914_v37 }
0x149d   : > { %v7767_v52 = vpop.f32.mrb[52].mxu1 }
0x149e   : > { %v12771_v59 = vadd.f32 %v7767_v52, %v6979_v27  ;;  %v9991_v16 = vpop.f32.mrb[53].mxu1 }
0x149f   : > { %v7770_v51 = vpop.f32.mrb[54].mxu1 }
0x14a0   : > { %v9992_v23 = vpop.f32.mrb[55].mxu1  ;;  %v7905_v20 = vpop.f32.mrb[64].mxu0  ;;  %v7911_v54 = vsel %vm1872_vm4, %v12771_v59, -inf }
0x14a1   : > { %v12775_v7 = vadd.f32 %v7905_v20, %v6979_v27  ;;  %7912 = vmax.xlane.f32.xlu0 %v7911_v54  ;;  %v10009_v0 = vpop.f32.mrb[65].mxu0 }
0x14a2   : > { %v7908_v56 = vpop.f32.mrb[66].mxu0 }
0x14a3   : > { %v10010_v19 = vpop.f32.mrb[67].mxu0  ;;  %v7920_v60 = vsel %vm1872_vm4, %v12775_v7, -inf }
0x14a5   : > { %v7859_v18 = vpop.f32.mrb[56].mxu1 }
0x14a6   : > { %v12777_v3 = vadd.f32 %v7859_v18, %v6979_v27  ;;  %v10003_v22 = vpop.f32.mrb[57].mxu1 }
0x14a7   : > { %v7862_v29 = vpop.f32.mrb[58].mxu1 }
0x14a8   : > { %v10004_v10 = vpop.f32.mrb[59].mxu1  ;;  %v7917_v38 = vsel %vm1872_vm4, %v12777_v3, -inf }
0x14ad   : > { %7165 = vrot.lane.b32.xlu1 %v7158_v15, %s10957_s1 }
0x1529   : > { %v12780_v21 = vpop.xlane.xlu1 %7915 }
0x152d   : > { %v7166_v6 = vpop.permute.xlu1 %7165 }
0x152e   : > { %v7187_v44 = vcombine.low %v7162_v53, %v7166_v6  ;;  %v7188_v48 = vcombine.high %v7162_v53, %v7166_v6  ;;  %v7913_v54 = vpop.xlane.xlu0 %7912 }
0x1530   : > { %v7195_v5 = vrot.slane %v7187_v44, %v11860_v34  ;;  %v7202_v61 = vrot.slane %v7188_v48, %v11860_v34 }
0x1532   : > { %v7203_v17 = vcombine.low %v7179_v11, %v7195_v5  ;;  %v7204_v31 = vcombine.high %v7179_v11, %v7195_v5  ;;  %v7219_v43 = vcombine.low %v7186_v30, %v7202_v61  ;;  %v7220_v58 = vcombine.high %v7186_v30, %v7202_v61 }
0x1534   : > { %v7211_v50 = vrot.slane %v7203_v17, %v11863_v40  ;;  %v7218_v49 = vrot.slane %v7204_v31, %v11863_v40  ;;  %v7227_v35 = vrot.slane %v7219_v43, %v11863_v40  ;;  %v7234_v36 = vrot.slane %v7220_v58, %v11863_v40 }
0x1536   : > { %v7239_v47 = vpack.c.bf16 %v7211_v50, %v7211_v50  ;;  %v7235_v62 = vcombine.high %v7211_v50, %v10951_v4  ;;  %v7241_v33 = vpack.c.bf16 %v7218_v49, %v7218_v49  ;;  %v7243_v2 = vpack.c.bf16 %v7227_v35, %v7227_v35 }
0x1537   : > { %v7245_v32 = vpack.c.bf16 %v7234_v36, %v7234_v36  ;;  %v7236_v37 = vcombine.high %v7218_v49, %v10951_v4  ;;  %v7237_v16 = vcombine.high %v7227_v35, %v10951_v4  ;;  %v7238_v23 = vcombine.high %v7234_v36, %v10951_v4 }
0x1538   : > { %7959 = vxpose.xlu0.c.b16.start.end [1/1] (short) (narrow) %v7239_v47, 16  ;;  %v7240_v27 = vpack.c.bf16 %v7235_v62, %v7235_v62  ;;  %v7923_v35 = vsub.f32 %v12771_v59, %v7913_v54 }
0x1539   : > { %v7242_v52 = vpack.c.bf16 %v7236_v37, %v7236_v37  ;;  %v7244_v51 = vpack.c.bf16 %v7237_v16, %v7237_v16  ;;  %v7246_v20 = vpack.c.bf16 %v7238_v23, %v7238_v23 }
0x153a   : > { %7975 = vxpose.xlu1.c.b16.start.end [1/1] (short) (narrow) %v7240_v27, 16 }
0x153c   : > { %7991 = vxpose.xlu0.c.b16.start.end [1/1] (short) (narrow) %v7241_v33, 16 }
0x153e   : > { %8023 = vxpose.xlu1.c.b16.start.end [1/1] (short) (narrow) %v7243_v2, 16 }
0x1542   : > { %8055 = vxpose.xlu1.c.b16.start.end [1/1] (short) (narrow) %v7245_v32, 16  ;;  %v7924_v32 = vsub.f32 %v12767_v14, %v12780_v21 }
0x1544   : > { %v7929_v59 = vmul.f32 1.442695, %v7924_v32 }
0x1549   : > { %7918 = vmax.xlane.f32.xlu0 %v7917_v38 }
0x154d   : > { %7921 = vmax.xlane.f32.xlu0 %v7920_v60 }
0x157a   : > { %8007 = vxpose.xlu0.c.b16.start.end [1/1] (short) (narrow) %v7242_v52, 16  ;;  %v7927_v52 = vmul.f32 1.442695, %v7923_v35 }
0x157c   : > { %10323 = vpow2.f32 %v7927_v52 }
0x157d   : > { %10325 = vpow2.f32 %v7929_v59 }
0x157e   : > { %8039 = vxpose.xlu0.c.b16.start.end [1/1] (short) (narrow) %v7244_v51, 16 }
0x1582   : > { %8071 = vxpose.xlu0.c.b16.start.end [1/1] (short) (narrow) %v7246_v20, 16 }
0x159e   : > { %v7967_v0 = vpop.trf.xlu0 }
0x15a0   : > { %v7983_v56 = vpop.trf.xlu1 }
0x15a2   : > { %v7999_v19 = vpop.trf.xlu0 }
0x15a4   : > { %v8031_v22 = vpop.trf.xlu1 }
0x15a5   : > { %v8087_v15 = vcombine.low %v7967_v0, %v8031_v22 }
0x15a7   : > { %v8094_v46 = vrot.slane %v8087_v15, %v11860_v34 }
0x15a8   : > { %v8063_v10 = vpop.trf.xlu1 }
0x15a9   : > { %v8095_v28 = vcombine.low %v7999_v19, %v8063_v10  ;;  %v10324_v19 = vpop.eup %10323 }
0x15ab   : > { %v8102_v53 = vrot.slane %v8095_v28, %v11860_v34 }
0x15ad   : > { %v8103_v44 = vcombine.low %v8094_v46, %v8102_v53  ;;  %v8104_v43 = vcombine.high %v8094_v46, %v8102_v53 }
0x15af   : > { %v8111_v30 = vrot.slane %v8103_v44, %v11863_v40  ;;  %v8118_v38 = vrot.slane %v8104_v43, %v11863_v40 }
0x15b1   : > { %v8159_v47 = vshrl.u32 %v8111_v30, 16  ;;  %v8119_v58 = vcombine.high %v8111_v30, %v10960_v41  ;;  %v8175_v0 = vshrl.u32 %v8118_v38, 16 }
0x15b3   : > { %v8167_v37 = vshrl.u32 %v8119_v58, 16 }
0x15d6   : > { %v7919_v18 = vpop.xlane.xlu0 %7918 }
0x15d7   : > { %v7925_v16 = vsub.f32 %v12777_v3, %v7919_v18  ;;  %v10326_v3 = vpop.eup %10325  ;;  %v7935_v18 = vsel %vm1872_vm4, %v10324_v19, 0.0 }
0x15da   : > { %v7922_v29 = vpop.xlane.xlu0 %7921 }
0x15db   : > { %v7926_v20 = vsub.f32 %v12775_v7, %v7922_v29  ;;  %v7938_v7 = vsel %vm1872_vm4, %v10326_v3, 0.0 }
0x15dd   : > { %v7933_v21 = vmul.f32 1.442695, %v7926_v20 }
0x15e0   : > { %v8015_v55 = vpop.trf.xlu0 }
0x15e4   : > { %v8047_v6 = vpop.trf.xlu0 }
0x15e5   : > { %v8121_v42 = vcombine.low %v7983_v56, %v8047_v6  ;;  %v7931_v56 = vmul.f32 1.442695, %v7925_v16 }
0x15e7   : > { %v8128_v5 = vrot.slane %v8121_v42, %v11860_v34  ;;  %10327 = vpow2.f32 %v7931_v56 }
0x15e8   : > { %v8079_v48 = vpop.trf.xlu0  ;;  %10329 = vpow2.f32 %v7933_v21 }
0x15e9   : > { %v8129_v11 = vcombine.low %v8015_v55, %v8079_v48  ;;  %v8120_v55 = vcombine.high %v8118_v38, %v10960_v41 }
0x15eb   : > { %v8136_v61 = vrot.slane %v8129_v11, %v11860_v34  ;;  %v8183_v6 = vshrl.u32 %v8120_v55, 16 }
0x15ed   : > { %v8137_v17 = vcombine.low %v8128_v5, %v8136_v61  ;;  %v8138_v31 = vcombine.high %v8128_v5, %v8136_v61 }
0x15ef   : > { %v8145_v50 = vrot.slane %v8137_v17, %v11863_v40  ;;  %v8152_v33 = vrot.slane %v8138_v31, %v11863_v40 }
0x15f1   : > { %v8157_v62 = vpack.i.b16 %v8145_v50, %v8111_v30  ;;  %v8160_v49 = vshrl.u32 %v8145_v50, 16  ;;  %v8153_v27 = vcombine.high %v8145_v50, %v10960_v41  ;;  %v8176_v23 = vshrl.u32 %v8152_v33, 16  ;;  %v10328_v22 = vpop.eup %10327 }
0x15f2   : > { %v8173_v54 = vpack.i.b16 %v8152_v33, %v8118_v38  ;;  %v10330_v29 = vpop.eup %10329  ;;  %v7941_v10 = vsel %vm1872_vm4, %v10328_v22, 0.0  ;;  %v8154_v28 = vcombine.high %v8152_v33, %v10960_v41 }
0x15f3   : > { %8187 = vxpose.xlu1.c.b16.start.end [1/1] (short) (narrow) %v8157_v62, 16  ;;  %v8161_v2 = vpack.i.b16 %v8160_v49, %v8159_v47  ;;  %v8168_v36 = vshrl.u32 %v8153_v27, 16  ;;  %v8165_v60 = vpack.i.b16 %v8153_v27, %v8119_v58  ;;  %v8177_v14 = vpack.i.b16 %v8176_v23, %v8175_v0 }
0x15f4   : > { %v7944_v15 = vsel %vm1872_vm4, %v10330_v29, 0.0  ;;  %v8184_v46 = vshrl.u32 %v8154_v28, 16  ;;  %v8181_v53 = vpack.i.b16 %v8154_v28, %v8120_v55 }
0x15f5   : > { %8203 = vxpose.xlu0.c.b16.start.end [1/1] (short) (narrow) %v8161_v2, 16  ;;  %v8169_v51 = vpack.i.b16 %v8168_v36, %v8167_v37 }
0x15f6   : > { %v8185_v42 = vpack.i.b16 %v8184_v46, %v8183_v6 }
0x15f7   : > { %8219 = vxpose.xlu1.c.b16.start.end [1/1] (short) (narrow) %v8165_v60, 16 }
0x15f9   : > { %8235 = vxpose.xlu0.c.b16.start.end [1/1] (short) (narrow) %v8169_v51, 16 }
0x15fb   : > { %8251 = vxpose.xlu1.c.b16.start.end [1/1] (short) (narrow) %v8173_v54, 16 }
0x15fd   : > { %8267 = vxpose.xlu0.c.b16.start.end [1/1] (short) (narrow) %v8177_v14, 16 }
0x1608   : > { %7936 = vadd.xlane.f32.xlu1 %v7935_v18 }
0x160a   : > { %7939 = vadd.xlane.f32.xlu0 %v7938_v7 }
0x160c   : > { %7942 = vadd.xlane.f32.xlu1 %v7941_v10 }
0x160e   : > { %7945 = vadd.xlane.f32.xlu0 %v7944_v15 }
0x1639   : > { %8283 = vxpose.xlu1.c.b16.start.end [1/1] (short) (narrow) %v8181_v53, 16 }
0x163b   : > { %8299 = vxpose.xlu0.c.b16.start.end [1/1] (short) (narrow) %v8185_v42, 16 }
0x163f   : > { %6730 = vxpose.xlu0.b32.start.end [1/1] (short) (narrow) %v12759_v26, 8 }
0x1643   : > { %6762 = vxpose.xlu0.b32.start.end [1/1] (short) (narrow) %v12765_v25, 8  ;;  %6698 = vxpose.xlu1.b32.start.end [1/1] (short) (narrow) %v12757_v45, 8 }
0x1647   : > { %6794 = vxpose.xlu1.b32.start.end [1/1] (short) (narrow) %v12761_v39, 8 }
0x1659   : > { %v8195_v44 = vpop.trf.xlu1 }
0x165b   : > { %v8211_v48 = vpop.trf.xlu0 }
0x165d   : > { %v8227_v11 = vpop.trf.xlu1 }
0x165f   : > { %v8243_v5 = vpop.trf.xlu0 }
0x1661   : > { %v8259_v61 = vpop.trf.xlu1 }
0x1662   : > { %v8315_v26 = vcombine.low %v8195_v44, %v8259_v61 }
0x1663   : > { %v8275_v30 = vpop.trf.xlu0 }
0x1664   : > { %v8340_v45 = vcombine.low %v8211_v48, %v8275_v30  ;;  %v8322_v27 = vrot.slane %v8315_v26, %v11860_v34 }
0x1666   : > { %v8347_v38 = vrot.slane %v8340_v45, %v11860_v34 }
0x1695   : > { %v7937_v17 = vpop.xlane.xlu1 %7936 }
0x1696   : > { %10331 = vrcp.f32 %v7937_v17 }
0x1697   : > { %v7940_v31 = vpop.xlane.xlu0 %7939 }
0x1698   : > { %10333 = vrcp.f32 %v7940_v31 }
0x1699   : > { %v7943_v50 = vpop.xlane.xlu1 %7942 }
0x169a   : > { %10335 = vrcp.f32 %v7943_v50 }
0x169b   : > { %v7946_v43 = vpop.xlane.xlu0 %7945 }
0x169c   : > { %10337 = vrcp.f32 %v7946_v43 }
0x169f   : > { %v8291_v25 = vpop.trf.xlu1 }
0x16a0   : > { %v10332_v47 = vpop.eup %10331  ;;  %v8323_v62 = vcombine.low %v8227_v11, %v8291_v25 }
0x16a1   : > { %v8307_v39 = vpop.trf.xlu0  ;;  %v7951_v49 = vmul.f32 %v10332_v47, %v10324_v19 }
0x16a2   : > { %v10334_v58 = vpop.eup %10333  ;;  %v8330_v35 = vrot.slane %v8323_v62, %v11860_v34  ;;  %v8348_v33 = vcombine.low %v8243_v5, %v8307_v39 }
0x16a3   : > { %v7955_v2 = vpack.c.bf16 %v7951_v49, %v7951_v49  ;;  %v7952_v36 = vmul.f32 %v10334_v58, %v10326_v3 }
0x16a4   : > { %v10336_v32 = vpop.eup %10335  ;;  %v8331_v60 = vcombine.low %v8322_v27, %v8330_v35  ;;  %v8355_v37 = vrot.slane %v8348_v33, %v11860_v34 }
0x16a5   : > { %v8381_v52 = vsel %vm1872_vm4, %v7955_v2, 0  ;;  %v7956_v16 = vpack.c.bf16 %v7952_v36, %v7952_v36  ;;  %v7953_v51 = vmul.f32 %v10336_v32, %v10328_v22 }
0x16a6   : > { %v10338_v23 = vpop.eup %10337  ;;  %v8338_v59 = vrot.slane %v8331_v60, %v11863_v40  ;;  %v8356_v20 = vcombine.low %v8347_v38, %v8355_v37  ;;  %10012 = vmatpush3.bf16.xpose.msra.mxu1 %v8381_v52 }
0x16a7   : > { %v8427_v54 = vsel %vm1872_vm4, %v7956_v16, 0  ;;  %10023 = vmatprep.subr.bf16.mxu1 %v10951_v4  ;;  %v7954_v0 = vmul.f32 %v10338_v23, %v10330_v29  ;;  %v7957_v14 = vpack.c.bf16 %v7953_v51, %v7953_v51 }
0x16a8   : > { %v8363_v56 = vrot.slane %v8356_v20, %v11863_v40  ;;  %10018 = vmatpush3.bf16.xpose.msra.mxu0 %v8427_v54  ;;  %v8368_v21 = vshrl.u32 %v8338_v59, 16  ;;  %v8339_v29 = vcombine.high %v8338_v59, %v10960_v41 }
0x16a9   : > { %10029 = vmatprep.subr.bf16.mxu0 %v10951_v4  ;;  %v7958_v18 = vpack.c.bf16 %v7954_v0, %v7954_v0  ;;  %v8473_v10 = vsel %vm1872_vm4, %v7957_v14, 0 }
0x16aa   : > { %v8367_v19 = vpack.i.b16 %v8363_v56, %v8338_v59  ;;  %v8369_v3 = vshrl.u32 %v8363_v56, 16  ;;  %v8364_v7 = vcombine.high %v8363_v56, %v10960_v41  ;;  %v8374_v55 = vshrl.u32 %v8339_v29, 16 }
0x16ab   : > { %v8519_v15 = vsel %vm1872_vm4, %v7958_v18, 0 }
0x16ac   : > { %v8370_v22 = vpack.i.b16 %v8369_v3, %v8368_v21  ;;  %v8375_v28 = vshrl.u32 %v8364_v7, 16  ;;  %v8373_v46 = vpack.i.b16 %v8364_v7, %v8339_v29 }
0x16ad   : > { %10014 = vmatmul.mubr.msk.bf16.vlgmr.msra.gmra.mrb[60].mxu1 %vm1872_vm4, %v8367_v19 }
0x16ae   : > { %10024 = vmatpush3.bf16.xpose.msra.mxu1 %v8473_v10  ;;  %10025 = vmatprep.mubr.msk.bf16.mxu1 %vm10952_vm1, %v10951_v4  ;;  %v8376_v53 = vpack.i.b16 %v8375_v28, %v8374_v55 }
0x16af   : > { %10020 = vmatmul.mubr.msk.bf16.vlgmr.msra.gmra.mrb[68].mxu0 %vm1872_vm4, %v8370_v22  ;;  %10035 = vmatprep.subr.bf16.mxu1 %v10951_v4 }
0x16b0   : > { %10030 = vmatpush3.bf16.xpose.msra.mxu0 %v8519_v15  ;;  %10031 = vmatprep.mubr.msk.bf16.mxu0 %vm10952_vm1, %v10951_v4 }
0x16b1   : > { %10043 = vmatprep.subr.bf16.mxu0 %v10951_v4 }
0x16b5   : > { %10026 = vmatmul.mubr.msk.bf16.vlgmr.msra.gmra.mrb[64].mxu1 %vm1872_vm4, %v8373_v46 }
0x16b6   : > { %10039 = vmatprep.mubr.msk.bf16.mxu1 %vm10952_vm1, %v10951_v4 }
0x16b7   : > { %10032 = vmatmul.mubr.msk.bf16.vlgmr.msra.gmra.mrb[72].mxu0 %vm1872_vm4, %v8376_v53 }
0x16b8   : > { %10047 = vmatprep.mubr.msk.bf16.mxu0 %vm10952_vm1, %v10951_v4 }
0x16bf   : > { %v6746_v41 = vpop.trf.xlu0 }
0x16c3   : > { %v6714_v6 = vpop.trf.xlu1  ;;  %v6778_v42 = vpop.trf.xlu0 }
0x16c4   : > { %v6826_v48 = vcombine.low %v6714_v6, %v6778_v42  ;;  %v6827_v11 = vcombine.high %v6714_v6, %v6778_v42 }
0x16c6   : > { %v6834_v30 = vrot.slane %v6826_v48, %v11860_v34  ;;  %v6841_v17 = vrot.slane %v6827_v11, %v11860_v34 }
0x16c7   : > { %v6810_v44 = vpop.trf.xlu1 }
0x16c8   : > { %v6842_v5 = vcombine.low %v6746_v41, %v6810_v44  ;;  %v6843_v61 = vcombine.high %v6746_v41, %v6810_v44 }
0x16ca   : > { %v6850_v31 = vrot.slane %v6842_v5, %v11860_v34  ;;  %v6857_v50 = vrot.slane %v6843_v61, %v11860_v34 }
0x16cc   : > { %v6858_v43 = vcombine.low %v6834_v30, %v6850_v31  ;;  %v6859_v26 = vcombine.high %v6834_v30, %v6850_v31  ;;  %v6874_v25 = vcombine.low %v6841_v17, %v6857_v50  ;;  %v6875_v47 = vcombine.high %v6841_v17, %v6857_v50 }
0x16ce   : > { %v6866_v35 = vrot.slane %v6858_v43, %v11863_v40  ;;  %v6873_v33 = vrot.slane %v6859_v26, %v11863_v40  ;;  %v6882_v2 = vrot.slane %v6874_v25, %v11863_v40  ;;  %v6889_v36 = vrot.slane %v6875_v47, %v11863_v40 }
0x16d0   : > { %v6894_v60 = vcombine.low %v6866_v35, %v6873_v33  ;;  %v9674_v37 = vcombine.high %v6866_v35, %v6873_v33  ;;  %v6910_v52 = vcombine.low %v6882_v2, %v6889_v36  ;;  %v9675_v16 = vcombine.high %v6882_v2, %v6889_v36  ;;  %v10263_v35 = vld [vmem:[%s857_s25] sm:$0xff]  }
0x16d1   : > { %10036 = vmatpush3.bf16.msra.mxu1 %v10263_v35 }
0x16d2   : > { %v6901_v56 = vrot.slane %v6894_v60, %v11860_v34  ;;  %v6909_v14 = vrot.slane %v9674_v37, %v11860_v34  ;;  %v6917_v21 = vrot.slane %v6910_v52, %v11860_v34  ;;  %v6925_v19 = vrot.slane %v9675_v16, %v11860_v34  ;;  %10037 = vmatprep.subr.bf16.mxu1 %v10951_v4 }
0x16d4   : > { %v6926_v22 = vcombine.low %v6901_v56, %v6909_v14  ;;  %v6942_v7 = vcombine.low %v6917_v21, %v6925_v19 }
0x16d6   : > { %v12864_v10 = vrot.slane %v6926_v22, %v11863_v40  ;;  %v12867_v29 = vrot.slane %v6942_v7, %v11863_v40 }
0x16d8   : > { %v6958_v15 = vcombine.low %v12864_v10, %v12867_v29 }
0x1780   : > { %v8417_v45 = vpop.f32.mrb[60].mxu1 }
0x1781   : > { %8561 = vxpose.xlu0.b32.start.end [1/1] (short) (narrow) %v8417_v45, 8  ;;  %v10015_v62 = vpop.f32.mrb[61].mxu1  ;;  %v6927_v45 = vcombine.high %v6901_v56, %v6909_v14  ;;  %v6959_v14 = vcombine.high %v12864_v10, %v12867_v29  ;;  %v8847_v10 = vsub.s32 7, %v11817_v8  ;;  %v10350_v29 = vld [vmem:[%s11791_s28] sm:$0xff] }
0x1782   : > { %v8420_v39 = vpop.f32.mrb[62].mxu1  ;;  %v8463_v49 = vpop.f32.mrb[68].mxu0  ;;  %v6943_v62 = vcombine.high %v6917_v21, %v6925_v19 }
0x1783   : > { %v10016_v58 = vpop.f32.mrb[63].mxu1  ;;  %8593 = vxpose.xlu1.b32.start.end [1/1] (short) (narrow) %v8463_v49, 8  ;;  %v10021_v27 = vpop.f32.mrb[69].mxu0 }
0x1784   : > { %v8466_v32 = vpop.f32.mrb[70].mxu0  ;;  %v6957_v60 = vrot.slane %v6943_v62, %v11863_v40 }
0x1785   : > { %v10022_v38 = vpop.f32.mrb[71].mxu0 }
0x1786   : > { %v6941_v38 = vrot.slane %v6927_v45, %v11863_v40 }
0x1788   : > { %v8509_v51 = vpop.f32.mrb[64].mxu1 }
0x1789   : > { %8625 = vxpose.xlu0.b32.start.end [1/1] (short) (narrow) %v8509_v51, 8  ;;  %v10027_v23 = vpop.f32.mrb[65].mxu1 }
0x178a   : > { %v8512_v59 = vpop.f32.mrb[66].mxu1  ;;  %v8555_v20 = vpop.f32.mrb[72].mxu0 }
0x178b   : > { %v10028_v54 = vpop.f32.mrb[67].mxu1  ;;  %8657 = vxpose.xlu1.b32.start.end [1/1] (short) (narrow) %v8555_v20, 8  ;;  %v10033_v0 = vpop.f32.mrb[73].mxu0 }
0x178c   : > { %v8558_v3 = vpop.f32.mrb[74].mxu0  ;;  %v6960_v0 = vcombine.low %v6941_v38, %v6957_v60 }
0x178d   : > { %v10034_v18 = vpop.f32.mrb[75].mxu0 }
0x1801   : > { %v8577_v28 = vpop.trf.xlu0 }
0x1803   : > { %v8609_v55 = vpop.trf.xlu1 }
0x1809   : > { %v8641_v46 = vpop.trf.xlu0 }
0x180a   : > { %v8689_v53 = vcombine.low %v8577_v28, %v8641_v46  ;;  %v8690_v41 = vcombine.high %v8577_v28, %v8641_v46 }
0x180b   : > { %v8673_v6 = vpop.trf.xlu1 }
0x180c   : > { %v8705_v42 = vcombine.low %v8609_v55, %v8673_v6  ;;  %v8706_v44 = vcombine.high %v8609_v55, %v8673_v6  ;;  %v8697_v48 = vrot.slane %v8689_v53, %v11860_v34  ;;  %v8704_v11 = vrot.slane %v8690_v41, %v11860_v34 }
0x180e   : > { %v8713_v5 = vrot.slane %v8705_v42, %v11860_v34  ;;  %v8720_v61 = vrot.slane %v8706_v44, %v11860_v34 }
0x1810   : > { %v8721_v30 = vcombine.low %v8697_v48, %v8713_v5  ;;  %v8722_v17 = vcombine.high %v8697_v48, %v8713_v5  ;;  %v8737_v31 = vcombine.low %v8704_v11, %v8720_v61  ;;  %v8738_v50 = vcombine.high %v8704_v11, %v8720_v61 }
0x1812   : > { %v8729_v43 = vrot.slane %v8721_v30, %v11863_v40  ;;  %v8736_v26 = vrot.slane %v8722_v17, %v11863_v40  ;;  %v8745_v25 = vrot.slane %v8737_v31, %v11863_v40  ;;  %v8752_v47 = vrot.slane %v8738_v50, %v11863_v40 }
0x1814   : > { %v8757_v39 = vcombine.low %v8729_v43, %v8736_v26  ;;  %v9689_v49 = vcombine.high %v8729_v43, %v8736_v26  ;;  %v8773_v58 = vcombine.low %v8745_v25, %v8752_v47  ;;  %v9690_v27 = vcombine.high %v8745_v25, %v8752_v47 }
0x1816   : > { %v8764_v33 = vrot.slane %v8757_v39, %v11860_v34  ;;  %v8772_v2 = vrot.slane %v9689_v49, %v11860_v34  ;;  %v8780_v36 = vrot.slane %v8773_v58, %v11860_v34  ;;  %v8788_v32 = vrot.slane %v9690_v27, %v11860_v34  ;;  %v10264_v34 = vld [vmem:[%s857_s25 + $0x8] sm:$0xff]  }
0x1817   : > { %10038 = vmatpush3.bf16.msra.mxu1 %v10264_v34 }
0x1818   : > { %v8790_v37 = vcombine.high %v8764_v33, %v8772_v2  ;;  %v8806_v52 = vcombine.high %v8780_v36, %v8788_v32  ;;  %v8789_v16 = vcombine.low %v8764_v33, %v8772_v2  ;;  %v8805_v51 = vcombine.low %v8780_v36, %v8788_v32  ;;  %10051 = vmatprep.subr.bf16.mxu1 %v10951_v4 }
0x181a   : > { %v8804_v23 = vrot.slane %v8790_v37, %v11863_v40  ;;  %v8820_v59 = vrot.slane %v8806_v52, %v11863_v40  ;;  %v8797_v20 = vrot.slane %v8789_v16, %v11863_v40  ;;  %v8813_v54 = vrot.slane %v8805_v51, %v11863_v40  ;;  %v10265_v52 = vld [vmem:[%s13180_s12] sm:$0xff]   ;;  %v10266_v16 = vld [vmem:[%s13181_s30 + $0x8] sm:$0xff]  }
0x181b   : > { %v6961_v40 = vcombine.high %v6941_v38, %v6957_v60  ;;  %10044 = vmatpush3.bf16.msra.mxu0 %v10265_v52  ;;  %v10267_v51 = vld [vmem:[%s11787_s23] sm:$0xff]  }
0x181c   : > { %v8823_v56 = vcombine.low %v8804_v23, %v8820_v59  ;;  %v8822_v21 = vcombine.high %v8797_v20, %v8813_v54  ;;  %v8821_v19 = vcombine.low %v8797_v20, %v8813_v54  ;;  %v8824_v22 = vcombine.high %v8804_v23, %v8820_v59  ;;  %10045 = vmatprep.subr.bf16.mxu0 %v10951_v4  ;;  %v10268_v23 = vld [vmem:[%s11787_s23 + $0x8] sm:$0xff]  }
0x181e   : > { %v10244_v3 = vpack.i.bf16 %v8823_v56, %v6960_v0  ;;  %v10239_v18 = vpack.i.bf16 %v8822_v21, %v6959_v14  ;;  %v10249_v7 = vpack.i.bf16 %v8824_v22, %v6961_v40  ;;  %v12930_v14 = vld [vmem:[%s11791_s28 + $0x8] sm:$0x7f]  ;;  %s13182_s28 = sld [smem:[#allocation42_spill]] }
0x181f   : > { %10046 = vmatpush3.bf16.msra.mxu0 %v10266_v16  ;;  %v8936_v21 = vrot.slane %v12930_v14, %v4868_v57  ;;  %v8942_v22 = vrot.slane %v12930_v14, %v4974_v12  ;;  %v10270_v57 = vld [vmem:[%s11787_s23 + $0x18] sm:$0xff]   ;;  %v9127_v52 = vrot.slane %v12930_v14, %v5101_v63 }
0x1820   : > { %10245 = vrot.lane.b32.xlu1 %v10244_v3, %s10962_s6  ;;  %10240 = vrot.lane.b32.xlu0 %v10239_v18, %s10963_s19 }
0x1824   : > { %10250 = vrot.lane.b32.xlu1 %v10249_v7, %s10964_s21  ;;  %p9703_p12 = scmp.ne.s32.totalorder %s13182_s28, 1 }
0x1892   : > { %v10246_v28 = vpop.permute.xlu1 %10245  ;;  %v10241_v55 = vpop.permute.xlu0 %10240 }
0x1893   : > { %v10243_v46 = vunpack.i.h.bf16 %v10241_v55  ;;  %v10242_v53 = vunpack.i.l.bf16 %v10241_v55  ;;  %v10248_v41 = vunpack.i.h.bf16 %v10246_v28  ;;  %v10247_v6 = vunpack.i.l.bf16 %v10246_v28 }
0x1895   : > { %v6974_v42 = vsel %vm1872_vm4, %v6958_v15, %v10242_v53  ;;  %v8837_v44 = vsel %vm1872_vm4, %v8821_v19, %v10243_v46  ;;  %v8848_v15 = vrot.slane %v10350_v29, %v8847_v10 }
0x1896   : > { %v10251_v48 = vpop.permute.xlu1 %10250  ;;  %v6975_v61 = vsel %vm2985_vm5, %v6974_v42, %v10247_v6  ;;  %v8838_v30 = vsel %vm2985_vm5, %v8837_v44, %v10248_v41  ;;  %v10269_v41 = vld [vmem:[%s11787_s23 + $0x10] sm:$0xff]   ;;  %v9694_v6 = vld [vmem:[%s892_s3] ss:$0 sm:$0xff] }
0x1897   : > { %v10253_v11 = vunpack.i.h.bf16 %v10251_v48  ;;  %v10252_v5 = vunpack.i.l.bf16 %v10251_v48 }
0x1899   : > { %v6976_v17 = vsel %vm2987_vm6, %v6975_v61, %v10252_v5  ;;  %v8839_v31 = vsel %vm2987_vm6, %v8838_v30, %v10253_v11 }
0x189a   : > { %v8840_v50 = vpack.c.bf16 %v8839_v31, %v6976_v17  ;;  %v9026_v31 = vrot.slane %v12930_v14, %v1090_v13 }
0x189c   : > { %10040 = vmatmul.mubr.msk.bf16.vlgmr.msra.gmra.mrb[68].mxu1 %vm1043_vm2, %v8840_v50 }
0x189d   : > { %10059 = vmatprep.mubr.msk.bf16.mxu1 %vm10952_vm1, %v10951_v4  ;;  %10052 = vmatpush3.bf16.msra.mxu1 %v10267_v51  ;;  %v9133_v51 = vrot.slane %v12930_v14, %v5107_v24 }
0x189e   : > { %10053 = vmatprep.subr.bf16.mxu1 %v10951_v4 }
0x18a1   : > { %10054 = vmatpush3.bf16.msra.mxu1 %v10268_v23 }
0x18a2   : > { %10055 = vmatprep.subr.bf16.mxu1 %v10951_v4 }
0x18a5   : > { %10056 = vmatpush3.bf16.msra.mxu1 %v10269_v41 }
0x18a6   : > { %10057 = vmatprep.subr.bf16.mxu1 %v10951_v4 }
0x18a9   : > { %10058 = vmatpush3.bf16.msra.mxu1 %v10270_v57 }
0x196f   : > { %v8898_v43 = vpop.f32.mrb[68].mxu1 }
0x1970   : > { %v8899_v26 = vadd.f32 %v8898_v43, %v8848_v15  ;;  %v10041_v25 = vpop.f32.mrb[69].mxu1 }
0x1971   : > { %v8901_v47 = vpop.f32.mrb[70].mxu1 }
0x1972   : > { %v8905_v45 = vadd.f32 %v8899_v26, %v12404_v9  ;;  %v8902_v62 = vadd.f32 %v8901_v47, %v8848_v15  ;;  %v10042_v39 = vpop.f32.mrb[71].mxu1 }
0x1974   : > { %v8906_v49 = vadd.f32 %v8902_v62, %v12407_v1  ;;  %v8907_v58 = vsel %vm1043_vm2, %v8905_v45, 0.0 }
0x1975   : > { %8908 = vadd.xlane.f32.xlu1 %v8907_v58 }
0x1976   : > { %v8910_v27 = vsel %vm1043_vm2, %v8906_v49, 0.0 }
0x1977   : > { %8911 = vadd.xlane.f32.xlu0 %v8910_v27 }
0x1a02   : > { %v8909_v35 = vpop.xlane.xlu1 %8908 }
0x1a03   : > { %v8913_v33 = vmul.f32 0.03125, %v8909_v35 }
0x1a04   : > { %v8912_v2 = vpop.xlane.xlu0 %8911 }
0x1a05   : > { %v8915_v36 = vsub.f32 %v8905_v45, %v8913_v33  ;;  %v8914_v32 = vmul.f32 0.03125, %v8912_v2 }
0x1a07   : > { %v8916_v9 = vsub.f32 %v8906_v49, %v8914_v32  ;;  %v8917_v38 = vmul.f32 %v8915_v36, %v8915_v36 }
0x1a09   : > { %v8919_v60 = vsel %vm1043_vm2, %v8917_v38, 0.0  ;;  %v8918_v1 = vmul.f32 %v8916_v9, %v8916_v9 }
0x1a0a   : > { %8920 = vadd.xlane.f32.xlu0 %v8919_v60 }
0x1a0b   : > { %v8922_v37 = vsel %vm1043_vm2, %v8918_v1, 0.0 }
0x1a0c   : > { %8923 = vadd.xlane.f32.xlu1 %v8922_v37 }
0x1a97   : > { %v8921_v59 = vpop.xlane.xlu0 %8920 }
0x1a98   : > { %v8925_v20 = vmul.f32 0.03125, %v8921_v59 }
0x1a99   : > { %v8924_v54 = vpop.xlane.xlu1 %8923 }
0x1a9a   : > { %v8927_v34 = vadd.f32 1e-05, %v8925_v20  ;;  %v8926_v0 = vmul.f32 0.03125, %v8924_v54 }
0x1a9c   : > { %10339 = vrsqrt.f32 %v8927_v34  ;;  %v8928_v56 = vadd.f32 1e-05, %v8926_v0 }
0x1a9e   : > { %10341 = vrsqrt.f32 %v8928_v56 }
0x1aa6   : > { %v10340_v19 = vpop.eup %10339 }
0x1aa7   : > { %v8931_v3 = vmul.f32 %v10340_v19, %v8915_v36 }
0x1aa8   : > { %v10342_v18 = vpop.eup %10341 }
0x1aa9   : > { %v8937_v40 = vmul.f32 %v8936_v21, %v8931_v3  ;;  %v8932_v7 = vmul.f32 %v10342_v18, %v8916_v9 }
0x1aab   : > { %v8938_v28 = vmul.f32 %v8936_v21, %v8932_v7  ;;  %v8943_v55 = vadd.f32 %v8942_v22, %v8937_v40 }
0x1aad   : > { %v8944_v46 = vadd.f32 %v8942_v22, %v8938_v28 }
0x1aaf   : > { %v8945_v53 = vpack.c.bf16 %v8944_v46, %v8943_v55 }
0x1ab1   : > { %10048 = vmatmul.mubr.msk.bf16.vlgmr.msra.gmra.mrb[76].mxu0 %vm1043_vm2, %v8945_v53 }
0x1b84   : > { %v9005_v42 = vpop.f32.mrb[76].mxu0 }
0x1b85   : > { %v9006_v44 = vadd.f32 %v9694_v6, %v9005_v42  ;;  %v10049_v48 = vpop.f32.mrb[77].mxu0 }
0x1b86   : > { %v9008_v12 = vpop.f32.mrb[78].mxu0 }
0x1b87   : > { %v9009_v11 = vadd.f32 %v9694_v6, %v9008_v12  ;;  %v10050_v5 = vpop.f32.mrb[79].mxu0  ;;  %v9012_v61 = vmax.f32 %v9006_v44, 0.0  ;;  %v9704_v44 = vld [vmem:[#allocation24] ss:$0 sm:$0xff] (!%p9703_p12)  ;;  %v9705_v12 = vld [vmem:[#allocation26] ss:$0 sm:$0xff] (!%p9703_p12) }
0x1b89   : > { %v9013_v30 = vmax.f32 %v9009_v11, 0.0 }
0x1b8b   : > { %v9014_v17 = vpack.c.bf16 %v9013_v30, %v9012_v61 }
0x1b8d   : > { %10060 = vmatmul.mubr.msk.bf16.vlgmr.msra.gmra.mrb[72].mxu1 %vm9051_vm7, %v9014_v17 }
0x1c60   : > { %v9089_v4 = vpop.f32.mrb[72].mxu1 }
0x1c61   : > { %v9090_v50 = vadd.f32 %v9089_v4, %v9026_v31  ;;  %v10061_v10 = vpop.f32.mrb[73].mxu1 }
0x1c62   : > { %v9092_v29 = vpop.f32.mrb[74].mxu1 }
0x1c63   : > { %v9096_v15 = vadd.f32 %v9090_v50, %v8943_v55  ;;  %v9093_v43 = vadd.f32 %v9092_v29, %v9026_v31  ;;  %v10062_v26 = vpop.f32.mrb[75].mxu1 }
0x1c65   : > { %v9097_v25 = vadd.f32 %v9093_v43, %v8944_v46  ;;  %v9098_v47 = vsel %vm1043_vm2, %v9096_v15, 0.0 }
0x1c66   : > { %9099 = vadd.xlane.f32.xlu0 %v9098_v47 }
0x1c67   : > { %v9101_v45 = vsel %vm1043_vm2, %v9097_v25, 0.0 }
0x1c68   : > { %9102 = vadd.xlane.f32.xlu1 %v9101_v45 }
0x1cf3   : > { %v9100_v62 = vpop.xlane.xlu0 %9099 }
0x1cf4   : > { %v9104_v39 = vmul.f32 0.03125, %v9100_v62 }
0x1cf5   : > { %v9103_v49 = vpop.xlane.xlu1 %9102 }
0x1cf6   : > { %v9106_v58 = vsub.f32 %v9096_v15, %v9104_v39  ;;  %v9105_v27 = vmul.f32 0.03125, %v9103_v49 }
0x1cf8   : > { %v9107_v13 = vsub.f32 %v9097_v25, %v9105_v27  ;;  %v9108_v35 = vmul.f32 %v9106_v58, %v9106_v58 }
0x1cfa   : > { %v9110_v33 = vsel %vm1043_vm2, %v9108_v35, 0.0  ;;  %v9109_v2 = vmul.f32 %v9107_v13, %v9107_v13 }
0x1cfb   : > { %9111 = vadd.xlane.f32.xlu0 %v9110_v33 }
0x1cfc   : > { %v9113_v36 = vsel %vm1043_vm2, %v9109_v2, 0.0 }
0x1cfd   : > { %9114 = vadd.xlane.f32.xlu1 %v9113_v36 }
0x1d88   : > { %v9112_v32 = vpop.xlane.xlu0 %9111 }
0x1d89   : > { %v9116_v9 = vmul.f32 0.03125, %v9112_v32 }
0x1d8a   : > { %v9115_v38 = vpop.xlane.xlu1 %9114 }
0x1d8b   : > { %v9118_v60 = vadd.f32 1e-05, %v9116_v9  ;;  %v9117_v1 = vmul.f32 0.03125, %v9115_v38 }
0x1d8d   : > { %10343 = vrsqrt.f32 %v9118_v60  ;;  %v9119_v37 = vadd.f32 1e-05, %v9117_v1 }
0x1d8f   : > { %10345 = vrsqrt.f32 %v9119_v37 }
0x1d97   : > { %v10344_v16 = vpop.eup %10343 }
0x1d98   : > { %v9122_v23 = vmul.f32 %v10344_v16, %v9106_v58 }
0x1d99   : > { %v10346_v59 = vpop.eup %10345 }
0x1d9a   : > { %v9128_v20 = vmul.f32 %v9127_v52, %v9122_v23  ;;  %v9123_v54 = vmul.f32 %v10346_v59, %v9107_v13  ;;  %9141 = sbr.rel (%p9703_p12) target bundleno = 7900 (0x1edc), region = 148 }
0x1d9c   : > { %v9134_v34 = vadd.f32 %v9133_v51, %v9128_v20  ;;  %v9129_v0 = vmul.f32 %v9127_v52, %v9123_v54 }
0x1d9e   : > { %9136 = vst.msk [vmem:[#allocation2] sm:$0xff] %vm1043_vm2, %v9134_v34  ;;  %v9135_v56 = vadd.f32 %v9133_v51, %v9129_v0  ;;  %v9144_v63 = vsel (!%p9703_p12), %vm1043_vm2, %v9134_v34, 0.0 }
0x1d9f   : > { %9145 = vadd.xlane.f32.xlu0 (!%p9703_p12), %v9144_v63 }
0x1da0   : > { %9137 = vst.msk [vmem:[#allocation2 + $0x8] sm:$0xff] %vm1043_vm2, %v9135_v56  ;;  %v9147_v8 = vsel (!%p9703_p12), %vm1043_vm2, %v9135_v56, 0.0 }
0x1da3   : > { %9148 = vadd.xlane.f32.xlu0 %v9147_v8 }
0x1e2c   : > { %v9146_v24 = vpop.xlane.xlu0 %9145 }
0x1e2d   : > { %v9150_v14 = vmul.f32 0.03125, %v9146_v24 }
0x1e2f   : > { %v9152_v21 = vsub.f32 %v9134_v34, %v9150_v14 }
0x1e30   : > { %v9149_v19 = vpop.xlane.xlu0 %9148 }
0x1e31   : > { %v9151_v3 = vmul.f32 0.03125, %v9149_v19  ;;  %v9154_v18 = vmul.f32 %v9152_v21, %v9152_v21 }
0x1e33   : > { %v9153_v22 = vsub.f32 %v9135_v56, %v9151_v3  ;;  %v9156_v40 = vsel %vm1043_vm2, %v9154_v18, 0.0 }
0x1e34   : > { %9157 = vadd.xlane.f32.xlu1 %v9156_v40 }
0x1e35   : > { %v9155_v7 = vmul.f32 %v9153_v22, %v9153_v22 }
0x1e37   : > { %v9159_v28 = vsel %vm1043_vm2, %v9155_v7, 0.0 }
0x1e38   : > { %9160 = vadd.xlane.f32.xlu1 %v9159_v28 }
0x1ec1   : > { %v9158_v55 = vpop.xlane.xlu1 %9157 }
0x1ec2   : > { %v9162_v46 = vmul.f32 0.03125, %v9158_v55 }
0x1ec4   : > { %v9164_v53 = vadd.f32 1e-05, %v9162_v46 }
0x1ec5   : > { %v9161_v41 = vpop.xlane.xlu1 %9160 }
0x1ec6   : > { %10352 = vrsqrt.f32 %v9164_v53  ;;  %v9163_v57 = vmul.f32 0.03125, %v9161_v41 }
0x1ec8   : > { %v9165_v6 = vadd.f32 1e-05, %v9163_v57 }
0x1eca   : > { %10354 = vrsqrt.f32 %v9165_v6 }
0x1ed0   : > { %v10353_v42 = vpop.eup %10352 }
0x1ed1   : > { %v9168_v48 = vmul.f32 %v10353_v42, %v9152_v21 }
0x1ed3   : > { %v9176_v11 = vmul.f32 %v9704_v44, %v9168_v48 }
0x1ed4   : > { %v10355_v5 = vpop.eup %10354 }
0x1ed5   : > { %v9184_v61 = vadd.f32 %v9705_v12, %v9176_v11  ;;  %v9169_v30 = vmul.f32 %v10355_v5, %v9153_v22 }
0x1ed7   : > { %9186 = vst.msk [vmem:[%s11804_s5] sm:$0xff] %vm1043_vm2, %v9184_v61  ;;  %v9177_v17 = vmul.f32 %v9704_v44, %v9169_v30 }
0x1ed9   : > { %v9185_v31 = vadd.f32 %v9705_v12, %v9177_v17 }
0x1edb   : > { %9187 = vst.msk [vmem:[%s11804_s5 + $0x8] sm:$0xff] %vm1043_vm2, %v9185_v31 }
0x1edc PF: > { %s13183_s13 = sld [smem:[#allocation43_spill]]  ;;  %s13184_s10 = sld [smem:[#allocation52_spill]] }
0x1edd   : > { %s13185_s15 = sld [smem:[#allocation69_spill]]  ;;  %s9202_s18 = sshll.u32 %s11804_s5, 4  ;;  %s12975_s18 = int_to_ptr.vmem [resolvable:$true] %s9202_s18 }
0x1ede   : > { %s9189_s4 = scalar_lea.sflag [#allocation5], %s11724_s0  ;;  %s10776_s29 = scalar_lea.vmem %s12975_s18, 256 }
0x1edf   : > { %p10777_p13 = scmp.ne.s32.totalorder %s12975_s18, %s10776_s29  ;;  %s10965_s1 = smov [#allocation27]  }
0x1ee0   : > { %s10780_s16 = sshll.u32 %s10965_s1, 4  ;;  %s10781_s16 = int_to_ptr.vmem [resolvable:$false] %s10780_s16 }
0x1ee1   : > { %s10782_s6 = scalar_lea.vmem %s10781_s16, 512  ;;  %p10783_p2 = scmp.lt.s32.totalorder %s12975_s18, %s10781_s16 }
0x1ee2   : > { %s9723_s25 = sshll.u32 %s13183_s13, 8  ;;  %p13186_p7 = scmp.ne.s32.totalorder %s13184_s10, 0 }
0x1ee3   : > { %s12972_s20 = scalar_lea.hbm %s13185_s15, %s9723_s25  ;;  %p10784_p1 = scmp.lt.s32.totalorder %s10782_s6, %s10776_s29 }
0x1ee4   : > { %p10778_p3 = pnand %p10777_p13, %p13186_p7 }
0x1ee5   : > { %p10785_p4 = por %p10784_p1, %p10783_p2 }
0x1ee6   : > { %p10779_p8 = pneg %p10778_p3 }
0x1ee8   : > { %p10786_p0 = pnand %p10785_p4, %p10779_p8 }
0x1eea   : > { %10789 = shalt.err (!%p10786_p0)
}
0x1eeb   : > { %s10790_s5 = scalar_lea.hbm %s12972_s20, 256  ;;  %s10794_s2 = scalar_lea.hbm %s13185_s15, 512 }
0x1eec   : > { %p10791_p9 = scmp.ne.s32.totalorder %s12972_s20, %s10790_s5  ;;  %p10795_p6 = scmp.lt.u32.totalorder %s12972_s20, %s13185_s15 }
0x1eed   : > { %p10796_p10 = scmp.lt.u32.totalorder %s10794_s2, %s10790_s5  ;;  %p10798_p13 = scmp.lt.u32.totalorder %s10790_s5, %s12972_s20 }
0x1eee   : > { %p10792_p11 = pnand %p10791_p9, %p13186_p7 }
0x1eef   : > { %p10797_p12 = por %p10796_p10, %p10795_p6 }
0x1ef0   : > { %p10793_p5 = pneg %p10792_p11 }
0x1ef1   : > { %p10799_p3 = por %p10798_p13, %p10797_p12 }
0x1ef3   : > { %p10800_p8 = pnand %p10799_p3, %p10793_p5 }
0x1ef5   : > { %10803 = shalt.err (!%p10800_p8)
}
0x1ef6   : > { %s10966_s28 = smov 128  }
0x1ef7   : > { %10097 = dma.vmem_to_hbm [thread:$0]  (%p13186_p7), %s12975_s18, 256, %s12972_s20, %s9189_s4, %s10966_s28, %s10966_s28, %s10963_s19  }
0x1ef8 PF: > { %s13187_s13 = sld [smem:[#allocation44_spill]]  ;;  %s13188_s25 = sld [smem:[#allocation40_spill]] }
0x1ef9   : > { %s13189_s3 = sld [smem:[#allocation53_spill]] }
0x1efe   : > { %p10114_p2 = scmp.ge.s32.totalorder %s13187_s13, 2  ;;  %s9217_s23 = sand.u32 1, %s13188_s25  }
0x1eff   : > { %p13190_p1 = scmp.ne.s32.totalorder %s13189_s3, 0  ;;  %s9218_s29 = scalar_lea.sflag [#allocation5], %s9217_s23 }
0x1f01   : > { %p10107_p4 = pnand %p10114_p2, %p13190_p1 }
0x1f03   : > { %10885 = dma.done.wait (!%p10107_p4), %s9218_s29, 256  }
0x1f04   : > { %10887 = vsyncadd (!%p10107_p4), %s9218_s29, 4294967040  ;;  %s50_s28 = sadd.s32 1, %s13187_s13   ;;  %s13191_s18 = sld [smem:[#allocation38_spill]] }
0x1f05   : > { %p47_p0 = scmp.ge.s32.totalorder %s50_s28, 6   ;;  %s13192_s19 = sld [smem:[#allocation39_spill]] }
0x1f06   : > { %s13193_s20 = sld [smem:[#allocation49_spill]]  ;;  %s13194_s0 = sld [smem:[#allocation41_spill]] }
0x1f07   : > { %s13195_s23 = sld [smem:[#allocation50_spill]]  ;;  %s13196_s10 = sld [smem:[#allocation46_spill]] }
0x1f08   : > { %s13197_s4 = sld [smem:[#allocation47_spill]]  ;;  %s13198_s21 = smov %s10906_s22 }
0x1f09   : > { %s13200_s24 = smov %s10922_s26  ;;  %s13201_s25 = smov %s10926_s27 }
0x1f0a   :  { %49 = sbr.rel (!%p47_p0) target bundleno = 39 (0x27), region = 287 }
0x1f0c   : > { %s13199_s22 = smov %s13194_s0 }
0x1f0d   : > { %s13202_s26 = smov %s13196_s10 }
0x1f0e   : > { %s13203_s27 = smov %s13197_s4 }
0x1f11   :  { %9223 = vsyncpa [#allocation4], 1 }
0x1f12   :  { %9225 = vsyncpa [#allocation4 + $0x1], 1 }
0x1f13   :  { %9226 = vsyncpa [#allocation7], 1 }
0x1f14   :  { %9228 = vsyncpa [#allocation7 + $0x1], 1 }
0x1f15   :  { %9229 = vsyncpa [#allocation10], 1 }
0x1f16   :  { %9231 = vsyncpa [#allocation10 + $0x1], 1 }
0x1f17   :  { %9232 = vsyncpa [#allocation13], 1 }
0x1f18   :  { %9234 = vsyncpa [#allocation13 + $0x1], 1 }
0x1f19   :  { %9235 = vsyncpa [#allocation16], 1 }
0x1f1a   :  { %9237 = vsyncpa [#allocation16 + $0x1], 1 }
0x1f1b   :  { %9238 = vsyncpa [#allocation19], 1 }
0x1f1c   :  { %9240 = vsyncpa [#allocation19 + $0x1], 1 }
0x1f1d   :  { %9241 = vsyncpa [#allocation22], 1 }
0x1f1e   :  { %9243 = vsyncpa [#allocation22 + $0x1], 1 }
0x1f1f   :  { %9244 = vsyncpa [#allocation25], 1 }
0x1f20   :  { %9245 = vsyncpa [#allocation5], 1 }
0x1f21   :  { %9247 = vsyncpa [#allocation5 + $0x1], 1 }

</bundles_post_ra>
